<compile_context>
chip_gen: v6e
topology: v6e:2x2x1
jax: 0.10.0
libtpu: 0.0.40
codegen_flags: <defaults>
</compile_context>

<pallas_src>
import jax
import jax.numpy as jnp
from jax.experimental import pallas as pl
from jax.experimental.pallas import tpu as pltpu


def brm_kernel(x1_ref, xe_ref, watt_ref, w1_ref, b1_ref, w2_ref, b2_ref,
               out_ref, slab_ref):
    _, H, W, C = x1_ref.shape
    HW = H * W
    cdt = slab_ref.dtype  # matmul operand dtype (bf16 by default)

    # Zero only the 1-row top/bottom halo strips of the im2col slab; the
    # interior rows are fully overwritten below and the dx borders are zeroed
    # in-register.  Done every step on purpose (each megacore core has its own
    # scratch copy, so a program_id==0 guard would be wrong).
    zero_strip = jnp.zeros((W, 3 * C), cdt)
    slab_ref[pl.ds(0, W), :] = zero_strip
    slab_ref[pl.ds((H + 1) * W, W), :] = zero_strip

    # ---- x = x_1 + x_edge ------------------------------------------------
    x = x1_ref[0] + xe_ref[0]                       # (H, W, C) f32
    xm = x.reshape(HW, C)

    # ---- channel attention: global avg pool -> 1x1 conv -> sigmoid --------
    pooled = jnp.mean(xm, axis=0, keepdims=True)    # (1, C)
    atten = jax.nn.sigmoid(
        jnp.dot(pooled, watt_ref[...], preferred_element_type=jnp.float32))

    # out = x * atten + x == x * (1 + atten)   (broadcast over spatial)
    y0 = (xm * (1.0 + atten)).reshape(H, W, C)

    def write_im2col(y):
        """Write lane-concatenated dx = 0/1/2 taps of y into the slab interior.

        slab[(pr)*W + wo, dx*C:(dx+1)*C] = padded[pr, wo + dx, :]
        where padded is y with a 1-pixel zero border, pr in [0, H+1].
        """
        y = y.astype(cdt)                                   # (H, W, C)
        zc = jnp.zeros((H, 1, C), cdt)
        # padded col (wo+0) = y[:, wo-1], zero at wo == 0
        left = jnp.concatenate([zc, y[:, : W - 1, :]], axis=1)
        # padded col (wo+2) = y[:, wo+1], zero at wo == W-1
        right = jnp.concatenate([y[:, 1:, :], zc], axis=1)
        # lane concat at 128-lane boundaries (cheap)
        slab = jnp.concatenate([left, y, right], axis=-1)   # (H, W, 3C)
        slab_ref[pl.ds(W, HW), :] = slab.reshape(HW, 3 * C)

    def conv_bn_relu(w_ref, b_ref):
        """3x3 conv (pad=1, no bias) as 3 dy-tap matmuls with K = 3*C,
        BN scale folded into w, then shift + ReLU."""
        acc = jnp.dot(slab_ref[pl.ds(0, HW), :], w_ref[0],
                      preferred_element_type=jnp.float32)
        acc += jnp.dot(slab_ref[pl.ds(W, HW), :], w_ref[1],
                       preferred_element_type=jnp.float32)
        acc += jnp.dot(slab_ref[pl.ds(2 * W, HW), :], w_ref[2],
                       preferred_element_type=jnp.float32)
        return jnp.maximum(acc + b_ref[...], 0.0)           # (HW, C) f32

    write_im2col(y0)
    h1 = conv_bn_relu(w1_ref, b1_ref)
    write_im2col(h1.reshape(H, W, C))
    h2 = conv_bn_relu(w2_ref, b2_ref)

    out_ref[0] = h2.reshape(H, W, C).astype(out_ref.dtype)


def brm(x1_nhwc, xe_nhwc, params, *, eps=1e-5, compute_dtype=jnp.bfloat16):
    """x1_nhwc, xe_nhwc: (B, H, W, C) float32. Params use PyTorch layouts."""
    B, H, W, C = x1_nhwc.shape
    assert C % 128 == 0, "channels must be lane-dense (multiple of 128)"
    assert W % 16 == 0, "W must be a multiple of 16 (sublane-aligned slab rows)"

    # --- one-time host-side parameter re-layout + BN folding ---------------
    watt_t = jnp.transpose(params["w_atten"][:, :, 0, 0], (1, 0)).astype(jnp.float32)

    def fold(w_oihw, g, b, m, v):
        scale = g * jax.lax.rsqrt(v + eps)                   # (C,)
        shift = b - m * scale
        w_hwio = jnp.transpose(w_oihw, (2, 3, 1, 0))         # (kh, kw, Cin, Cout)
        w_fold = w_hwio * scale[None, None, None, :]         # fold BN scale into w
        wcat = w_fold.reshape(3, 3 * C, C).astype(compute_dtype)   # (dy, 3*Cin, Cout)
        return wcat, shift.reshape(1, C).astype(jnp.float32)

    w1, b1 = fold(params["w1"], params["bn1_g"], params["bn1_b"],
                  params["bn1_m"], params["bn1_v"])
    w2, b2 = fold(params["w2"], params["bn2_g"], params["bn2_b"],
                  params["bn2_m"], params["bn2_v"])

    act_spec = pl.BlockSpec((1, H, W, C), lambda b: (b, 0, 0, 0))
    out = pl.pallas_call(
        brm_kernel,
        out_shape=jax.ShapeDtypeStruct((B, H, W, C), x1_nhwc.dtype),
        grid=(B,),
        in_specs=[
            act_spec,                                            # x_1
            act_spec,                                            # x_edge
            pl.BlockSpec((C, C), lambda b: (0, 0)),              # w_atten^T (f32)
            pl.BlockSpec((3, 3 * C, C), lambda b: (0, 0, 0)),    # conv_1 w (BN-folded)
            pl.BlockSpec((1, C), lambda b: (0, 0)),              # bn_1 shift
            pl.BlockSpec((3, 3 * C, C), lambda b: (0, 0, 0)),    # conv_2 w (BN-folded)
            pl.BlockSpec((1, C), lambda b: (0, 0)),              # bn_2 shift
        ],
        out_specs=act_spec,
        scratch_shapes=[pltpu.VMEM(((H + 2) * W, 3 * C), compute_dtype)],
        compiler_params=pltpu.CompilerParams(
            dimension_semantics=("parallel",)),
    )(x1_nhwc, xe_nhwc, watt_t, w1, b1, w2, b2)
    return out


def reference(x1_nhwc, xe_nhwc, params, eps=1e-5):
    """Pure-JAX mirror of the PyTorch forward (NCHW, lax.conv) for checking."""
    def conv(x, w, padding):
        return jax.lax.conv_general_dilated(
            x, w, window_strides=(1, 1), padding=padding,
            dimension_numbers=("NCHW", "OIHW", "NCHW"),
            precision=jax.lax.Precision.HIGHEST)

    def bn(y, g, b, m, v):
        g = g[None, :, None, None]; b = b[None, :, None, None]
        m = m[None, :, None, None]; v = v[None, :, None, None]
        return (y - m) * jax.lax.rsqrt(v + eps) * g + b

    x1 = jnp.transpose(x1_nhwc, (0, 3, 1, 2))
    xe = jnp.transpose(xe_nhwc, (0, 3, 1, 2))
    x = x1 + xe
    atten = jnp.mean(x, axis=(2, 3), keepdims=True)
    atten = jax.nn.sigmoid(conv(atten, params["w_atten"], "VALID"))
    out = x * atten + x
    out = jnp.maximum(bn(conv(out, params["w1"], "SAME"),
                         params["bn1_g"], params["bn1_b"],
                         params["bn1_m"], params["bn1_v"]), 0.0)
    out = jnp.maximum(bn(conv(out, params["w2"], "SAME"),
                         params["bn2_g"], params["bn2_b"],
                         params["bn2_m"], params["bn2_v"]), 0.0)
    return jnp.transpose(out, (0, 2, 3, 1))


if __name__ == "__main__":
    B, C, H, W = 2, 128, 16, 16
    key = jax.random.PRNGKey(0)
    ks = jax.random.split(key, 14)

    def kaiming(k, shape):                       # PyTorch OIHW layout, fan_in mode
        fan_in = shape[1] * shape[2] * shape[3]
        return (jnp.sqrt(2.0 / fan_in) * jax.random.normal(k, shape)).astype(jnp.float32)

    def bnp(k, shift=0.0, scale=0.1):
        return (shift + scale * jax.random.normal(k, (C,))).astype(jnp.float32)

    params = dict(
        w_atten=kaiming(ks[0], (C, C, 1, 1)),
        w1=kaiming(ks[1], (C, C, 3, 3)),
        w2=kaiming(ks[2], (C, C, 3, 3)),
        bn1_g=bnp(ks[3], 1.0), bn1_b=bnp(ks[4]),
        bn1_m=bnp(ks[5]),      bn1_v=jnp.abs(bnp(ks[6], 1.0)) + 0.1,
        bn2_g=bnp(ks[7], 1.0), bn2_b=bnp(ks[8]),
        bn2_m=bnp(ks[9]),      bn2_v=jnp.abs(bnp(ks[10], 1.0)) + 0.1,
    )
    x1 = jax.random.normal(ks[11], (B, H, W, C), jnp.float32)
    xe = jax.random.normal(ks[12], (B, H, W, C), jnp.float32)

    ref = reference(x1, xe, params)

    # Primary (optimized) path: bf16 MXU operands, f32 accumulation.
    # Expected max abs error vs the f32 HIGHEST reference ~2-3e-2 at these
    # magnitudes (two K=1152 bf16 contractions), hence the looser tolerance.
    out = brm(x1, xe, params)                        # compute_dtype=bf16
    out = jax.block_until_ready(out)
    assert out.shape == (B, H, W, C)
    err_bf16 = float(jnp.max(jnp.abs(out - ref)))
    assert jnp.allclose(out, ref, atol=6e-2, rtol=6e-2), \
        f"bf16 path max abs err {err_bf16}"

    # Tight structural-correctness check with f32 matmul operands.
    out_f32 = jax.block_until_ready(
        brm(x1, xe, params, compute_dtype=jnp.float32))
    err_f32 = float(jnp.max(jnp.abs(out_f32 - ref)))
    assert jnp.allclose(out_f32, ref, atol=5e-3, rtol=5e-3), \
        f"f32 path max abs err {err_f32}"

    print("KERNEL_OK")
</pallas_src>

<mosaic_0001>
module attributes {stable_mosaic.version = 11 : i64} {
  func.func @brm_kernel(%arg0: i32, %arg1: memref<1x16x16x128xf32, #tpu.memory_space<vmem>>, %arg2: memref<1x16x16x128xf32, #tpu.memory_space<vmem>>, %arg3: memref<128x128xf32, #tpu.memory_space<vmem>>, %arg4: memref<3x384x128xbf16, #tpu.memory_space<vmem>>, %arg5: memref<1x128xf32, #tpu.memory_space<vmem>>, %arg6: memref<3x384x128xbf16, #tpu.memory_space<vmem>>, %arg7: memref<1x128xf32, #tpu.memory_space<vmem>>, %arg8: memref<1x16x16x128xf32, #tpu.memory_space<vmem>>, %arg9: memref<288x384xbf16, #tpu.memory_space<vmem>>) attributes {dimension_semantics = [#tpu.dimension_semantics<parallel>], iteration_bounds = array<i64: 2>, scalar_prefetch = 0 : i64, scratch_operands = 1 : i64, tpu.core_type = #tpu.core_type<tc>, window_params = [{transform_indices = @transform_0, window_bounds = array<i64: 1, 16, 16, 128>}, {transform_indices = @transform_1, window_bounds = array<i64: 1, 16, 16, 128>}, {pipeline_mode = #tpu.pipeline_mode<synchronous>, transform_indices = @transform_2, window_bounds = array<i64: 128, 128>}, {pipeline_mode = #tpu.pipeline_mode<synchronous>, transform_indices = @transform_3, window_bounds = array<i64: 3, 384, 128>}, {pipeline_mode = #tpu.pipeline_mode<synchronous>, transform_indices = @transform_4, window_bounds = array<i64: 1, 128>}, {pipeline_mode = #tpu.pipeline_mode<synchronous>, transform_indices = @transform_5, window_bounds = array<i64: 3, 384, 128>}, {pipeline_mode = #tpu.pipeline_mode<synchronous>, transform_indices = @transform_6, window_bounds = array<i64: 1, 128>}, {transform_indices = @transform_7, window_bounds = array<i64: 1, 16, 16, 128>}]} {
    %cst = arith.constant 0.000000e+00 : bf16
    %0 = vector.broadcast %cst : bf16 to vector<16x384xbf16>
    %c0 = arith.constant 0 : index
    %c0_0 = arith.constant 0 : index
    %1 = vector.load %arg9[%c0, %c0_0] : memref<288x384xbf16, #tpu.memory_space<vmem>>, vector<16x384xbf16>
    tpu.vector_store %arg9[%c0, %c0_0], %0 {strides = array<i32>} : memref<288x384xbf16, #tpu.memory_space<vmem>>, vector<16x384xbf16>,
    %c272 = arith.constant 272 : index
    %c0_1 = arith.constant 0 : index
    %2 = vector.load %arg9[%c272, %c0_1] : memref<288x384xbf16, #tpu.memory_space<vmem>>, vector<16x384xbf16>
    tpu.vector_store %arg9[%c272, %c0_1], %0 {strides = array<i32>} : memref<288x384xbf16, #tpu.memory_space<vmem>>, vector<16x384xbf16>,
    %c0_2 = arith.constant 0 : index
    %c0_3 = arith.constant 0 : index
    %c0_4 = arith.constant 0 : index
    %c0_5 = arith.constant 0 : index
    %3 = vector.load %arg1[%c0_2, %c0_3, %c0_4, %c0_5] : memref<1x16x16x128xf32, #tpu.memory_space<vmem>>, vector<1x16x16x128xf32>
    %4 = vector.shape_cast %3 : vector<1x16x16x128xf32> to vector<16x16x128xf32>
    %c0_6 = arith.constant 0 : index
    %c0_7 = arith.constant 0 : index
    %c0_8 = arith.constant 0 : index
    %c0_9 = arith.constant 0 : index
    %5 = vector.load %arg2[%c0_6, %c0_7, %c0_8, %c0_9] : memref<1x16x16x128xf32, #tpu.memory_space<vmem>>, vector<1x16x16x128xf32>
    %6 = vector.shape_cast %5 : vector<1x16x16x128xf32> to vector<16x16x128xf32>
    %7 = arith.addf %4, %6 : vector<16x16x128xf32>
    %8 = vector.shape_cast %7 : vector<16x16x128xf32> to vector<256x128xf32>
    %cst_10 = arith.constant dense<0.000000e+00> : vector<128xf32>
    %9 = vector.multi_reduction <add>, %8, %cst_10 [0] : vector<256x128xf32> to vector<128xf32>
    %10 = vector.shape_cast %9 : vector<128xf32> to vector<1x128xf32>
    %cst_11 = arith.constant 2.560000e+02 : f32
    %11 = vector.broadcast %cst_11 : f32 to vector<1x128xf32>
    %12 = arith.divf %10, %11 : vector<1x128xf32>
    %c0_12 = arith.constant 0 : index
    %c0_13 = arith.constant 0 : index
    %13 = vector.load %arg3[%c0_12, %c0_13] : memref<128x128xf32, #tpu.memory_space<vmem>>, vector<128x128xf32>
    %cst_14 = arith.constant dense<0.000000e+00> : vector<1x128xf32>
    %14 = tpu.matmul %12, %13, %cst_14 {dimension_numbers = #tpu.dot_dimension_numbers<[1], [0], [0], [1], [0, 0, 1, 1], [], []>} : vector<1x128xf32>, vector<128x128xf32>, vector<1x128xf32> -> vector<1x128xf32>
    %15 = arith.negf %14 : vector<1x128xf32>
    %16 = math.exp %15 : vector<1x128xf32>
    %cst_15 = arith.constant 1.000000e+00 : f32
    %17 = vector.broadcast %cst_15 : f32 to vector<1x128xf32>
    %18 = arith.addf %17, %16 : vector<1x128xf32>
    %19 = arith.divf %17, %18 : vector<1x128xf32>
    %cst_16 = arith.constant 1.000000e+00 : f32
    %20 = vector.broadcast %cst_16 : f32 to vector<1x128xf32>
    %21 = arith.addf %20, %19 : vector<1x128xf32>
    %22 = vector.broadcast %21 : vector<1x128xf32> to vector<256x128xf32>
    %23 = arith.mulf %8, %22 : vector<256x128xf32>
    %24 = vector.shape_cast %23 : vector<256x128xf32> to vector<16x16x128xf32>
    %25 = arith.truncf %24 : vector<16x16x128xf32> to vector<16x16x128xbf16>
    %cst_17 = arith.constant 0.000000e+00 : bf16
    %26 = vector.broadcast %cst_17 : bf16 to vector<16x1x128xbf16>
    %27 = vector.extract_strided_slice %25 {offsets = [0, 0, 0], sizes = [16, 15, 128], strides = [1, 1, 1]} : vector<16x16x128xbf16> to vector<16x15x128xbf16>
    %28 = tpu.concatenate %26, %27 in 1 : vector<16x1x128xbf16>, vector<16x15x128xbf16> -> vector<16x16x128xbf16>
    %29 = vector.extract_strided_slice %25 {offsets = [0, 1, 0], sizes = [16, 15, 128], strides = [1, 1, 1]} : vector<16x16x128xbf16> to vector<16x15x128xbf16>
    %30 = tpu.concatenate %29, %26 in 1 : vector<16x15x128xbf16>, vector<16x1x128xbf16> -> vector<16x16x128xbf16>
    %31 = tpu.concatenate %28, %25, %30 in 2 : vector<16x16x128xbf16>, vector<16x16x128xbf16>, vector<16x16x128xbf16> -> vector<16x16x384xbf16>
    %32 = vector.shape_cast %31 : vector<16x16x384xbf16> to vector<256x384xbf16>
    %c16 = arith.constant 16 : index
    %c0_18 = arith.constant 0 : index
    %33 = vector.load %arg9[%c16, %c0_18] : memref<288x384xbf16, #tpu.memory_space<vmem>>, vector<256x384xbf16>
    tpu.vector_store %arg9[%c16, %c0_18], %32 {strides = array<i32>} : memref<288x384xbf16, #tpu.memory_space<vmem>>, vector<256x384xbf16>,
    %c0_19 = arith.constant 0 : index
    %c0_20 = arith.constant 0 : index
    %34 = vector.load %arg9[%c0_19, %c0_20] : memref<288x384xbf16, #tpu.memory_space<vmem>>, vector<256x384xbf16>
    %c0_21 = arith.constant 0 : index
    %c0_22 = arith.constant 0 : index
    %c0_23 = arith.constant 0 : index
    %35 = vector.load %arg4[%c0_21, %c0_22, %c0_23] : memref<3x384x128xbf16, #tpu.memory_space<vmem>>, vector<1x384x128xbf16>
    %36 = vector.shape_cast %35 : vector<1x384x128xbf16> to vector<384x128xbf16>
    %cst_24 = arith.constant dense<0.000000e+00> : vector<256x128xf32>
    %37 = tpu.matmul %34, %36, %cst_24 {dimension_numbers = #tpu.dot_dimension_numbers<[1], [0], [0], [1], [0, 0, 1, 1], [], []>} : vector<256x384xbf16>, vector<384x128xbf16>, vector<256x128xf32> -> vector<256x128xf32>
    %c16_25 = arith.constant 16 : index
    %c0_26 = arith.constant 0 : index
    %38 = vector.load %arg9[%c16_25, %c0_26] : memref<288x384xbf16, #tpu.memory_space<vmem>>, vector<256x384xbf16>
    %c1 = arith.constant 1 : index
    %c0_27 = arith.constant 0 : index
    %c0_28 = arith.constant 0 : index
    %39 = vector.load %arg4[%c1, %c0_27, %c0_28] : memref<3x384x128xbf16, #tpu.memory_space<vmem>>, vector<1x384x128xbf16>
    %40 = vector.shape_cast %39 : vector<1x384x128xbf16> to vector<384x128xbf16>
    %cst_29 = arith.constant dense<0.000000e+00> : vector<256x128xf32>
    %41 = tpu.matmul %38, %40, %cst_29 {dimension_numbers = #tpu.dot_dimension_numbers<[1], [0], [0], [1], [0, 0, 1, 1], [], []>} : vector<256x384xbf16>, vector<384x128xbf16>, vector<256x128xf32> -> vector<256x128xf32>
    %42 = arith.addf %37, %41 : vector<256x128xf32>
    %c32 = arith.constant 32 : index
    %c0_30 = arith.constant 0 : index
    %43 = vector.load %arg9[%c32, %c0_30] : memref<288x384xbf16, #tpu.memory_space<vmem>>, vector<256x384xbf16>
    %c2 = arith.constant 2 : index
    %c0_31 = arith.constant 0 : index
    %c0_32 = arith.constant 0 : index
    %44 = vector.load %arg4[%c2, %c0_31, %c0_32] : memref<3x384x128xbf16, #tpu.memory_space<vmem>>, vector<1x384x128xbf16>
    %45 = vector.shape_cast %44 : vector<1x384x128xbf16> to vector<384x128xbf16>
    %cst_33 = arith.constant dense<0.000000e+00> : vector<256x128xf32>
    %46 = tpu.matmul %43, %45, %cst_33 {dimension_numbers = #tpu.dot_dimension_numbers<[1], [0], [0], [1], [0, 0, 1, 1], [], []>} : vector<256x384xbf16>, vector<384x128xbf16>, vector<256x128xf32> -> vector<256x128xf32>
    %47 = arith.addf %42, %46 : vector<256x128xf32>
    %c0_34 = arith.constant 0 : index
    %c0_35 = arith.constant 0 : index
    %48 = vector.load %arg5[%c0_34, %c0_35] : memref<1x128xf32, #tpu.memory_space<vmem>>, vector<1x128xf32>
    %49 = vector.broadcast %48 : vector<1x128xf32> to vector<256x128xf32>
    %50 = arith.addf %47, %49 : vector<256x128xf32>
    %cst_36 = arith.constant 0.000000e+00 : f32
    %51 = vector.broadcast %cst_36 : f32 to vector<256x128xf32>
    %52 = arith.maximumf %50, %51 : vector<256x128xf32>
    %53 = vector.shape_cast %52 : vector<256x128xf32> to vector<16x16x128xf32>
    %54 = arith.truncf %53 : vector<16x16x128xf32> to vector<16x16x128xbf16>
    %cst_37 = arith.constant 0.000000e+00 : bf16
    %55 = vector.broadcast %cst_37 : bf16 to vector<16x1x128xbf16>
    %56 = vector.extract_strided_slice %54 {offsets = [0, 0, 0], sizes = [16, 15, 128], strides = [1, 1, 1]} : vector<16x16x128xbf16> to vector<16x15x128xbf16>
    %57 = tpu.concatenate %55, %56 in 1 : vector<16x1x128xbf16>, vector<16x15x128xbf16> -> vector<16x16x128xbf16>
    %58 = vector.extract_strided_slice %54 {offsets = [0, 1, 0], sizes = [16, 15, 128], strides = [1, 1, 1]} : vector<16x16x128xbf16> to vector<16x15x128xbf16>
    %59 = tpu.concatenate %58, %55 in 1 : vector<16x15x128xbf16>, vector<16x1x128xbf16> -> vector<16x16x128xbf16>
    %60 = tpu.concatenate %57, %54, %59 in 2 : vector<16x16x128xbf16>, vector<16x16x128xbf16>, vector<16x16x128xbf16> -> vector<16x16x384xbf16>
    %61 = vector.shape_cast %60 : vector<16x16x384xbf16> to vector<256x384xbf16>
    %c16_38 = arith.constant 16 : index
    %c0_39 = arith.constant 0 : index
    %62 = vector.load %arg9[%c16_38, %c0_39] : memref<288x384xbf16, #tpu.memory_space<vmem>>, vector<256x384xbf16>
    tpu.vector_store %arg9[%c16_38, %c0_39], %61 {strides = array<i32>} : memref<288x384xbf16, #tpu.memory_space<vmem>>, vector<256x384xbf16>,
    %c0_40 = arith.constant 0 : index
    %c0_41 = arith.constant 0 : index
    %63 = vector.load %arg9[%c0_40, %c0_41] : memref<288x384xbf16, #tpu.memory_space<vmem>>, vector<256x384xbf16>
    %c0_42 = arith.constant 0 : index
    %c0_43 = arith.constant 0 : index
    %c0_44 = arith.constant 0 : index
    %64 = vector.load %arg6[%c0_42, %c0_43, %c0_44] : memref<3x384x128xbf16, #tpu.memory_space<vmem>>, vector<1x384x128xbf16>
    %65 = vector.shape_cast %64 : vector<1x384x128xbf16> to vector<384x128xbf16>
    %cst_45 = arith.constant dense<0.000000e+00> : vector<256x128xf32>
    %66 = tpu.matmul %63, %65, %cst_45 {dimension_numbers = #tpu.dot_dimension_numbers<[1], [0], [0], [1], [0, 0, 1, 1], [], []>} : vector<256x384xbf16>, vector<384x128xbf16>, vector<256x128xf32> -> vector<256x128xf32>
    %c16_46 = arith.constant 16 : index
    %c0_47 = arith.constant 0 : index
    %67 = vector.load %arg9[%c16_46, %c0_47] : memref<288x384xbf16, #tpu.memory_space<vmem>>, vector<256x384xbf16>
    %c1_48 = arith.constant 1 : index
    %c0_49 = arith.constant 0 : index
    %c0_50 = arith.constant 0 : index
    %68 = vector.load %arg6[%c1_48, %c0_49, %c0_50] : memref<3x384x128xbf16, #tpu.memory_space<vmem>>, vector<1x384x128xbf16>
    %69 = vector.shape_cast %68 : vector<1x384x128xbf16> to vector<384x128xbf16>
    %cst_51 = arith.constant dense<0.000000e+00> : vector<256x128xf32>
    %70 = tpu.matmul %67, %69, %cst_51 {dimension_numbers = #tpu.dot_dimension_numbers<[1], [0], [0], [1], [0, 0, 1, 1], [], []>} : vector<256x384xbf16>, vector<384x128xbf16>, vector<256x128xf32> -> vector<256x128xf32>
    %71 = arith.addf %66, %70 : vector<256x128xf32>
    %c32_52 = arith.constant 32 : index
    %c0_53 = arith.constant 0 : index
    %72 = vector.load %arg9[%c32_52, %c0_53] : memref<288x384xbf16, #tpu.memory_space<vmem>>, vector<256x384xbf16>
    %c2_54 = arith.constant 2 : index
    %c0_55 = arith.constant 0 : index
    %c0_56 = arith.constant 0 : index
    %73 = vector.load %arg6[%c2_54, %c0_55, %c0_56] : memref<3x384x128xbf16, #tpu.memory_space<vmem>>, vector<1x384x128xbf16>
    %74 = vector.shape_cast %73 : vector<1x384x128xbf16> to vector<384x128xbf16>
    %cst_57 = arith.constant dense<0.000000e+00> : vector<256x128xf32>
    %75 = tpu.matmul %72, %74, %cst_57 {dimension_numbers = #tpu.dot_dimension_numbers<[1], [0], [0], [1], [0, 0, 1, 1], [], []>} : vector<256x384xbf16>, vector<384x128xbf16>, vector<256x128xf32> -> vector<256x128xf32>
    %76 = arith.addf %71, %75 : vector<256x128xf32>
    %c0_58 = arith.constant 0 : index
    %c0_59 = arith.constant 0 : index
    %77 = vector.load %arg7[%c0_58, %c0_59] : memref<1x128xf32, #tpu.memory_space<vmem>>, vector<1x128xf32>
    %78 = vector.broadcast %77 : vector<1x128xf32> to vector<256x128xf32>
    %79 = arith.addf %76, %78 : vector<256x128xf32>
    %cst_60 = arith.constant 0.000000e+00 : f32
    %80 = vector.broadcast %cst_60 : f32 to vector<256x128xf32>
    %81 = arith.maximumf %79, %80 : vector<256x128xf32>
    %82 = vector.shape_cast %81 : vector<256x128xf32> to vector<16x16x128xf32>
    %c0_61 = arith.constant 0 : index
    %c0_62 = arith.constant 0 : index
    %c0_63 = arith.constant 0 : index
    %c0_64 = arith.constant 0 : index
    %83 = vector.load %arg8[%c0_61, %c0_62, %c0_63, %c0_64] : memref<1x16x16x128xf32, #tpu.memory_space<vmem>>, vector<1x16x16x128xf32>
    %84 = vector.shape_cast %83 : vector<1x16x16x128xf32> to vector<16x16x128xf32>
    %85 = vector.shape_cast %82 : vector<16x16x128xf32> to vector<1x16x16x128xf32>
    tpu.vector_store %arg8[%c0_61, %c0_62, %c0_63, %c0_64], %85 {strides = array<i32>} : memref<1x16x16x128xf32, #tpu.memory_space<vmem>>, vector<1x16x16x128xf32>,
    return
  }
  func.func @transform_0(%arg0: i32) -> (i32, i32, i32, i32) {
    %c0_i32 = arith.constant 0 : i32
    %c0_i32_0 = arith.constant 0 : i32
    %c0_i32_1 = arith.constant 0 : i32
    %c0_i32_2 = arith.constant 0 : i32
    return %arg0, %c0_i32, %c0_i32_0, %c0_i32_1 : i32, i32, i32, i32
  }
  func.func @transform_1(%arg0: i32) -> (i32, i32, i32, i32) {
    %c0_i32 = arith.constant 0 : i32
    %c0_i32_0 = arith.constant 0 : i32
    %c0_i32_1 = arith.constant 0 : i32
    %c0_i32_2 = arith.constant 0 : i32
    return %arg0, %c0_i32, %c0_i32_0, %c0_i32_1 : i32, i32, i32, i32
  }
  func.func @transform_2(%arg0: i32) -> (i32, i32) {
    %c0_i32 = arith.constant 0 : i32
    %c0_i32_0 = arith.constant 0 : i32
    %c0_i32_1 = arith.constant 0 : i32
    return %c0_i32, %c0_i32_0 : i32, i32
  }
  func.func @transform_3(%arg0: i32) -> (i32, i32, i32) {
    %c0_i32 = arith.constant 0 : i32
    %c0_i32_0 = arith.constant 0 : i32
    %c0_i32_1 = arith.constant 0 : i32
    %c0_i32_2 = arith.constant 0 : i32
    return %c0_i32, %c0_i32_0, %c0_i32_1 : i32, i32, i32
  }
  func.func @transform_4(%arg0: i32) -> (i32, i32) {
    %c0_i32 = arith.constant 0 : i32
    %c0_i32_0 = arith.constant 0 : i32
    %c0_i32_1 = arith.constant 0 : i32
    return %c0_i32, %c0_i32_0 : i32, i32
  }
  func.func @transform_5(%arg0: i32) -> (i32, i32, i32) {
    %c0_i32 = arith.constant 0 : i32
    %c0_i32_0 = arith.constant 0 : i32
    %c0_i32_1 = arith.constant 0 : i32
    %c0_i32_2 = arith.constant 0 : i32
    return %c0_i32, %c0_i32_0, %c0_i32_1 : i32, i32, i32
  }
  func.func @transform_6(%arg0: i32) -> (i32, i32) {
    %c0_i32 = arith.constant 0 : i32
    %c0_i32_0 = arith.constant 0 : i32
    %c0_i32_1 = arith.constant 0 : i32
    return %c0_i32, %c0_i32_0 : i32, i32
  }
  func.func @transform_7(%arg0: i32) -> (i32, i32, i32, i32) {
    %c0_i32 = arith.constant 0 : i32
    %c0_i32_0 = arith.constant 0 : i32
    %c0_i32_1 = arith.constant 0 : i32
    %c0_i32_2 = arith.constant 0 : i32
    return %arg0, %c0_i32, %c0_i32_0, %c0_i32_1 : i32, i32, i32, i32
  }
}

</mosaic_0001>

<bundles_post_ra>
// kernel: tpu_custom_call.1
= control target key start
LH: loop header
LB: loop body
LE: loop exit
PB: predicated region body
PF: predicated region fallthrough
CT: control target
= control target key end

     0   :  { %s10981_s0 = inlined_call_operand.hbm [shape: f32[2,16,16,128], index: 0, kind: input, shape index: {}]   ;;  %s10982_s1 = inlined_call_operand.hbm [shape: f32[2,16,16,128], index: 1, kind: input, shape index: {}]   ;;  %s10983_s2 = inlined_call_operand.hbm [shape: f32[128,128], index: 2, kind: input, shape index: {}]   ;;  %s10984_s3 = inlined_call_operand.hbm [shape: bf16[3,384,128], index: 3, kind: input, shape index: {}]   ;;  %s10985_s4 = inlined_call_operand.vmem [shape: f32[1,128], index: 4, kind: input, shape index: {}]   ;;  %s10986_s5 = inlined_call_operand.hbm [shape: bf16[3,384,128], index: 5, kind: input, shape index: {}]   ;;  %s10987_s6 = inlined_call_operand.vmem [shape: f32[1,128], index: 6, kind: input, shape index: {}]   ;;  %s10988_s7 = inlined_call_operand.hbm [shape: f32[2,16,16,128], index: 7, kind: output, shape index: {}]  }
   0x1   :  { %10997 = sst [smem:[#allocation35_spill]] %s10981_s0 }
   0x2   :  { %10998 = sst [smem:[#allocation36_spill]] %s10983_s2 }
   0x3   :  { %10999 = sst [smem:[#allocation37_spill]] %s10984_s3 }
   0x4   :  { %11000 = sst [smem:[#allocation38_spill]] %s10986_s5 }
   0x5   :  { %12 = vsyncpa [#allocation4], 0 }
   0x6   :  { %14 = vsyncpa [#allocation4 + $0x1], 0 }
   0x7   :  { %15 = vsyncpa [#allocation7], 0 }
   0x8   :  { %17 = vsyncpa [#allocation7 + $0x1], 0 }
   0x9   :  { %18 = vsyncpa [#allocation10], 0 }
   0xa   :  { %19 = vsyncpa [#allocation5], 0 }
   0xb   :  { %21 = vsyncpa [#allocation5 + $0x1], 0  ;;  %s8864_s24 = smov 0   ;;  %s8866_s25 = smov 0  }
   0xc   :  { %s8868_s26 = smov 0   ;;  %s8870_s27 = smov 0  }
   0xd LB: > { %11001 = sst [smem:[#allocation18_spill]] %s8803_s26  ;;  %s8885_s28 = sadd.s32 4294967295, %s8807_s27   ;;  %s8807_s27 = sphi %s8870_s27, %s11069_s27   ;;  %s8803_s26 = sphi %s8868_s26, %s11066_s26   ;;  %s8799_s25 = sphi %s8866_s25, %s11068_s25   ;;  %s8795_s24 = sphi %s8864_s24, %s11067_s24  }
   0xe   : > { %s6563_s29 = sadd.s32 4294967294, %s8807_s27   ;;  %p47_p0 = scmp.ne.s32.totalorder %s8799_s25, %s8795_s24 }
   0xf   : > { %p10993_p1 = scmp.eq.s32.totalorder %s8885_s28, 0  ;;  %p202_p2 = scmp.eq.s32.totalorder %s8885_s28, 1 }
  0x10   : > { %p208_p3 = scmp.eq.s32.totalorder %s6563_s29, 1  ;;  %p6564_p5 = scmp.ge.s32.totalorder %s8807_s27, 1 }
  0x11   : > { %p8894_p4 = por %p10993_p1, %p47_p0  ;;  %p215_p7 = scmp.lt.s32.totalorder %s8807_s27, 3 }
  0x12   : > { %p8899_p6 = por %p208_p3, %p47_p0  ;;  %s8809_s10 = smov [#allocation8]  }
  0x13   : > { %s11002_s30 = scalar_select %p8894_p4, 1, 0 }
  0x14   : > { %s11003_s8 = scalar_select %p8899_p6, 1, 0 }
  0x15   : > { %p8904_p8 = pnand %p6564_p5, %p215_p7  ;;  %s227_s11 = sshll.u32 %s8809_s10, 4  ;;  %s228_s11 = int_to_ptr.vmem [resolvable:$true] %s227_s11 }
  0x16   : > { %s8810_s13 = smov [#allocation9]   ;;  %s8608_s15 = scalar_lea.vmem %s228_s11, 2048 }
  0x17   : > { %p8237_p9 = pneg %p8904_p8  ;;  %s240_s14 = sshll.u32 %s8810_s13, 4  ;;  %s241_s14 = int_to_ptr.vmem [resolvable:$true] %s240_s14 }
  0x18   : > { %p8609_p13 = scmp.ne.s32.totalorder %s228_s11, %s8608_s15  ;;  %p8616_p5 = scmp.lt.s32.totalorder %s228_s11, %s228_s11 }
  0x19   : > { %p8913_p11 = pnand %p8237_p9, %p10993_p1  ;;  %p8617_p7 = scmp.lt.s32.totalorder %s8608_s15, %s8608_s15 }
  0x1b   : > { %p8599_p12 = pneg %p8913_p11  ;;  %p8618_p10 = por %p8617_p7, %p8616_p5 }
  0x1d   : > { %p8611_p0 = pnand %p8609_p13, %p8599_p12 }
  0x1f   : > { %p8612_p3 = pneg %p8611_p0 }
  0x21   : > { %p8619_p9 = pnand %p8618_p10, %p8612_p3 }
  0x23   : > { %8622 = shalt.err (!%p8619_p9)
}
  0x24   : > { %s10989_s16 = smov 128   ;;  %s10991_s17 = smov 8  }
  0x25   : > { %s11006_s2 = sld [smem:[#allocation36_spill]]  ;;  %s8634_s20 = scalar_lea.vmem %s241_s14, 9216 }
  0x26   : > { %p8635_p13 = scmp.ne.s32.totalorder %s241_s14, %s8634_s20  ;;  %p8642_p10 = scmp.lt.s32.totalorder %s241_s14, %s241_s14 }
  0x27   : > { %p8643_p3 = scmp.lt.s32.totalorder %s8634_s20, %s8634_s20 }
  0x28   : > { %p8637_p0 = pnand %p8635_p13, %p8599_p12 }
  0x29   : > { %p8644_p7 = por %p8643_p3, %p8642_p10 }
  0x2a   : > { %p8638_p5 = pneg %p8637_p0 }
  0x2b   : > { %8240 = dma.hbm_to_vmem [thread:$0]  (!%p8913_p11), %s11006_s2, 2048, %s228_s11, [#allocation7], %s10989_s16, %s10989_s16, %s10991_s17  }
  0x2c   : > { %p8645_p9 = pnand %p8644_p7, %p8638_p5 }
  0x2e   : > { %8648 = shalt.err (!%p8645_p9)
}
  0x2f   : > { %s8813_s21 = smov 64   ;;  %s8814_s22 = smov 4  }
  0x30   : > { %s11007_s3 = sld [smem:[#allocation37_spill]]  ;;  %s8815_s10 = smov [#allocation11]  }
  0x31   : > { %s256_s11 = sshll.u32 %s8815_s10, 4  ;;  %s8939_s13 = sadd.s32 1, %s8807_s27   ;;  %s257_s11 = int_to_ptr.vmem [resolvable:$true] %s256_s11 }
  0x32   : > { %s8660_s15 = scalar_lea.vmem %s257_s11, 9216  ;;  %p8668_p10 = scmp.lt.s32.totalorder %s257_s11, %s257_s11 }
  0x33   : > { %p8661_p13 = scmp.ne.s32.totalorder %s257_s11, %s8660_s15  ;;  %p8669_p3 = scmp.lt.s32.totalorder %s8660_s15, %s8660_s15 }
  0x35   : > { %p8663_p0 = pnand %p8661_p13, %p8599_p12  ;;  %p8670_p7 = por %p8669_p3, %p8668_p10 }
  0x36   : > { %8243 = dma.hbm_to_vmem [thread:$0]  (!%p8913_p11), %s11007_s3, 9216, %s241_s14, [#allocation10], %s8813_s21, %s8813_s21, %s8814_s22  }
  0x37   : > { %p8664_p5 = pneg %p8663_p0 }
  0x39   : > { %p8671_p9 = pnand %p8670_p7, %p8664_p5 }
  0x3b   : > { %8674 = shalt.err (!%p8671_p9)
}
  0x3c   : > { %s11008_s5 = sld [smem:[#allocation38_spill]]  ;;  %s31_s19 = ssub.s32 %s8807_s27, %s8939_s13 }
  0x3d   : > { %s34_s20 = sadd.s32 1, %s8803_s26  ;;  %p32_p12 = scmp.eq.s32.totalorder %s31_s19, 0 }
  0x3e   : > { %p41_p13 = scmp.ne.s32.totalorder %s8803_s26, %s8799_s25  ;;  %p42_p0 = scmp.eq.s32.totalorder %s8807_s27, 0 }
  0x3f   : > { %p8261_p5 = scmp.lt.s32.totalorder %s8807_s27, 2  ;;  %s273_s29 = sand.u32 1, %s8803_s26  }
  0x40   : > { %s8957_s12 = scalar_select %p32_p12, %s8803_s26, %s34_s20  }
  0x41   : > { %p43_p10 = por %p42_p0, %p41_p13  ;;  %p8961_p3 = por %p202_p2, %p41_p13 }
  0x42   : > { %8246 = dma.hbm_to_vmem [thread:$0]  (!%p8913_p11), %s11008_s5, 9216, %s257_s11, [#allocation10], %s8813_s21, %s8813_s21, %s8814_s22  }
  0x43   : > { %11009 = sst [smem:[#allocation19_spill]] %s8957_s12  ;;  %s7060_s10 = sshll.u32 %s8807_s27, 12 }
  0x44   : > { %s11010_s23 = scalar_select %p8961_p3, 1, 0 }
  0x45   : > { %s8967_s15 = sshll.u32 %s273_s29, 8  ;;  %s11011_s0 = sld [smem:[#allocation35_spill]] }
  0x46   : > { %s277_s11 = scalar_lea.vmem [#allocation3], %s8967_s15  ;;  %p8975_p11 = pnand %p8261_p5, %p43_p10 }
  0x47   : > { %s284_s14 = sshll.u32 %s277_s11, 4  ;;  %s8984_s18 = scalar_lea.hbm %s10982_s1, %s7060_s10  ;;  %s8979_s14 = int_to_ptr.vmem [resolvable:$true] %s284_s14 }
  0x48   : > { %s8986_s21 = scalar_lea.sflag [#allocation4], %s273_s29  ;;  %p8677_p7 = pneg %p8975_p11 }
  0x4b   : > { %s8972_s22 = scalar_lea.hbm %s11011_s0, %s7060_s10  ;;  %s8680_s3 = scalar_lea.hbm %s11011_s0, 8192 }
  0x4c   : > { %s8675_s17 = scalar_lea.hbm %s8972_s22, 4096  ;;  %p8681_p13 = scmp.lt.s32.totalorder %s8972_s22, %s11011_s0 }
  0x4d   : > { %p8676_p2 = scmp.ne.s32.totalorder %s8972_s22, %s8675_s17  ;;  %p8682_p0 = scmp.lt.s32.totalorder %s8680_s3, %s8675_s17 }
  0x4f   : > { %p8678_p9 = pnand %p8677_p7, %p8676_p2  ;;  %p8683_p5 = por %p8682_p0, %p8681_p13 }
  0x51   : > { %p8679_p12 = pneg %p8678_p9 }
  0x53   : > { %p8684_p10 = pnand %p8683_p5, %p8679_p12 }
  0x55   : > { %8687 = shalt.err (!%p8684_p10)
}
  0x56   : > { %s8688_s16 = scalar_lea.vmem %s8979_s14, 4096  ;;  %s8816_s2 = smov [#allocation3]  }
  0x57   : > { %p8689_p1 = scmp.ne.s32.totalorder %s8979_s14, %s8688_s16  ;;  %s8693_s29 = sshll.u32 %s8816_s2, 4  ;;  %s8694_s29 = int_to_ptr.vmem [resolvable:$false] %s8693_s29 }
  0x58   : > { %s8695_s10 = scalar_lea.vmem %s8694_s29, 8192  ;;  %p8696_p6 = scmp.lt.s32.totalorder %s8979_s14, %s8694_s29 }
  0x59   : > { %p8691_p2 = pnand %p8689_p1, %p8677_p7  ;;  %p8697_p3 = scmp.lt.s32.totalorder %s8695_s10, %s8688_s16 }
  0x5b   : > { %p8692_p9 = pneg %p8691_p2  ;;  %p8698_p4 = por %p8697_p3, %p8696_p6 }
  0x5d   : > { %p8699_p13 = pnand %p8698_p4, %p8692_p9 }
  0x5f   : > { %8702 = shalt.err (!%p8699_p13)
}
  0x60   : > { %s11013_s3 = smov 8   ;;  %s11014_s5 = smov 128  }
  0x61   : > { %8250 = dma.hbm_to_vmem [thread:$0]  (!%p8975_p11), %s8972_s22, 4096, %s8979_s14, %s8986_s21, %s11014_s5, %s11014_s5, %s11013_s3  }
  0x62   : > { %s298_s17 = scalar_lea.vmem [#allocation6], %s8967_s15  ;;  %s294_s20 = sand.u32 1, %s8807_s27  }
  0x63   : > { %s305_s12 = sshll.u32 %s298_s17, 4  ;;  %s295_s11 = scalar_lea.sflag [#allocation7], %s294_s20  ;;  %s9018_s12 = int_to_ptr.vmem [resolvable:$true] %s305_s12 }
  0x64   : > { %s8703_s16 = scalar_lea.hbm %s8984_s18, 4096  ;;  %s8708_s10 = scalar_lea.hbm %s10982_s1, 8192 }
  0x65   : > { %p8704_p1 = scmp.ne.s32.totalorder %s8984_s18, %s8703_s16  ;;  %p8709_p3 = scmp.lt.s32.totalorder %s8984_s18, %s10982_s1 }
  0x66   : > { %p8710_p12 = scmp.lt.s32.totalorder %s8708_s10, %s8703_s16 }
  0x67   : > { %p8706_p4 = pnand %p8704_p1, %p8677_p7 }
  0x68   : > { %p8711_p0 = por %p8710_p12, %p8709_p3 }
  0x69   : > { %p8707_p6 = pneg %p8706_p4 }
  0x6b   : > { %p8712_p5 = pnand %p8711_p0, %p8707_p6 }
  0x6d   : > { %8715 = shalt.err (!%p8712_p5)
}
  0x6e   : > { %s8716_s15 = scalar_lea.vmem %s9018_s12, 4096  ;;  %s8817_s22 = smov [#allocation6]  }
  0x6f   : > { %p8717_p10 = scmp.ne.s32.totalorder %s9018_s12, %s8716_s15  ;;  %s8721_s14 = sshll.u32 %s8817_s22, 4  ;;  %s8722_s14 = int_to_ptr.vmem [resolvable:$false] %s8721_s14 }
  0x70   : > { %s8723_s21 = scalar_lea.vmem %s8722_s14, 8192  ;;  %p8724_p13 = scmp.lt.s32.totalorder %s9018_s12, %s8722_s14 }
  0x71   : > { %p8719_p2 = pnand %p8717_p10, %p8677_p7  ;;  %p8725_p1 = scmp.lt.s32.totalorder %s8723_s21, %s8716_s15 }
  0x73   : > { %p8720_p9 = pneg %p8719_p2  ;;  %p8726_p4 = por %p8725_p1, %p8724_p13 }
  0x75   : > { %p8727_p3 = pnand %p8726_p4, %p8720_p9 }
  0x77   : > { %8730 = shalt.err (!%p8727_p3)
}
  0x78   : > { %8253 = dma.hbm_to_vmem [thread:$0]  (!%p8975_p11), %s8984_s18, 4096, %s9018_s12, %s295_s11, %s11014_s5, %s11014_s5, %s11013_s3  }
  0x79   : > { %317 = sbr.rel (%p8904_p8) target bundleno = 1442 (0x5a2), region = 48 }
  0x7e   : > { %s9048_s0 = sand.u32 1, %s8799_s25   ;;  %p11015_p7 = scmp.ne.s32.totalorder %s11002_s30, 0 }
  0x7f   : > { %s9051_s26 = sshll.u32 %s9048_s0, 8  ;;  %s320_s17 = scalar_lea.sflag [#allocation4], %s9048_s0 }
  0x80   : > { %s9055_s19 = scalar_lea.vmem [#allocation3], %s9051_s26 }
  0x81   : > { %8774 = dma.done.wait (%p11015_p7), %s320_s17, 4096  }
  0x82   : > { %8776 = vsyncadd (%p11015_p7), %s320_s17, 4294963200  ;;  %s328_s9 = sand.u32 1, %s8885_s28   ;;  %s9063_s3 = scalar_lea.vmem [#allocation6], %s9051_s26 }
  0x83   : > { %s329_s18 = scalar_lea.sflag [#allocation7], %s328_s9 }
  0x84   : > { %8778 = dma.done.wait (%p11015_p7), %s329_s18, 4096  }
  0x85   : > { %8780 = vsyncadd (%p11015_p7), %s329_s18, 4294963200  ;;  %p11016_p8 = scmp.eq.s32.totalorder %s8885_s28, 0 }
  0x87   : > { %8782 = dma.done.wait (%p11016_p8), [#allocation7], 2048   ;;  %p11017_p11 = pmov %p11016_p8 }
  0x88   : > { %p11018_p6 = pmov %p11016_p8 }
  0x89   : > { %8784 = vsyncadd (%p11017_p11), [#allocation7], 4294965248 }
  0x8a   : > { %8786 = dma.done.wait (%p11018_p6), [#allocation10], 18432   ;;  %p11019_p12 = pmov %p11018_p6 }
  0x8b   : > { %v8818_v0 = vmov 0.0   ;;  %vm8819_vm0 = vmmov 0   ;;  %v539_v1 = vld [vmem:[#allocation8 + $0x78] sm:$0xff]  ;;  %v538_v2 = vld [vmem:[#allocation8 + $0x70] sm:$0xff]  ;;  %v537_v3 = vld [vmem:[#allocation8 + $0x68] sm:$0xff]  ;;  %vm797_vm1 = vcmask 1040384  }
  0x8c   : > { %8788 = vsyncadd (%p11019_p12), [#allocation10], 4294948864  ;;  %7896 = vmatprep.subr.mxu0 %v8818_v0  ;;  %7928 = vmatprep.mubr.msk.f32.mxu0 %vm8819_vm0, %v8818_v0  ;;  %v536_v4 = vld [vmem:[#allocation8 + $0x60] sm:$0xff]  ;;  %v535_v5 = vld [vmem:[#allocation8 + $0x58] sm:$0xff]  ;;  %vm798_vm2 = vsmask.f32 256 }
  0x8d   : > { %7897 = vmatpush3.msra.mxu0 %v539_v1  ;;  %v534_v6 = vld [vmem:[#allocation8 + $0x50] sm:$0xff]  ;;  %v533_v7 = vld [vmem:[#allocation8 + $0x48] sm:$0xff]  ;;  %v532_v8 = vld [vmem:[#allocation8 + $0x40] sm:$0xff]  ;;  %vm864_vm3 = vcmask 1047552   ;;  %vm865_vm4 = vsmask.f32 7424 }
  0x8e   : > { %7898 = vmatprep.subr.mxu0 %v8818_v0  ;;  %v531_v9 = vld [vmem:[#allocation8 + $0x38] sm:$0xff]  ;;  %v389_v10 = vld [vmem:[%s9055_s19] sm:$0xff]  ;;  %v390_v11 = vld [vmem:[%s9055_s19 + $0x8] sm:$0xff]  ;;  %s10788_s2 = scalar_lea.vmem [#allocation12], %s9051_s26  ;;  %s7062_s29 = sshll.u32 %s8885_s28, 12 }
  0x8f   : > { %7899 = vmatpush3.msra.mxu0 %v538_v2  ;;  %v391_v12 = vld [vmem:[%s9055_s19 + $0x10] sm:$0xff]  ;;  %v392_v14 = vld [vmem:[%s9055_s19 + $0x18] sm:$0xff]  ;;  %v421_v15 = vld [vmem:[%s9063_s3] sm:$0xff]  ;;  %s6439_s10 = sshll.u32 %s10788_s2, 4  ;;  %s10935_s14 = scalar_lea.hbm %s10988_s7, %s7062_s29  ;;  %s10937_s10 = int_to_ptr.vmem [resolvable:$true] %s6439_s10 }
  0x90   : > { %7900 = vmatprep.subr.mxu0 %v8818_v0  ;;  %v530_v13 = vld [vmem:[#allocation8 + $0x30] sm:$0xff]  ;;  %v422_v16 = vld [vmem:[%s9063_s3 + $0x8] sm:$0xff]  ;;  %v424_v18 = vld [vmem:[%s9063_s3 + $0x18] sm:$0xff]  ;;  %v9095_v19 = vadd.f32 %v421_v15, %v389_v10  ;;  %s6426_s21 = scalar_lea.sflag [#allocation5], %s9048_s0  ;;  %s8731_s26 = scalar_lea.vmem %s10937_s10, 4096 }
  0x91   : > { %7901 = vmatpush3.msra.mxu0 %v537_v3  ;;  %v423_v17 = vld [vmem:[%s9063_s3 + $0x10] sm:$0xff]  ;;  %v9097_v20 = vadd.f32 %v422_v16, %v390_v11  ;;  %v529_v22 = vld [vmem:[#allocation8 + $0x28] sm:$0xff]  ;;  %v393_v23 = vld [vmem:[%s9055_s19 + $0x20] sm:$0xff]  ;;  %v9104_v25 = vadd.f32 %v424_v18, %v392_v14  ;;  %p8732_p0 = scmp.ne.s32.totalorder %s10937_s10, %s8731_s26  ;;  %p11062_p5 = scmp.ne.s32.totalorder %s11010_s23, 0 }
  0x92   : > { %7902 = vmatprep.subr.mxu0 %v8818_v0  ;;  %v9099_v21 = vadd.f32 %v423_v17, %v391_v12  ;;  %v425_v24 = vld [vmem:[%s9063_s3 + $0x20] sm:$0xff]  ;;  %v394_v28 = vld [vmem:[%s9055_s19 + $0x28] sm:$0xff]  ;;  %v527_v32 = vld [vmem:[#allocation8 + $0x18] sm:$0xff]  ;;  %s8821_s28 = smov [#allocation12]  }
  0x93   : > { %7903 = vmatpush3.msra.mxu0 %v536_v4  ;;  %v485_v26 = vadd.f32 %v9097_v20, %v9095_v19  ;;  %v528_v27 = vld [vmem:[#allocation8 + $0x20] sm:$0xff]  ;;  %v426_v29 = vld [vmem:[%s9063_s3 + $0x28] sm:$0xff]  ;;  %v9111_v30 = vadd.f32 %v425_v24, %v393_v23  ;;  %v395_v33 = vld [vmem:[%s9055_s19 + $0x30] sm:$0xff]  ;;  %p8733_p10 = pnand %p8732_p0, %p11062_p5  ;;  %s8735_s17 = sshll.u32 %s8821_s28, 4  ;;  %s8736_s17 = int_to_ptr.vmem [resolvable:$false] %s8735_s17 }
  0x94   : > { %7904 = vmatprep.subr.mxu0 %v8818_v0  ;;  %v427_v34 = vld [vmem:[%s9063_s3 + $0x30] sm:$0xff]  ;;  %v9117_v35 = vadd.f32 %v426_v29, %v394_v28  ;;  %v396_v38 = vld [vmem:[%s9055_s19 + $0x38] sm:$0xff]  ;;  %v525_v40 = vld [vmem:[#allocation8 + $0x8] sm:$0xff]  ;;  %p8738_p9 = scmp.lt.s32.totalorder %s10937_s10, %s8736_s17 }
  0x95   : > { %7905 = vmatpush3.msra.mxu0 %v535_v5  ;;  %v486_v31 = vadd.f32 %v485_v26, %v9099_v21  ;;  %v526_v37 = vld [vmem:[#allocation8 + $0x10] sm:$0xff]  ;;  %v428_v39 = vld [vmem:[%s9063_s3 + $0x38] sm:$0xff]  ;;  %v397_v41 = vld [vmem:[%s9055_s19 + $0x40] sm:$0xff]  ;;  %v9124_v42 = vadd.f32 %v427_v34, %v395_v33  ;;  %p8734_p2 = pneg %p8733_p10 }
  0x96   : > { %7906 = vmatprep.subr.mxu0 %v8818_v0  ;;  %v524_v44 = vld [vmem:[#allocation8] sm:$0xff]  ;;  %v398_v45 = vld [vmem:[%s9055_s19 + $0x48] sm:$0xff]  ;;  %v9131_v48 = vadd.f32 %v428_v39, %v396_v38  ;;  %v399_v50 = vld [vmem:[%s9055_s19 + $0x50] sm:$0xff] }
  0x97   : > { %7907 = vmatpush3.msra.mxu0 %v534_v6  ;;  %v487_v36 = vadd.f32 %v486_v31, %v9104_v25  ;;  %v429_v46 = vld [vmem:[%s9063_s3 + $0x40] sm:$0xff]  ;;  %v430_v47 = vld [vmem:[%s9063_s3 + $0x48] sm:$0xff]  ;;  %v431_v51 = vld [vmem:[%s9063_s3 + $0x50] sm:$0xff] }
  0x98   : > { %7908 = vmatprep.subr.mxu0 %v8818_v0  ;;  %v9137_v52 = vadd.f32 %v429_v46, %v397_v41  ;;  %v400_v54 = vld [vmem:[%s9055_s19 + $0x58] sm:$0xff]  ;;  %v9143_v56 = vadd.f32 %v430_v47, %v398_v45  ;;  %v401_v58 = vld [vmem:[%s9055_s19 + $0x60] sm:$0xff]  ;;  %v9148_v60 = vadd.f32 %v431_v51, %v399_v50  ;;  %v402_v62 = vld [vmem:[%s9055_s19 + $0x68] sm:$0xff] }
  0x99   : > { %7909 = vmatpush3.msra.mxu0 %v533_v7  ;;  %v488_v43 = vadd.f32 %v487_v36, %v9111_v30  ;;  %v432_v55 = vld [vmem:[%s9063_s3 + $0x58] sm:$0xff]  ;;  %v433_v59 = vld [vmem:[%s9063_s3 + $0x60] sm:$0xff]  ;;  %v434_v63 = vld [vmem:[%s9063_s3 + $0x68] sm:$0xff] }
  0x9a   : > { %7910 = vmatprep.subr.mxu0 %v8818_v0  ;;  %v403_v2 = vld [vmem:[%s9055_s19 + $0x70] sm:$0xff]  ;;  %v9158_v4 = vadd.f32 %v433_v59, %v401_v58  ;;  %v404_v6 = vld [vmem:[%s9055_s19 + $0x78] sm:$0xff]  ;;  %v405_v10 = vld [vmem:[%s9055_s19 + $0x80] sm:$0xff] }
  0x9b   : > { %7911 = vmatpush3.msra.mxu0 %v532_v8  ;;  %v489_v49 = vadd.f32 %v488_v43, %v9117_v35  ;;  %v435_v3 = vld [vmem:[%s9063_s3 + $0x70] sm:$0xff]  ;;  %v436_v7 = vld [vmem:[%s9063_s3 + $0x78] sm:$0xff]  ;;  %v9163_v8 = vadd.f32 %v434_v63, %v402_v62  ;;  %v437_v11 = vld [vmem:[%s9063_s3 + $0x80] sm:$0xff] }
  0x9c   : > { %7912 = vmatprep.subr.mxu0 %v8818_v0  ;;  %v9168_v12 = vadd.f32 %v435_v3, %v403_v2  ;;  %v406_v14 = vld [vmem:[%s9055_s19 + $0x88] sm:$0xff]  ;;  %v9173_v16 = vadd.f32 %v436_v7, %v404_v6  ;;  %v407_v18 = vld [vmem:[%s9055_s19 + $0x90] sm:$0xff]  ;;  %v9178_v23 = vadd.f32 %v437_v11, %v405_v10  ;;  %v408_v26 = vld [vmem:[%s9055_s19 + $0x98] sm:$0xff] }
  0x9d   : > { %7913 = vmatpush3.msra.mxu0 %v531_v9  ;;  %v490_v53 = vadd.f32 %v489_v49, %v9124_v42  ;;  %v438_v15 = vld [vmem:[%s9063_s3 + $0x88] sm:$0xff]  ;;  %v409_v31 = vld [vmem:[%s9055_s19 + $0xa0] sm:$0xff]  ;;  %v443_v41 = vld [vmem:[%s9063_s3 + $0xb0] sm:$0xff] }
  0x9e   : > { %7914 = vmatprep.subr.mxu0 %v8818_v0  ;;  %v9183_v28 = vadd.f32 %v438_v15, %v406_v14  ;;  %v410_v36 = vld [vmem:[%s9055_s19 + $0xa8] sm:$0xff]  ;;  %v412_v45 = vld [vmem:[%s9055_s19 + $0xb8] sm:$0xff]  ;;  %v413_v50 = vld [vmem:[%s9055_s19 + $0xc0] sm:$0xff] }
  0x9f   : > { %7915 = vmatpush3.msra.mxu0 %v530_v13  ;;  %v491_v57 = vadd.f32 %v490_v53, %v9131_v48  ;;  %v444_v46 = vld [vmem:[%s9063_s3 + $0xb8] sm:$0xff]  ;;  %v445_v51 = vld [vmem:[%s9063_s3 + $0xc0] sm:$0xff]  ;;  %v447_v62 = vld [vmem:[%s9063_s3 + $0xd0] sm:$0xff] }
  0xa0   : > { %7916 = vmatprep.subr.mxu0 %v8818_v0  ;;  %v9213_v58 = vadd.f32 %v444_v46, %v412_v45  ;;  %v9218_v63 = vadd.f32 %v445_v51, %v413_v50  ;;  %v416_v2 = vld [vmem:[%s9055_s19 + $0xd8] sm:$0xff]  ;;  %v417_v7 = vld [vmem:[%s9055_s19 + $0xe0] sm:$0xff]  ;;  %v450_v14 = vld [vmem:[%s9063_s3 + $0xe8] sm:$0xff] }
  0xa1   : > { %7917 = vmatpush3.msra.mxu0 %v529_v22  ;;  %v492_v61 = vadd.f32 %v491_v57, %v9137_v52  ;;  %v439_v22 = vld [vmem:[%s9063_s3 + $0x90] sm:$0xff]  ;;  %v446_v57 = vld [vmem:[%s9063_s3 + $0xc8] sm:$0xff]  ;;  %v448_v3 = vld [vmem:[%s9063_s3 + $0xd8] sm:$0xff] }
  0xa2   : > { %7918 = vmatprep.subr.mxu0 %v8818_v0  ;;  %v9188_v33 = vadd.f32 %v439_v22, %v407_v18  ;;  %v9233_v15 = vadd.f32 %v448_v3, %v416_v2  ;;  %v419_v18 = vld [vmem:[%s9055_s19 + $0xf0] sm:$0xff]  ;;  %v8317_v2 = vld [vmem:[#allocation9 + $0xe8] sm:$0xff]   ;;  %vm9334_vm5 = vmand %vm797_vm1, %vm798_vm2 }
  0xa3   : > { %7919 = vmatpush3.msra.mxu0 %v528_v27  ;;  %v493_v1 = vadd.f32 %v492_v61, %v9143_v56  ;;  %v440_v27 = vld [vmem:[%s9063_s3 + $0x98] sm:$0xff]  ;;  %v415_v61 = vld [vmem:[%s9055_s19 + $0xd0] sm:$0xff]  ;;  %vm9348_vm6 = vmand %vm864_vm3, %vm865_vm4 }
  0xa4   : > { %7920 = vmatprep.subr.mxu0 %v8818_v0  ;;  %v9193_v38 = vadd.f32 %v440_v27, %v408_v26  ;;  %v9228_v10 = vadd.f32 %v447_v62, %v415_v61  ;;  %v451_v22 = vld [vmem:[%s9063_s3 + $0xf0] sm:$0xff]  ;;  %v420_v27 = vld [vmem:[%s9055_s19 + $0xf8] sm:$0xff] }
  0xa5   : > { %7921 = vmatpush3.msra.mxu0 %v527_v32  ;;  %v494_v5 = vadd.f32 %v493_v1, %v9148_v60  ;;  %v441_v32 = vld [vmem:[%s9063_s3 + $0xa0] sm:$0xff]  ;;  %v8314_v61 = vld [vmem:[#allocation9 + $0xf0] sm:$0xff]   ;;  %v8312_v62 = vld [vmem:[#allocation9 + $0x178] sm:$0xff]  }
  0xa6   : > { %7922 = vmatprep.subr.mxu0 %v8818_v0  ;;  %v9198_v43 = vadd.f32 %v441_v32, %v409_v31  ;;  %v8315_v3 = vld [vmem:[#allocation9 + $0x170] sm:$0xff]  }
  0xa7   : > { %7923 = vmatpush3.msra.mxu0 %v526_v37  ;;  %v442_v37 = vld [vmem:[%s9063_s3 + $0xa8] sm:$0xff] }
  0xa8   : > { %7924 = vmatprep.subr.mxu0 %v8818_v0  ;;  %v9203_v47 = vadd.f32 %v442_v37, %v410_v36 }
  0xa9   : > { %7925 = vmatpush3.msra.mxu0 %v525_v40  ;;  %v411_v40 = vld [vmem:[%s9055_s19 + $0xb0] sm:$0xff] }
  0xaa   : > { %7926 = vmatprep.subr.mxu0 %v8818_v0  ;;  %v9153_v0 = vadd.f32 %v432_v55, %v400_v54  ;;  %v9208_v53 = vadd.f32 %v443_v41, %v411_v40  ;;  %v414_v55 = vld [vmem:[%s9055_s19 + $0xc8] sm:$0xff] }
  0xab   : > { %7927 = vmatpush3.msra.mxu0 %v524_v44 }
  0xac   : > { %v495_v9 = vadd.f32 %v494_v5, %v9153_v0  ;;  %v9223_v5 = vadd.f32 %v446_v57, %v414_v55  ;;  %v8310_v55 = vld [vmem:[#allocation9 + $0x138] sm:$0xff]   ;;  %7931 = vmatprep.subr.bf16.mxu0 %v8312_v62 }
  0xad   : > { %v8311_v57 = vld [vmem:[#allocation9 + $0xf8] sm:$0xff]   ;;  %7080 = vmatprep.subr.bf16.mxu1 %v8310_v55  ;;  %v617_v55 = vlaneseq }
  0xae   : > { %v496_v13 = vadd.f32 %v495_v9, %v9158_v4  ;;  %v449_v9 = vld [vmem:[%s9063_s3 + $0xe0] sm:$0xff]  ;;  %7081 = vmatpush3.bf16.msra.mxu1 %v8311_v57 }
  0xaf   : > { %v618_v57 = vshrl.u32 %v617_v55, 7 }
  0xb0   : > { %v497_v17 = vadd.f32 %v496_v13, %v9163_v8  ;;  %v418_v13 = vld [vmem:[%s9055_s19 + $0xe8] sm:$0xff]  ;;  %s8737_s19 = scalar_lea.vmem %s8736_s17, 8192 }
  0xb1   : > { %v9243_v31 = vadd.f32 %v450_v14, %v418_v13  ;;  %v8323_v13 = vld [vmem:[#allocation9 + $0xd8] sm:$0xff]   ;;  %v8321_v14 = vld [vmem:[#allocation9 + $0x160] sm:$0xff]   ;;  %p8739_p13 = scmp.lt.s32.totalorder %s8737_s19, %s8731_s26 }
  0xb2   : > { %v498_v24 = vadd.f32 %v497_v17, %v9168_v12 }
  0xb3   : > { %p8740_p1 = por %p8739_p13, %p8738_p9 }
  0xb4   : > { %v499_v29 = vadd.f32 %v498_v24, %v9173_v16  ;;  %v9238_v24 = vadd.f32 %v449_v9, %v417_v7  ;;  %v8320_v7 = vld [vmem:[#allocation9 + $0xe0] sm:$0xff]   ;;  %v8318_v9 = vld [vmem:[#allocation9 + $0x168] sm:$0xff]  }
  0xb5   : > { %p8741_p4 = pnand %p8740_p1, %p8734_p2 }
  0xb6   : > { %v500_v34 = vadd.f32 %v499_v29, %v9178_v23  ;;  %v452_v29 = vld [vmem:[%s9063_s3 + $0xf8] sm:$0xff] }
  0xb7   : > { %v9249_v37 = vadd.f32 %v452_v29, %v420_v27  ;;  %v8329_v27 = vld [vmem:[#allocation9 + $0xc8] sm:$0xff]   ;;  %v8327_v29 = vld [vmem:[#allocation9 + $0x150] sm:$0xff]  }
  0xb8   : > { %v501_v39 = vadd.f32 %v500_v34, %v9183_v28  ;;  %v9246_v34 = vadd.f32 %v451_v22, %v419_v18  ;;  %v8326_v18 = vld [vmem:[#allocation9 + $0xd0] sm:$0xff]   ;;  %v8324_v22 = vld [vmem:[#allocation9 + $0x158] sm:$0xff]  }
  0xba   : > { %v502_v44 = vadd.f32 %v501_v39, %v9188_v33 }
  0xbc   : > { %v503_v49 = vadd.f32 %v502_v44, %v9193_v38 }
  0xbe   : > { %v504_v54 = vadd.f32 %v503_v49, %v9198_v43 }
  0xc0   : > { %v505_v59 = vadd.f32 %v504_v54, %v9203_v47 }
  0xc2   : > { %v506_v1 = vadd.f32 %v505_v59, %v9208_v53  ;;  %v8313_v59 = vld [vmem:[#allocation9 + $0x130] sm:$0xff]  }
  0xc3   : > { %7082 = vmatprep.subr.bf16.mxu1 %v8313_v59  ;;  %v619_v59 = vsub.s32 0, %v618_v57 }
  0xc4   : > { %v507_v6 = vadd.f32 %v506_v1, %v9213_v58  ;;  %7083 = vmatpush3.bf16.msra.mxu1 %v8314_v61  ;;  %v8316_v1 = vld [vmem:[#allocation9 + $0x128] sm:$0xff]  }
  0xc5   : > { %7084 = vmatprep.subr.bf16.mxu1 %v8316_v1 }
  0xc6   : > { %v508_v11 = vadd.f32 %v507_v6, %v9218_v63  ;;  %v8319_v6 = vld [vmem:[#allocation9 + $0x120] sm:$0xff]  }
  0xc8   : > { %v509_v17 = vadd.f32 %v508_v11, %v9223_v5  ;;  %7085 = vmatpush3.bf16.msra.mxu1 %v8317_v2  ;;  %v8322_v11 = vld [vmem:[#allocation9 + $0x118] sm:$0xff]  }
  0xc9   : > { %7086 = vmatprep.subr.bf16.mxu1 %v8319_v6 }
  0xca   : > { %v510_v26 = vadd.f32 %v509_v17, %v9228_v10  ;;  %v8325_v17 = vld [vmem:[#allocation9 + $0x110] sm:$0xff]  }
  0xcc   : > { %v511_v32 = vadd.f32 %v510_v26, %v9233_v15  ;;  %7087 = vmatpush3.bf16.msra.mxu1 %v8320_v7  ;;  %v8328_v26 = vld [vmem:[#allocation9 + $0x108] sm:$0xff]  }
  0xcd   : > { %7088 = vmatprep.subr.bf16.mxu1 %v8322_v11 }
  0xce   : > { %v512_v36 = vadd.f32 %v511_v32, %v9238_v24  ;;  %v8331_v32 = vld [vmem:[#allocation9 + $0x100] sm:$0xff]  }
  0xd0   : > { %v513_v39 = vadd.f32 %v512_v36, %v9243_v31  ;;  %7089 = vmatpush3.bf16.msra.mxu1 %v8323_v13  ;;  %v8332_v36 = vld [vmem:[#allocation9 + $0xc0] sm:$0xff]  }
  0xd1   : > { %7090 = vmatprep.subr.bf16.mxu1 %v8325_v17 }
  0xd2   : > { %v514_v40 = vadd.f32 %v513_v39, %v9246_v34  ;;  %v8330_v39 = vld [vmem:[#allocation9 + $0x148] sm:$0xff]  }
  0xd4   : > { %v515_v41 = vadd.f32 %v514_v40, %v9249_v37  ;;  %7091 = vmatpush3.bf16.msra.mxu1 %v8326_v18  ;;  %v8333_v40 = vld [vmem:[#allocation9 + $0x140] sm:$0xff]  }
  0xd5   : > { %7092 = vmatprep.subr.bf16.mxu1 %v8328_v26 }
  0xd6   : > { %v516_v44 = vrot.slane %v515_v41, 4 }
  0xd8   : > { %v517_v45 = vadd.f32 %v516_v44, %v515_v41  ;;  %7093 = vmatpush3.bf16.msra.mxu1 %v8329_v27  ;;  %v9254_v41 = vld [vmem:[#allocation9 + $0xb8] sm:$0xff]  }
  0xd9   : > { %7094 = vmatprep.subr.bf16.mxu1 %v8331_v32  ;;  %v8338_v44 = vld [vmem:[#allocation9 + $0x78] sm:$0xff]  }
  0xda   : > { %v518_v46 = vrot.slane %v517_v45, 2 }
  0xdc   : > { %v519_v49 = vadd.f32 %v518_v46, %v517_v45  ;;  %7095 = vmatpush3.bf16.msra.mxu1 %v8332_v36 }
  0xdd   : > { %7979 = vmatprep.subr.bf16.mxu1 %v9254_v41 }
  0xde   : > { %v520_v50 = vrot.slane %v519_v49, 1 }
  0xe0   : > { %v521_v51 = vadd.f32 %v520_v50, %v519_v49  ;;  %v8820_v50 = vmov 0  }
  0xe1   : > { %381 = vst [vmem:[#allocation2] sm:$0xff] %v8820_v50  ;;  %382 = vst [vmem:[#allocation2 + $0x8] sm:$0xf] %v8820_v50 }
  0xe2   : > { %v523_v54 = vmul.f32 0.00390625, %v521_v51  ;;  %384 = vst [vmem:[#allocation2 + $0x14] sm:$0xf] %v8820_v50  ;;  %386 = vst [vmem:[#allocation2 + $0x1a0] sm:$0xf] %v8820_v50 }
  0xe3   : > { %388 = vst [vmem:[#allocation2 + $0x1ac] sm:$0xf] %v8820_v50 }
  0xe4   : > { %7929 = vmatmul.mubr.f32.vlgmr.msra.gmra.mxu0 %v523_v54 }
  0xe5   : > { %7932 = vmatpush3.bf16.msra.mxu0 %v8312_v62 }
  0xe6   : > { %7933 = vmatprep.subr.bf16.mxu0 %v8315_v3 }
  0xe8   : > { %v8592_v32 = vld [vmem:[#allocation2] sm:$0xff] }
  0xe9   : > { %7934 = vmatpush3.bf16.msra.mxu0 %v8315_v3 }
  0xea   : > { %7935 = vmatprep.subr.bf16.mxu0 %v8318_v9 }
  0xed   : > { %7936 = vmatpush3.bf16.msra.mxu0 %v8318_v9 }
  0xee   : > { %7937 = vmatprep.subr.bf16.mxu0 %v8321_v14 }
  0xf1   : > { %7938 = vmatpush3.bf16.msra.mxu0 %v8321_v14 }
  0xf2   : > { %7939 = vmatprep.subr.bf16.mxu0 %v8324_v22 }
  0xf5   : > { %7940 = vmatpush3.bf16.msra.mxu0 %v8324_v22 }
  0xf6   : > { %7941 = vmatprep.subr.bf16.mxu0 %v8327_v29 }
  0xf9   : > { %7942 = vmatpush3.bf16.msra.mxu0 %v8327_v29 }
  0xfa   : > { %7943 = vmatprep.subr.bf16.mxu0 %v8330_v39 }
  0xfd   : > { %7944 = vmatpush3.bf16.msra.mxu0 %v8330_v39 }
  0xfe   : > { %7945 = vmatprep.subr.bf16.mxu0 %v8333_v40 }
 0x101   : > { %7946 = vmatpush3.bf16.msra.mxu0 %v8333_v40 }
 0x102   : > { %7216 = vmatprep.subr.bf16.mxu0 %v8338_v44 }
 0x1a4   : > { %v606_v45 = vpop.f32.mrf.mxu0 }
 0x1a5   : > { %v6582_v46 = vmul.f32 -1.442695, %v606_v45 }
 0x1a6   : > { %v7930_v49 = vpop.f32.mrf.mxu0 }
 0x1a7   : > { %8586 = vpow2.f32 %v6582_v46 }
 0x1b4   : > { %v8587_v51 = vpop.eup %8586 }
 0x1b5   : > { %v613_v54 = vadd.f32 1.0, %v8587_v51 }
 0x1b7   : > { %8588 = vrcp.f32 %v613_v54 }
 0x1c4   : > { %v8589_v61 = vpop.eup %8588 }
 0x1c5   : > { %v616_v62 = vadd.f32 1.0, %v8589_v61 }
 0x1c7   : > { %v9262_v1 = vrot.slane %v616_v62, %v619_v59 }
 0x1c9   : > { %v643_v2 = vmul.f32 %v9262_v1, %v9208_v53  ;;  %v644_v3 = vmul.f32 %v9262_v1, %v9213_v58  ;;  %v645_v6 = vmul.f32 %v9262_v1, %v9218_v63  ;;  %v646_v7 = vmul.f32 %v9262_v1, %v9223_v5 }
 0x1ca   : > { %v647_v9 = vmul.f32 %v9262_v1, %v9228_v10  ;;  %v648_v11 = vmul.f32 %v9262_v1, %v9233_v15  ;;  %v649_v13 = vmul.f32 %v9262_v1, %v9238_v24  ;;  %v650_v53 = vmul.f32 %v9262_v1, %v9243_v31 }
 0x1cb   : > { %v651_v58 = vmul.f32 %v9262_v1, %v9246_v34  ;;  %v652_v63 = vmul.f32 %v9262_v1, %v9249_v37  ;;  %v9286_v5 = vmul.f32 %v9262_v1, %v9158_v4  ;;  %v9290_v10 = vmul.f32 %v9262_v1, %v9163_v8 }
 0x1cc   : > { %v635_v15 = vmul.f32 %v9262_v1, %v9168_v12  ;;  %v636_v24 = vmul.f32 %v9262_v1, %v9173_v16  ;;  %v9296_v31 = vpack.c.bf16 %v646_v7, %v645_v6  ;;  %v666_v34 = vpack.c.bf16 %v648_v11, %v647_v9 }
 0x1cd   : > { %v9298_v14 = vpack.c.bf16 %v650_v53, %v649_v13  ;;  %v9302_v37 = vmul.f32 %v9262_v1, %v9178_v23  ;;  %v9306_v4 = vmul.f32 %v9262_v1, %v9183_v28  ;;  %v9310_v8 = vmul.f32 %v9262_v1, %v9188_v33 }
 0x1ce   : > { %v9312_v12 = vpack.c.bf16 %v652_v63, %v651_v58  ;;  %v9316_v16 = vmul.f32 %v9262_v1, %v9198_v43  ;;  %v9320_v17 = vmul.f32 %v9262_v1, %v9203_v47  ;;  %v9322_v23 = vpack.c.bf16 %v644_v3, %v643_v2 }
 0x1cf   : > { %v754_v18 = vshrl.u32 %v9296_v31, 16  ;;  %v761_v28 = vshrl.u32 %v666_v34, 16  ;;  %v764_v22 = vshll.u32 %v666_v34, 16  ;;  %v768_v26 = vshrl.u32 %v9298_v14, 16 }
 0x1d0   : > { %v771_v33 = vshll.u32 %v9298_v14, 16  ;;  %v757_v43 = vshll.u32 %v9296_v31, 16  ;;  %v775_v29 = vshrl.u32 %v9312_v12, 16  ;;  %v778_v47 = vshll.u32 %v9312_v12, 16 }
 0x1d1   : > { %v756_v27 = vrot.slane %v754_v18, 7  ;;  %v9338_v36 = vpack.c.bf16 %v636_v24, %v635_v15  ;;  %v763_v39 = vrot.slane %v761_v28, 7  ;;  %v770_v40 = vrot.slane %v768_v26, 7 }
 0x1d2   : > { %v621_v44 = vmul.f32 %v9262_v1, %v9095_v19  ;;  %v777_v46 = vrot.slane %v775_v29, 7  ;;  %v842_v49 = vrot.slane %v764_v22, 1  ;;  %v622_v51 = vmul.f32 %v9262_v1, %v9097_v20 }
 0x1d3   : > { %v759_v45 = vor.u32 %v757_v43, %v756_v27  ;;  %v750_v55 = vshll.u32 %v9322_v23, 16  ;;  %v766_v57 = vor.u32 %v764_v22, %v763_v39  ;;  %v773_v59 = vor.u32 %v771_v33, %v770_v40 }
 0x1d4   : > { %v844_v61 = vrot.slane %v771_v33, 1  ;;  %v780_v19 = vor.u32 %v778_v47, %v777_v46  ;;  %v843_v2 = vor.u32 %v842_v49, %v761_v28  ;;  %v846_v3 = vrot.slane %v778_v47, 1 }
 0x1d5   : > { %v812_v62 = vsel %vm9334_vm5, 0, %v759_v45  ;;  %v813_v20 = vsel %vm9334_vm5, 0, %v766_v57  ;;  %v814_v6 = vsel %vm9334_vm5, 0, %v773_v59  ;;  %v9373_v46 = vpack.c.bf16 %v622_v51, %v621_v44 }
 0x1d6   : > { %v845_v7 = vor.u32 %v844_v61, %v768_v26  ;;  %v6631_v9 = vcombine.low %v812_v62, %v9296_v31  ;;  %v815_v11 = vsel %vm9334_vm5, 0, %v780_v19  ;;  %v847_v13 = vor.u32 %v846_v3, %v775_v29 }
 0x1d7   : > { %v880_v53 = vsel %vm9348_vm6, %v843_v2, 0  ;;  %v6633_v58 = vcombine.high %v812_v62, %v9296_v31  ;;  %v6635_v15 = vcombine.low %v813_v20, %v666_v34  ;;  %v6637_v28 = vcombine.high %v813_v20, %v666_v34  ;;  %1816 = vmatprep.mubr.bf16.mxu1 %v9373_v46 }
 0x1d8   : > { %v881_v63 = vsel %vm9348_vm6, %v845_v7, 0  ;;  %v6636_v24 = vcombine.low %v880_v53, %v880_v53  ;;  %1203 = vst [vmem:[#allocation2 + $0x138] sm:$0xff] %v6631_v9  ;;  %v882_v22 = vsel %vm9348_vm6, %v847_v13, 0  ;;  %v6638_v26 = vcombine.high %v880_v53, %v880_v53 }
 0x1d9   : > { %v6639_v33 = vcombine.low %v814_v6, %v9298_v14  ;;  %v6640_v27 = vcombine.low %v881_v63, %v881_v63  ;;  %1205 = vst [vmem:[#allocation2 + $0x144] sm:$0xff] %v6633_v58  ;;  %v6641_v29 = vcombine.high %v814_v6, %v9298_v14  ;;  %v6642_v47 = vcombine.high %v881_v63, %v881_v63 }
 0x1da   : > { %v6643_v39 = vcombine.low %v815_v11, %v9312_v12  ;;  %v6644_v40 = vcombine.low %v882_v22, %v882_v22  ;;  %1207 = vst [vmem:[#allocation2 + $0x150] sm:$0xff] %v6635_v15  ;;  %1209 = vst [vmem:[#allocation2 + $0x15c] sm:$0xff] %v6637_v28  ;;  %v6645_v34 = vcombine.high %v815_v11, %v9312_v12  ;;  %v9387_v51 = vrot.slane %v750_v55, 1 }
 0x1db   : > { %1208 = vst [vmem:[#allocation2 + $0x158] sm:$0xf] %v6636_v24  ;;  %v6646_v45 = vcombine.high %v882_v22, %v882_v22  ;;  %1211 = vst [vmem:[#allocation2 + $0x168] sm:$0xff] %v6639_v33  ;;  %v623_v49 = vmul.f32 %v9262_v1, %v9099_v21  ;;  %v624_v14 = vmul.f32 %v9262_v1, %v9104_v25  ;;  %v670_v21 = vshrl.u32 %v9373_v46, 16 }
 0x1dc   : > { %1212 = vst [vmem:[#allocation2 + $0x170] sm:$0xf] %v6640_v27  ;;  %1210 = vst [vmem:[#allocation2 + $0x164] sm:$0xf] %v6638_v26  ;;  %v625_v57 = vmul.f32 %v9262_v1, %v9111_v30  ;;  %v626_v12 = vmul.f32 %v9262_v1, %v9117_v35  ;;  %v627_v44 = vmul.f32 %v9262_v1, %v9124_v42  ;;  %v673_v59 = vshll.u32 %v9373_v46, 16 }
 0x1dd   : > { %1213 = vst [vmem:[#allocation2 + $0x174] sm:$0xff] %v6641_v29  ;;  %1214 = vst [vmem:[#allocation2 + $0x17c] sm:$0xf] %v6642_v47  ;;  %v628_v25 = vmul.f32 %v9262_v1, %v9131_v48  ;;  %v9393_v30 = vpack.c.bf16 %v624_v14, %v623_v49  ;;  %v629_v35 = vmul.f32 %v9262_v1, %v9137_v52  ;;  %v672_v19 = vrot.slane %v670_v21, 7  ;;  %v8344_v14 = vld [vmem:[#allocation9 + $0xb0] sm:$0xff]  }
 0x1de   : > { %1215 = vst [vmem:[#allocation2 + $0x180] sm:$0xff] %v6643_v39  ;;  %1216 = vst [vmem:[#allocation2 + $0x188] sm:$0xf] %v6644_v40  ;;  %v9395_v61 = vpack.c.bf16 %v626_v12, %v625_v57  ;;  %v630_v42 = vmul.f32 %v9262_v1, %v9143_v56  ;;  %v816_v62 = vrot.slane %v673_v59, 1  ;;  %v631_v3 = vmul.f32 %v9262_v1, %v9148_v60 }
 0x1df   : > { %1217 = vst [vmem:[#allocation2 + $0x18c] sm:$0xff] %v6645_v34  ;;  %1218 = vst [vmem:[#allocation2 + $0x194] sm:$0xf] %v6646_v45  ;;  %v9401_v2 = vpack.c.bf16 %v628_v25, %v627_v44  ;;  %v677_v20 = vshrl.u32 %v9393_v30, 16  ;;  %v680_v48 = vshll.u32 %v9393_v30, 16  ;;  %v675_v9 = vor.u32 %v673_v59, %v672_v19 }
 0x1e0   : > { %v684_v6 = vshrl.u32 %v9395_v61, 16  ;;  %v687_v7 = vshll.u32 %v9395_v61, 16  ;;  %v817_v52 = vor.u32 %v816_v62, %v670_v21  ;;  %v632_v56 = vmul.f32 %v9262_v1, %v9153_v0 }
 0x1e1   : > { %v694_v11 = vshll.u32 %v9401_v2, 16  ;;  %v818_v13 = vrot.slane %v680_v48, 1  ;;  %v679_v53 = vrot.slane %v677_v20, 7  ;;  %v9414_v60 = vsel %vm9334_vm5, 0, %v675_v9  ;;  %v8353_v9 = vld [vmem:[#allocation9 + $0xa8] sm:$0xff]  }
 0x1e2   : > { %v820_v58 = vrot.slane %v687_v7, 1  ;;  %v686_v63 = vrot.slane %v684_v6, 7  ;;  %v867_v15 = vsel %vm9348_vm6, %v817_v52, 0  ;;  %v691_v24 = vshrl.u32 %v9401_v2, 16  ;;  %1817 = vmatmul.mubr.bf16.vlgmr.msra.gmra.mxu1 %v9414_v60 }
 0x1e3   : > { %v822_v28 = vrot.slane %v694_v11, 1  ;;  %v6584_v22 = vcombine.low %v867_v15, %v867_v15  ;;  %v6586_v26 = vcombine.high %v867_v15, %v867_v15  ;;  %v819_v33 = vor.u32 %v818_v13, %v677_v20  ;;  %7980 = vmatpush3.bf16.msra.mxu1 %v9254_v41  ;;  %1824 = vmatprep.mubr.bf16.mxu1 %v9393_v30 }
 0x1e4   : > { %v682_v0 = vor.u32 %v680_v48, %v679_v53  ;;  %v821_v27 = vor.u32 %v820_v58, %v684_v6  ;;  %v689_v47 = vor.u32 %v687_v7, %v686_v63  ;;  %v9421_v39 = vpack.c.bf16 %v630_v42, %v629_v35  ;;  %7981 = vmatprep.subr.bf16.mxu1 %v8344_v14 }
 0x1e5   : > { %v823_v29 = vor.u32 %v822_v28, %v691_v24  ;;  %1156 = vst [vmem:[#allocation2 + $0x20] sm:$0xf] %v6584_v22  ;;  %1158 = vst [vmem:[#allocation2 + $0x2c] sm:$0xf] %v6586_v26  ;;  %v868_v40 = vsel %vm9348_vm6, %v819_v33, 0  ;;  %v9450_v6 = vpack.c.bf16 %v632_v56, %v631_v3  ;;  %v693_v7 = vrot.slane %v691_v24, 7 }
 0x1e6   : > { %v9427_v34 = vsel %vm9334_vm5, 0, %v682_v0  ;;  %v869_v45 = vsel %vm9348_vm6, %v821_v27, 0  ;;  %v6588_v57 = vcombine.low %v868_v40, %v868_v40  ;;  %v6590_v12 = vcombine.high %v868_v40, %v868_v40  ;;  %v8362_v22 = vld [vmem:[#allocation9 + $0xa0] sm:$0xff]  }
 0x1e7   : > { %v870_v49 = vsel %vm9348_vm6, %v823_v29, 0  ;;  %v6587_v44 = vcombine.low %v9427_v34, %v9393_v30  ;;  %v6589_v21 = vcombine.high %v9427_v34, %v9393_v30  ;;  %v6592_v59 = vcombine.low %v869_v45, %v869_v45  ;;  %7982 = vmatpush3.bf16.msra.mxu1 %v8344_v14 }
 0x1e8   : > { %v6594_v25 = vcombine.high %v869_v45, %v869_v45  ;;  %v6596_v35 = vcombine.low %v870_v49, %v870_v49  ;;  %v6598_v42 = vcombine.high %v870_v49, %v870_v49  ;;  %1160 = vst [vmem:[#allocation2 + $0x38] sm:$0xf] %v6588_v57  ;;  %1162 = vst [vmem:[#allocation2 + $0x44] sm:$0xf] %v6590_v12  ;;  %v9442_v19 = vsel %vm9334_vm5, 0, %v689_v47  ;;  %v8370_v49 = vld [vmem:[#allocation9 + $0x98] sm:$0xff]  }
 0x1e9   : > { %1159 = vst [vmem:[#allocation2 + $0x30] sm:$0xff] %v6587_v44  ;;  %1161 = vst [vmem:[#allocation2 + $0x3c] sm:$0xff] %v6589_v21  ;;  %v698_v62 = vshrl.u32 %v9421_v39, 16  ;;  %v701_v20 = vshll.u32 %v9421_v39, 16  ;;  %v6591_v48 = vcombine.low %v9442_v19, %v9395_v61  ;;  %v6593_v41 = vcombine.high %v9442_v19, %v9395_v61  ;;  %7983 = vmatprep.subr.bf16.mxu1 %v8353_v9 }
 0x1ea   : > { %1164 = vst [vmem:[#allocation2 + $0x50] sm:$0xf] %v6592_v59  ;;  %1166 = vst [vmem:[#allocation2 + $0x5c] sm:$0xf] %v6594_v25  ;;  %v9455_v13 = vpack.c.bf16 %v9290_v10, %v9286_v5  ;;  %v719_v53 = vshrl.u32 %v9338_v36, 16  ;;  %v722_v58 = vshll.u32 %v9338_v36, 16  ;;  %v640_v63 = vmul.f32 %v9262_v1, %v9193_v38  ;;  %1825 = vmatmul.mubr.bf16.gmra.mxu1 %v9427_v34 }
 0x1eb   : > { %1168 = vst [vmem:[#allocation2 + $0x68] sm:$0xf] %v6596_v35  ;;  %1170 = vst [vmem:[#allocation2 + $0x74] sm:$0xf] %v6598_v42  ;;  %v824_v52 = vrot.slane %v701_v20, 1  ;;  %v9463_v3 = vpack.c.bf16 %v9320_v17, %v9316_v16  ;;  %v696_v15 = vor.u32 %v694_v11, %v693_v7  ;;  %v8339_v5 = vld [vmem:[#allocation9 + $0x38] sm:$0xff]   ;;  %v9494_v14 = vpack.c.bf16 %v9306_v4, %v9302_v37 }
 0x1ec   : > { %v9465_v56 = vld [vmem:[#allocation2 + $0x20] ss:$12 sps:$4 sm:$0xff]   ;;  %1163 = vst [vmem:[#allocation2 + $0x48] sm:$0xff] %v6591_v48  ;;  %1165 = vst [vmem:[#allocation2 + $0x54] sm:$0xff] %v6593_v41  ;;  %v705_v24 = vshrl.u32 %v9450_v6, 16  ;;  %v708_v28 = vshll.u32 %v9450_v6, 16  ;;  %1832 = vmatprep.mubr.bf16.mxu1 %v9395_v61  ;;  %7984 = vmatpush3.bf16.msra.mxu1 %v8353_v9  ;;  %v9502_v44 = vpack.c.bf16 %v640_v63, %v9310_v8 }
 0x1ed   : > { %v825_v10 = vor.u32 %v824_v52, %v698_v62  ;;  %7947 = vmatprep.mubr.bf16.mxu0 %v9465_v56  ;;  %v8342_v38 = vld [vmem:[#allocation9 + $0x70] sm:$0xff]   ;;  %v9474_v1 = vsel %vm9334_vm5, 0, %v696_v15  ;;  %v715_v16 = vshll.u32 %v9455_v13, 16  ;;  %v830_v17 = vrot.slane %v722_v58, 1  ;;  %7985 = vmatprep.subr.bf16.mxu1 %v8362_v22  ;;  %v8348_v63 = vld [vmem:[#allocation9 + $0x28] sm:$0xff]  }
 0x1ee   : > { %v700_v11 = vrot.slane %v698_v62, 7  ;;  %v826_v33 = vrot.slane %v708_v28, 1  ;;  %v6595_v0 = vcombine.low %v9474_v1, %v9401_v2  ;;  %v6597_v27 = vcombine.high %v9474_v1, %v9401_v2  ;;  %v8343_v4 = vld [vmem:[#allocation9 + $0x30] sm:$0xff]  }
 0x1ef   : > { %v871_v26 = vsel %vm9348_vm6, %v825_v10, 0  ;;  %v9487_v29 = vld [vmem:[#allocation2 + $0x38] ss:$12 sps:$4 sm:$0xff]   ;;  %v831_v45 = vor.u32 %v830_v17, %v719_v53  ;;  %v743_v21 = vshll.u32 %v9463_v3, 16  ;;  %v747_v59 = vshrl.u32 %v9322_v23, 16 }
 0x1f0   : > { %v6600_v47 = vcombine.low %v871_v26, %v871_v26  ;;  %v6602_v40 = vcombine.high %v871_v26, %v871_v26  ;;  %v827_v12 = vor.u32 %v826_v33, %v705_v24  ;;  %1167 = vst [vmem:[#allocation2 + $0x60] sm:$0xff] %v6595_v0  ;;  %1169 = vst [vmem:[#allocation2 + $0x6c] sm:$0xff] %v6597_v27  ;;  %7948 = vmatmul.mubr.bf16.vlgmr.msra.gmra.mxu0 %v9487_v29 }
 0x1f1   : > { %v9496_v57 = vld [vmem:[#allocation2 + $0x50] ss:$12 sps:$4 sm:$0xff]   ;;  %v703_v37 = vor.u32 %v701_v20, %v700_v11  ;;  %7217 = vmatpush3.bf16.msra.mxu0 %v8339_v5  ;;  %v712_v8 = vshrl.u32 %v9455_v13, 16  ;;  %v828_v35 = vrot.slane %v715_v16, 1  ;;  %v874_v42 = vsel %vm9348_vm6, %v831_v45, 0  ;;  %7986 = vmatpush3.bf16.msra.mxu1 %v8362_v22  ;;  %v8372_v11 = vld [vmem:[#allocation9 + $0x90] sm:$0xff]  }
 0x1f2   : > { %1172 = vst [vmem:[#allocation2 + $0x80] sm:$0xf] %v6600_v47  ;;  %1174 = vst [vmem:[#allocation2 + $0x8c] sm:$0xf] %v6602_v40  ;;  %7951 = vmatprep.mubr.bf16.mxu0 %v9496_v57  ;;  %v872_v25 = vsel %vm9348_vm6, %v827_v12, 0  ;;  %7218 = vmatprep.subr.bf16.mxu0 %v8342_v38  ;;  %v8347_v20 = vld [vmem:[#allocation9 + $0x68] sm:$0xff]   ;;  %v6612_v41 = vcombine.low %v874_v42, %v874_v42  ;;  %v6614_v7 = vcombine.high %v874_v42, %v874_v42 }
 0x1f3   : > { %v6604_v62 = vcombine.low %v872_v25, %v872_v25  ;;  %v6606_v48 = vcombine.high %v872_v25, %v872_v25  ;;  %v840_v9 = vrot.slane %v757_v43, 1  ;;  %v829_v52 = vor.u32 %v828_v35, %v712_v8  ;;  %v9522_v5 = vld [vmem:[#allocation2 + $0x68] ss:$12 sps:$4 sm:$0xff]   ;;  %7987 = vmatprep.subr.bf16.mxu1 %v8370_v49  ;;  %1833 = vmatmul.mubr.bf16.gmra.mxu1 %v9442_v19 }
 0x1f4   : > { %v839_v15 = vor.u32 %v9387_v51, %v747_v59  ;;  %1184 = vst [vmem:[#allocation2 + $0xc8] sm:$0xf] %v6612_v41  ;;  %1186 = vst [vmem:[#allocation2 + $0xd4] sm:$0xf] %v6614_v7  ;;  %v9526_v10 = vsel %vm9334_vm5, 0, %v703_v37  ;;  %v729_v43 = vshll.u32 %v9494_v14, 16  ;;  %1840 = vmatprep.mubr.bf16.mxu1 %v9401_v2 }
 0x1f5   : > { %1176 = vst [vmem:[#allocation2 + $0x98] sm:$0xf] %v6604_v62  ;;  %1178 = vst [vmem:[#allocation2 + $0xa4] sm:$0xf] %v6606_v48  ;;  %v8351_v38 = vld [vmem:[#allocation9 + $0x60] sm:$0xff]   ;;  %v736_v17 = vshll.u32 %v9502_v44, 16  ;;  %7219 = vmatpush3.bf16.msra.mxu0 %v8343_v4  ;;  %v841_v45 = vor.u32 %v840_v9, %v754_v18  ;;  %7988 = vmatpush3.bf16.msra.mxu1 %v8370_v49 }
 0x1f6   : > { %v873_v51 = vsel %vm9348_vm6, %v829_v52, 0  ;;  %v726_v22 = vshrl.u32 %v9494_v14, 16  ;;  %v733_v26 = vshrl.u32 %v9502_v44, 16  ;;  %v707_v33 = vrot.slane %v705_v24, 7  ;;  %7220 = vmatprep.subr.bf16.mxu0 %v8347_v20  ;;  %7989 = vmatprep.subr.bf16.mxu1 %v8372_v11  ;;  %v8376_v18 = vld [vmem:[#allocation9 + $0x88] sm:$0xff]   ;;  %v8352_v49 = vld [vmem:[#allocation9 + $0x20] sm:$0xff]  }
 0x1f7   : > { %v6608_v0 = vcombine.low %v873_v51, %v873_v51  ;;  %v6610_v27 = vcombine.high %v873_v51, %v873_v51  ;;  %v832_v47 = vrot.slane %v729_v43, 1  ;;  %v834_v40 = vrot.slane %v736_v17, 1  ;;  %v8356_v42 = vld [vmem:[#allocation9 + $0x58] sm:$0xff]  }
 0x1f8   : > { %7952 = vmatmul.mubr.bf16.gmra.mxu0 %v9522_v5  ;;  %v836_v4 = vrot.slane %v743_v21, 1  ;;  %v878_v31 = vsel %vm9348_vm6, %v839_v15, 0  ;;  %v710_v25 = vor.u32 %v708_v28, %v707_v33  ;;  %v740_v35 = vshrl.u32 %v9463_v3, 16  ;;  %v8360_v33 = vld [vmem:[#allocation9 + $0x50] sm:$0xff]  }
 0x1f9   : > { %v9543_v12 = vld [vmem:[#allocation2 + $0x80] ss:$12 sps:$4 sm:$0xff]   ;;  %1180 = vst [vmem:[#allocation2 + $0xb0] sm:$0xf] %v6608_v0  ;;  %1182 = vst [vmem:[#allocation2 + $0xbc] sm:$0xf] %v6610_v27  ;;  %v833_v24 = vor.u32 %v832_v47, %v726_v22  ;;  %v835_v37 = vor.u32 %v834_v40, %v733_v26  ;;  %7221 = vmatpush3.bf16.msra.mxu0 %v8348_v63  ;;  %v6628_v62 = vcombine.low %v878_v31, %v878_v31 }
 0x1fa   : > { %7955 = vmatprep.mubr.bf16.mxu0 %v9543_v12  ;;  %v6630_v48 = vcombine.high %v878_v31, %v878_v31  ;;  %7222 = vmatprep.subr.bf16.mxu0 %v8351_v38  ;;  %v837_v28 = vor.u32 %v836_v4, %v740_v35  ;;  %v9567_v15 = vsel %vm9334_vm5, 0, %v710_v25  ;;  %v8357_v38 = vld [vmem:[#allocation9 + $0x18] sm:$0xff]   ;;  %v879_v51 = vsel %vm9348_vm6, %v841_v45, 0  ;;  %v8384_v0 = vld [vmem:[#allocation9 + $0x80] sm:$0xff]   ;;  %v8361_v31 = vld [vmem:[#allocation9 + $0x10] sm:$0xff]  }
 0x1fb   : > { %v875_v20 = vsel %vm9348_vm6, %v833_v24, 0  ;;  %v876_v41 = vsel %vm9348_vm6, %v835_v37, 0  ;;  %1200 = vst [vmem:[#allocation2 + $0x128] sm:$0xf] %v6628_v62  ;;  %7990 = vmatpush3.bf16.msra.mxu1 %v8372_v11  ;;  %v714_v47 = vrot.slane %v712_v8, 7  ;;  %v6632_v40 = vcombine.low %v879_v51, %v879_v51  ;;  %v8391_v25 = vld [vmem:[#allocation9 + $0x1f8] sm:$0xff]  }
 0x1fc   : > { %v6616_v7 = vcombine.low %v875_v20, %v875_v20  ;;  %v6618_v9 = vcombine.high %v875_v20, %v875_v20  ;;  %v6620_v52 = vcombine.low %v876_v41, %v876_v41  ;;  %v6622_v63 = vcombine.high %v876_v41, %v876_v41  ;;  %1202 = vst [vmem:[#allocation2 + $0x134] sm:$0xf] %v6630_v48  ;;  %v9571_v11 = vld [vmem:[#allocation2 + $0x98] ss:$12 sps:$4 sm:$0xff]   ;;  %v8369_v41 = vld [vmem:[#allocation9] sm:$0xff]  }
 0x1fd   : > { %7991 = vmatprep.subr.bf16.mxu1 %v8376_v18  ;;  %7223 = vmatpush3.bf16.msra.mxu0 %v8352_v49  ;;  %v877_v27 = vsel %vm9348_vm6, %v837_v28, 0  ;;  %v6634_v24 = vcombine.high %v879_v51, %v879_v51  ;;  %1204 = vst [vmem:[#allocation2 + $0x140] sm:$0xf] %v6632_v40  ;;  %v717_v8 = vor.u32 %v715_v16, %v714_v47  ;;  %v8365_v49 = vld [vmem:[#allocation9 + $0x48] sm:$0xff]   ;;  %v8368_v16 = vld [vmem:[#allocation9 + $0x40] sm:$0xff]   ;;  %v735_v51 = vrot.slane %v733_v26, 7 }
 0x1fe   : > { %1188 = vst [vmem:[#allocation2 + $0xe0] sm:$0xf] %v6616_v7  ;;  %1190 = vst [vmem:[#allocation2 + $0xec] sm:$0xf] %v6618_v9  ;;  %1841 = vmatmul.mubr.bf16.gmra.mxu1 %v9474_v1  ;;  %7224 = vmatprep.subr.bf16.mxu0 %v8356_v42  ;;  %v6624_v45 = vcombine.low %v877_v27, %v877_v27  ;;  %v6626_v4 = vcombine.high %v877_v27, %v877_v27  ;;  %v9585_v42 = vld [vmem:[#allocation2 + $0xc8] ss:$12 sps:$4 sm:$0xff]  }
 0x1ff   : > { %1192 = vst [vmem:[#allocation2 + $0xf8] sm:$0xf] %v6620_v52  ;;  %1194 = vst [vmem:[#allocation2 + $0x104] sm:$0xf] %v6622_v63  ;;  %1848 = vmatprep.mubr.bf16.mxu1 %v9421_v39  ;;  %7992 = vmatpush3.bf16.msra.mxu1 %v8376_v18  ;;  %v721_v18 = vrot.slane %v719_v53, 7  ;;  %v8366_v62 = vld [vmem:[#allocation9 + $0x8] sm:$0xff]   ;;  %v6720_v40 = vcombine.high %v8820_v50, %v8820_v50 }
 0x200   : > { %v9578_v37 = vld [vmem:[#allocation2 + $0xb0] ss:$12 sps:$4 sm:$0xff]   ;;  %7956 = vmatmul.mubr.bf16.gmra.mxu0 %v9571_v11  ;;  %1206 = vst [vmem:[#allocation2 + $0x14c] sm:$0xf] %v6634_v24  ;;  %1196 = vst [vmem:[#allocation2 + $0x110] sm:$0xf] %v6624_v45  ;;  %7993 = vmatprep.subr.bf16.mxu1 %v8384_v0 }
 0x201   : > { %7959 = vmatprep.mubr.bf16.mxu0 %v9578_v37  ;;  %1198 = vst [vmem:[#allocation2 + $0x11c] sm:$0xf] %v6626_v4  ;;  %7225 = vmatpush3.bf16.msra.mxu0 %v8357_v38  ;;  %v9592_v48 = vsel %vm9334_vm5, 0, %v717_v8  ;;  %v724_v53 = vor.u32 %v722_v58, %v721_v18  ;;  %v8371_v7 = vld [vmem:[#allocation9 + $0x238] sm:$0xff]   ;;  %v728_v52 = vrot.slane %v726_v22, 7  ;;  %v742_v26 = vrot.slane %v740_v35, 7 }
 0x202   : > { %7226 = vmatprep.subr.bf16.mxu0 %v8360_v33  ;;  %v9642_v47 = vld [vmem:[#allocation2 + $0x170] ss:$12 sps:$4 sm:$0xff]   ;;  %v749_v24 = vrot.slane %v747_v59, 7  ;;  %v8367_v45 = vld [vmem:[#allocation2 + $0x188] ss:$12 sps:$4 sm:$0xff]   ;;  %v9661_v4 = vld [vmem:[#allocation2] sm:$0xff] }
 0x203   : > { %7994 = vmatpush3.bf16.msra.mxu1 %v8384_v0  ;;  %v9603_v9 = vsel %vm9334_vm5, 0, %v724_v53  ;;  %v731_v58 = vor.u32 %v729_v43, %v728_v52  ;;  %v9617_v38 = vld [vmem:[#allocation2 + $0x128] ss:$12 sps:$4 sm:$0xff]   ;;  %v738_v43 = vor.u32 %v736_v17, %v735_v51  ;;  %v9633_v0 = vld [vmem:[#allocation2 + $0x158] ss:$12 sps:$4 sm:$0xff]   ;;  %v745_v17 = vor.u32 %v743_v21, %v742_v26 }
 0x204   : > { %7352 = vmatprep.subr.bf16.mxu1 %v8391_v25  ;;  %v752_v21 = vor.u32 %v750_v55, %v749_v24  ;;  %v9665_v50 = vcombine.low %v9661_v4, %v9661_v4  ;;  %v8380_v55 = vld [vmem:[#allocation9 + $0x228] sm:$0xff]   ;;  %v8388_v8 = vld [vmem:[#allocation9 + $0x220] sm:$0xff]   ;;  %v9709_v53 = vld [vmem:[#allocation2 + $0x180] ss:$12 sps:$4 sm:$0xff]  }
 0x205   : > { %7227 = vmatpush3.bf16.msra.mxu0 %v8361_v31  ;;  %v9594_v20 = vld [vmem:[#allocation2 + $0xe0] ss:$12 sps:$4 sm:$0xff]   ;;  %v9622_v22 = vsel %vm9334_vm5, 0, %v731_v58  ;;  %v9638_v27 = vsel %vm9334_vm5, 0, %v738_v43  ;;  %v9656_v35 = vsel %vm9334_vm5, 0, %v745_v17  ;;  %v8396_v52 = vld [vmem:[#allocation9 + $0x1e8] sm:$0xff]  }
 0x206   : > { %1849 = vmatmul.mubr.bf16.gmra.mxu1 %v9526_v10  ;;  %7228 = vmatprep.subr.bf16.mxu0 %v8365_v49  ;;  %v9607_v63 = vld [vmem:[#allocation2 + $0xf8] ss:$12 sps:$4 sm:$0xff]   ;;  %v9670_v59 = vsel %vm9334_vm5, 0, %v752_v21  ;;  %v8393_v49 = vld [vmem:[#allocation9 + $0x218] sm:$0xff]   ;;  %v9687_v18 = vld [vmem:[#allocation2 + $0x154] ss:$12 sps:$4 sm:$0xff]  }
 0x207   : > { %1856 = vmatprep.mubr.bf16.mxu1 %v9450_v6  ;;  %v9626_v33 = vld [vmem:[#allocation2 + $0x140] ss:$12 sps:$4 sm:$0xff]   ;;  %v9679_v25 = vld [vmem:[#allocation2 + $0x13c] ss:$12 sps:$4 sm:$0xff]   ;;  %v8399_v51 = vld [vmem:[#allocation9 + $0x1e0] sm:$0xff]  }
 0x208   : > { %7960 = vmatmul.mubr.bf16.gmra.mxu0 %v9585_v42  ;;  %v9610_v28 = vld [vmem:[#allocation2 + $0x110] ss:$12 sps:$4 sm:$0xff]   ;;  %v8373_v31 = vld [vmem:[#allocation9 + $0x230] sm:$0xff]   ;;  %v8402_v43 = vld [vmem:[#allocation9 + $0x198] sm:$0xff]  }
 0x209   : > { %7963 = vmatprep.mubr.bf16.mxu0 %v9594_v20  ;;  %7229 = vmatpush3.bf16.msra.mxu0 %v8366_v62  ;;  %v8408_v62 = vld [vmem:[#allocation9 + $0x200] sm:$0xff]   ;;  %v8397_v58 = vld [vmem:[#allocation9 + $0x1a8] sm:$0xff]   ;;  %v8404_v26 = vld [vmem:[#allocation9 + $0x1d0] sm:$0xff]  }
 0x20a   : > { %7230 = vmatprep.subr.bf16.mxu0 %v8368_v16  ;;  %v9701_v16 = vld [vmem:[#allocation2 + $0x168] ss:$12 sps:$4 sm:$0xff]   ;;  %v8407_v17 = vld [vmem:[#allocation9 + $0x188] sm:$0xff]  }
 0x20b   : > { %v8419_v24 = vld [vmem:[#allocation2 + $0x48] ss:$12 sps:$4 sm:$0xff]   ;;  %v8415_v21 = vld [vmem:[#allocation2 + $0x50] ss:$12 sps:$4 sm:$0xff]  }
 0x20d   : > { %7231 = vmatpush3.bf16.msra.mxu0 %v8369_v41  ;;  %v8394_v41 = vld [vmem:[#allocation9 + $0x1f0] sm:$0xff]  }
 0x20e   : > { %1857 = vmatmul.mubr.bf16.gmra.mxu1 %v9567_v15  ;;  %8027 = vmatprep.subr.bf16.mxu0 %v8371_v7 }
 0x20f   : > { %1864 = vmatprep.mubr.bf16.mxu1 %v9455_v13 }
 0x210   : > { %7964 = vmatmul.mubr.bf16.gmra.mxu0 %v9607_v63 }
 0x211   : > { %7967 = vmatprep.mubr.bf16.mxu0 %v9610_v28 }
 0x216   : > { %1865 = vmatmul.mubr.bf16.gmra.mxu1 %v9592_v48 }
 0x217   : > { %1872 = vmatprep.mubr.bf16.mxu1 %v9338_v36 }
 0x218   : > { %7968 = vmatmul.mubr.bf16.gmra.mxu0 %v9617_v38 }
 0x219   : > { %7971 = vmatprep.mubr.bf16.mxu0 %v9626_v33 }
 0x21e   : > { %1873 = vmatmul.mubr.bf16.gmra.mxu1 %v9603_v9 }
 0x21f   : > { %1880 = vmatprep.mubr.bf16.mxu1 %v9494_v14 }
 0x220   : > { %7972 = vmatmul.mubr.bf16.gmra.mxu0 %v9633_v0 }
 0x221   : > { %7975 = vmatprep.mubr.bf16.mxu0 %v9642_v47 }
 0x226   : > { %1881 = vmatmul.mubr.bf16.gmra.mxu1 %v9622_v22 }
 0x227   : > { %1888 = vmatprep.mubr.bf16.mxu1 %v9502_v44 }
 0x228   : > { %7976 = vmatmul.mubr.bf16.gmra.mxu0 %v8367_v45  ;;  %v8421_v45 = vld [vmem:[#allocation2 + $0x64] ss:$12 sps:$4 sm:$0xff]  }
 0x229   : > { %2298 = vmatprep.mubr.bf16.mxu0 %v6720_v40  ;;  %v8409_v40 = vld [vmem:[#allocation9 + $0x1c0] sm:$0xff]  }
 0x22e   : > { %1889 = vmatmul.mubr.bf16.gmra.mxu1 %v9638_v27 }
 0x22f   : > { %1896 = vmatprep.mubr.bf16.mxu1 %v9463_v3 }
 0x230   : > { %2299 = vmatmul.mubr.bf16.vlgmr.msra.gmra.mxu0 %v9665_v50 }
 0x231   : > { %2306 = vmatprep.mubr.bf16.mxu0 %v9373_v46  ;;  %8028 = vmatpush3.bf16.msra.mxu0 %v8371_v7  ;;  %v8398_v46 = vld [vmem:[#allocation9 + $0x210] sm:$0xff]  }
 0x232   : > { %8029 = vmatprep.subr.bf16.mxu0 %v8373_v31  ;;  %v8395_v7 = vld [vmem:[#allocation9 + $0x1b0] sm:$0xff]  }
 0x235   : > { %8030 = vmatpush3.bf16.msra.mxu0 %v8373_v31 }
 0x236   : > { %1897 = vmatmul.mubr.bf16.gmra.mxu1 %v9656_v35  ;;  %8031 = vmatprep.subr.bf16.mxu0 %v8380_v55 }
 0x237   : > { %1904 = vmatprep.mubr.bf16.mxu1 %v9322_v23 }
 0x238   : > { %2307 = vmatmul.mubr.bf16.gmra.mxu0 %v9414_v60  ;;  %v8403_v60 = vld [vmem:[#allocation9 + $0x208] sm:$0xff]  }
 0x239   : > { %2314 = vmatprep.mubr.bf16.mxu0 %v9393_v30  ;;  %8032 = vmatpush3.bf16.msra.mxu0 %v8380_v55  ;;  %v9685_v30 = vld [vmem:[#allocation2 + $0x138] ss:$12 sps:$4 sm:$0xff]   ;;  %v8418_v55 = vld [vmem:[#allocation2 + $0x68] ss:$12 sps:$4 sm:$0xff]  }
 0x23a   : > { %8033 = vmatprep.subr.bf16.mxu0 %v8388_v8 }
 0x23d   : > { %8034 = vmatpush3.bf16.msra.mxu0 %v8388_v8 }
 0x23e   : > { %1905 = vmatmul.mubr.bf16.gmra.mxu1 %v9670_v59  ;;  %8035 = vmatprep.subr.bf16.mxu0 %v8393_v49 }
 0x23f   : > { %1912 = vmatprep.mubr.bf16.mxu1 %v9679_v25 }
 0x240   : > { %2315 = vmatmul.mubr.bf16.gmra.mxu0 %v9427_v34  ;;  %v9695_v34 = vld [vmem:[#allocation2 + $0x16c] ss:$12 sps:$4 sm:$0xff]  }
 0x241   : > { %2322 = vmatprep.mubr.bf16.mxu0 %v9395_v61  ;;  %8036 = vmatpush3.bf16.msra.mxu0 %v8393_v49  ;;  %v9693_v61 = vld [vmem:[#allocation2 + $0x150] ss:$12 sps:$4 sm:$0xff]  }
 0x242   : > { %8037 = vmatprep.subr.bf16.mxu0 %v8398_v46 }
 0x245   : > { %8038 = vmatpush3.bf16.msra.mxu0 %v8398_v46 }
 0x246   : > { %1913 = vmatmul.mubr.bf16.gmra.mxu1 %v9685_v30  ;;  %8039 = vmatprep.subr.bf16.mxu0 %v8403_v60 }
 0x247   : > { %1920 = vmatprep.mubr.bf16.mxu1 %v9687_v18 }
 0x248   : > { %2323 = vmatmul.mubr.bf16.gmra.mxu0 %v9442_v19  ;;  %v9703_v19 = vld [vmem:[#allocation2 + $0x184] ss:$12 sps:$4 sm:$0xff]  }
 0x249   : > { %2330 = vmatprep.mubr.bf16.mxu0 %v9401_v2  ;;  %8040 = vmatpush3.bf16.msra.mxu0 %v8403_v60  ;;  %v8390_v2 = vld [vmem:[#allocation2 + $0x8] ss:$12 sps:$4 sm:$0xff]  }
 0x24a   : > { %8041 = vmatprep.subr.bf16.mxu0 %v8408_v62 }
 0x24d   : > { %8042 = vmatpush3.bf16.msra.mxu0 %v8408_v62 }
 0x24e   : > { %1921 = vmatmul.mubr.bf16.gmra.mxu1 %v9693_v61 }
 0x24f   : > { %1928 = vmatprep.mubr.bf16.mxu1 %v9695_v34 }
 0x250   : > { %2331 = vmatmul.mubr.bf16.gmra.mxu0 %v9474_v1  ;;  %v8392_v1 = vld [vmem:[#allocation9 + $0x1b8] sm:$0xff]  }
 0x251   : > { %2338 = vmatprep.mubr.bf16.mxu0 %v9421_v39 }
 0x256   : > { %1929 = vmatmul.mubr.bf16.gmra.mxu1 %v9701_v16 }
 0x257   : > { %1936 = vmatprep.mubr.bf16.mxu1 %v9703_v19 }
 0x258   : > { %2339 = vmatmul.mubr.bf16.gmra.mxu0 %v9526_v10 }
 0x259   : > { %2346 = vmatprep.mubr.bf16.mxu0 %v9450_v6 }
 0x25e   : > { %1937 = vmatmul.mubr.bf16.gmra.mxu1 %v9709_v53 }
 0x25f   : > { %7995 = vmatprep.mubr.bf16.mxu1 %v8390_v2 }
 0x260   : > { %2347 = vmatmul.mubr.bf16.gmra.mxu0 %v9567_v15 }
 0x261   : > { %2354 = vmatprep.mubr.bf16.mxu0 %v9455_v13 }
 0x266   : > { %7996 = vmatmul.mubr.bf16.vlgmr.msra.gmra.mxu1 %v9465_v56  ;;  %v8400_v56 = vld [vmem:[#allocation9 + $0x1a0] sm:$0xff]  }
 0x267   : > { %7353 = vmatpush3.bf16.msra.mxu1 %v8392_v1  ;;  %7999 = vmatprep.mubr.bf16.mxu1 %v9487_v29  ;;  %v8401_v29 = vld [vmem:[#allocation9 + $0x1d8] sm:$0xff]  }
 0x268   : > { %2355 = vmatmul.mubr.bf16.gmra.mxu0 %v9592_v48  ;;  %7354 = vmatprep.subr.bf16.mxu1 %v8394_v41 }
 0x269   : > { %2362 = vmatprep.mubr.bf16.mxu0 %v9338_v36 }
 0x26b   : > { %7355 = vmatpush3.bf16.msra.mxu1 %v8395_v7 }
 0x26c   : > { %7356 = vmatprep.subr.bf16.mxu1 %v8396_v52  ;;  %v8424_v52 = vld [vmem:[#allocation2 + $0x60] ss:$12 sps:$4 sm:$0xff]  }
 0x26e   : > { %8000 = vmatmul.mubr.bf16.gmra.mxu1 %v9496_v57  ;;  %v8405_v57 = vld [vmem:[#allocation9 + $0x190] sm:$0xff]  }
 0x26f   : > { %8003 = vmatprep.mubr.bf16.mxu1 %v9522_v5  ;;  %7357 = vmatpush3.bf16.msra.mxu1 %v8397_v58  ;;  %v8406_v5 = vld [vmem:[#allocation9 + $0x1c8] sm:$0xff]  }
 0x270   : > { %2363 = vmatmul.mubr.bf16.gmra.mxu0 %v9603_v9  ;;  %7358 = vmatprep.subr.bf16.mxu1 %v8399_v51 }
 0x271   : > { %2370 = vmatprep.mubr.bf16.mxu0 %v9494_v14 }
 0x273   : > { %7359 = vmatpush3.bf16.msra.mxu1 %v8400_v56  ;;  %v8420_v56 = vld [vmem:[#allocation2 + $0x80] ss:$12 sps:$4 sm:$0xff]  }
 0x274   : > { %7360 = vmatprep.subr.bf16.mxu1 %v8401_v29 }
 0x276   : > { %8004 = vmatmul.mubr.bf16.gmra.mxu1 %v9543_v12  ;;  %v8410_v12 = vld [vmem:[#allocation9 + $0x180] sm:$0xff]  }
 0x277   : > { %8007 = vmatprep.mubr.bf16.mxu1 %v9571_v11  ;;  %7361 = vmatpush3.bf16.msra.mxu1 %v8402_v43  ;;  %v8413_v11 = vld [vmem:[#allocation2 + $0x34] ss:$12 sps:$4 sm:$0xff]  }
 0x278   : > { %2371 = vmatmul.mubr.bf16.gmra.mxu0 %v9622_v22  ;;  %7362 = vmatprep.subr.bf16.mxu1 %v8404_v26  ;;  %v8423_v26 = vld [vmem:[#allocation2 + $0x98] ss:$12 sps:$4 sm:$0xff]  }
 0x279   : > { %2378 = vmatprep.mubr.bf16.mxu0 %v9502_v44 }
 0x27b   : > { %7363 = vmatpush3.bf16.msra.mxu1 %v8405_v57 }
 0x27c   : > { %7364 = vmatprep.subr.bf16.mxu1 %v8406_v5 }
 0x27e   : > { %8008 = vmatmul.mubr.bf16.gmra.mxu1 %v9578_v37  ;;  %v8411_v37 = vld [vmem:[#allocation2 + $0x30] ss:$12 sps:$4 sm:$0xff]  }
 0x27f   : > { %8011 = vmatprep.mubr.bf16.mxu1 %v9585_v42  ;;  %7365 = vmatpush3.bf16.msra.mxu1 %v8407_v17  ;;  %v8416_v42 = vld [vmem:[#allocation2 + $0x4c] ss:$12 sps:$4 sm:$0xff]  }
 0x280   : > { %2379 = vmatmul.mubr.bf16.gmra.mxu0 %v9638_v27  ;;  %7366 = vmatprep.subr.bf16.mxu1 %v8409_v40 }
 0x281   : > { %2386 = vmatprep.mubr.bf16.mxu0 %v9463_v3 }
 0x283   : > { %7367 = vmatpush3.bf16.msra.mxu1 %v8410_v12 }
 0x286   : > { %8012 = vmatmul.mubr.bf16.gmra.mxu1 %v9594_v20 }
 0x287   : > { %8015 = vmatprep.mubr.bf16.mxu1 %v9607_v63  ;;  %v8414_v63 = vld [vmem:[#allocation2 + $0x38] ss:$12 sps:$4 sm:$0xff]  }
 0x288   : > { %2387 = vmatmul.mubr.bf16.gmra.mxu0 %v9656_v35 }
 0x289   : > { %2394 = vmatprep.mubr.bf16.mxu0 %v9322_v23 }
 0x28e   : > { %8016 = vmatmul.mubr.bf16.gmra.mxu1 %v9610_v28 }
 0x28f   : > { %8019 = vmatprep.mubr.bf16.mxu1 %v9617_v38 }
 0x290   : > { %2395 = vmatmul.mubr.bf16.gmra.mxu0 %v9670_v59 }
 0x291   : > { %2402 = vmatprep.mubr.bf16.mxu0 %v9679_v25 }
 0x296   : > { %8020 = vmatmul.mubr.bf16.gmra.mxu1 %v9626_v33 }
 0x297   : > { %8023 = vmatprep.mubr.bf16.mxu1 %v9633_v0 }
 0x298   : > { %2403 = vmatmul.mubr.bf16.gmra.mxu0 %v9685_v30 }
 0x299   : > { %2410 = vmatprep.mubr.bf16.mxu0 %v9687_v18 }
 0x29e   : > { %8024 = vmatmul.mubr.bf16.gmra.mxu1 %v9642_v47 }
 0x29f   : > { %3133 = vmatprep.mubr.bf16.mxu1 %v8413_v11 }
 0x2a0   : > { %2411 = vmatmul.mubr.bf16.gmra.mxu0 %v9693_v61 }
 0x2a1   : > { %2418 = vmatprep.mubr.bf16.mxu0 %v9695_v34 }
 0x2a2   : > { %v7096_v20 = vpop.f32.mrf.mxu1 }
 0x2a4   : > { %v7097_v28 = vpop.f32.mrf.mxu1 }
 0x2a5   : > { %v7098_v38 = vadd.f32 %v7097_v28, %v7096_v20 }
 0x2a6   : > { %3134 = vmatmul.mubr.bf16.vlgmr.msra.gmra.mxu1 %v8411_v37  ;;  %v7099_v33 = vpop.f32.mrf.mxu1 }
 0x2a7   : > { %3141 = vmatprep.mubr.bf16.mxu1 %v8416_v42 }
 0x2a8   : > { %2419 = vmatmul.mubr.bf16.gmra.mxu0 %v9701_v16  ;;  %v7100_v0 = vpop.f32.mrf.mxu1 }
 0x2a9   : > { %8043 = vmatprep.mubr.bf16.mxu0 %v8414_v63  ;;  %v7101_v47 = vadd.f32 %v7100_v0, %v7099_v33  ;;  %v8426_v0 = vld [vmem:[#allocation2 + $0xc8] ss:$12 sps:$4 sm:$0xff]  }
 0x2aa   : > { %v7102_v31 = vpop.f32.mrf.mxu1 }
 0x2ac   : > { %v7103_v49 = vpop.f32.mrf.mxu1 }
 0x2ad   : > { %v7104_v46 = vadd.f32 %v7103_v49, %v7102_v31 }
 0x2ae   : > { %3142 = vmatmul.mubr.bf16.gmra.mxu1 %v8419_v24  ;;  %v7105_v62 = vpop.f32.mrf.mxu1 }
 0x2af   : > { %3149 = vmatprep.mubr.bf16.mxu1 %v8421_v45 }
 0x2b0   : > { %v7949_v8 = vpop.f32.mrf.mxu0  ;;  %8044 = vmatmul.mubr.bf16.vlgmr.msra.gmra.mxu0 %v8415_v21  ;;  %v7106_v7 = vpop.f32.mrf.mxu1 }
 0x2b1   : > { %8047 = vmatprep.mubr.bf16.mxu0 %v8418_v55  ;;  %v9748_v1 = vadd.f32 %v7949_v8, %v7104_v46  ;;  %v7107_v58 = vadd.f32 %v7106_v7, %v7105_v62  ;;  %v8427_v62 = vld [vmem:[#allocation2 + $0xe0] ss:$12 sps:$4 sm:$0xff]  }
 0x2b2   : > { %v1979_v60 = vpop.f32.mrf.mxu0 }
 0x2b3   : > { %v9746_v2 = vadd.f32 %v7098_v38, %v1979_v60  ;;  %v7108_v29 = vpop.f32.mrf.mxu1  ;;  %v8425_v38 = vld [vmem:[#allocation2 + $0xb0] ss:$12 sps:$4 sm:$0xff]  }
 0x2b4   : > { %v7950_v41 = vpop.f32.mrf.mxu0 }
 0x2b5   : > { %v9752_v57 = vadd.f32 %v7950_v41, %v7107_v58  ;;  %v7109_v17 = vpop.f32.mrf.mxu1  ;;  %v8428_v41 = vld [vmem:[#allocation2 + $0xf8] ss:$12 sps:$4 sm:$0xff]  }
 0x2b6   : > { %v1982_v51 = vpop.f32.mrf.mxu0  ;;  %3150 = vmatmul.mubr.bf16.gmra.mxu1 %v8424_v52  ;;  %v7110_v40 = vadd.f32 %v7109_v17, %v7108_v29 }
 0x2b7   : > { %v9750_v43 = vadd.f32 %v7101_v47, %v1982_v51  ;;  %3157 = vmatprep.mubr.bf16.mxu1 %v9421_v39  ;;  %v7111_v11 = vpop.f32.mrf.mxu1 }
 0x2b8   : > { %v7953_v5 = vpop.f32.mrf.mxu0  ;;  %8048 = vmatmul.mubr.bf16.gmra.mxu0 %v8420_v56 }
 0x2b9   : > { %8051 = vmatprep.mubr.bf16.mxu0 %v8423_v26  ;;  %v7112_v20 = vpop.f32.mrf.mxu1 }
 0x2ba   : > { %v1995_v12 = vpop.f32.mrf.mxu0  ;;  %v7113_v63 = vadd.f32 %v7112_v20, %v7111_v11 }
 0x2bb   : > { %v9755_v37 = vadd.f32 %v7110_v40, %v1995_v12  ;;  %v8429_v40 = vld [vmem:[#allocation2 + $0x110] ss:$12 sps:$4 sm:$0xff]  }
 0x2bc   : > { %v7954_v42 = vpop.f32.mrf.mxu0 }
 0x2be   : > { %v1998_v28 = vpop.f32.mrf.mxu0  ;;  %v7114_v33 = vpop.f32.mrf.mxu1  ;;  %3158 = vmatmul.mubr.bf16.gmra.mxu1 %v9526_v10 }
 0x2bf   : > { %v9758_v24 = vadd.f32 %v7113_v63, %v1998_v28  ;;  %3165 = vmatprep.mubr.bf16.mxu1 %v9450_v6 }
 0x2c0   : > { %v7957_v39 = vpop.f32.mrf.mxu0  ;;  %8052 = vmatmul.mubr.bf16.gmra.mxu0 %v8425_v38  ;;  %v7115_v47 = vpop.f32.mrf.mxu1 }
 0x2c1   : > { %8055 = vmatprep.mubr.bf16.mxu0 %v8426_v0  ;;  %v7116_v45 = vadd.f32 %v7115_v47, %v7114_v33 }
 0x2c2   : > { %v2011_v21 = vpop.f32.mrf.mxu0  ;;  %v7117_v31 = vpop.f32.mrf.mxu1 }
 0x2c3   : > { %v9761_v55 = vadd.f32 %v7953_v5, %v7116_v45 }
 0x2c4   : > { %v7958_v8 = vpop.f32.mrf.mxu0  ;;  %v7118_v49 = vpop.f32.mrf.mxu1 }
 0x2c5   : > { %v7119_v46 = vadd.f32 %v7118_v49, %v7117_v31 }
 0x2c6   : > { %v2014_v60 = vpop.f32.mrf.mxu0  ;;  %v7120_v10 = vpop.f32.mrf.mxu1  ;;  %3166 = vmatmul.mubr.bf16.gmra.mxu1 %v9567_v15 }
 0x2c7   : > { %v9764_v7 = vadd.f32 %v7954_v42, %v7119_v46  ;;  %3173 = vmatprep.mubr.bf16.mxu1 %v9455_v13  ;;  %v8430_v13 = vld [vmem:[#allocation2 + $0x128] ss:$12 sps:$4 sm:$0xff]  }
 0x2c8   : > { %v9767_v6 = vpop.f32.mrf.mxu0  ;;  %8056 = vmatmul.mubr.bf16.gmra.mxu0 %v8427_v62  ;;  %v7121_v52 = vpop.f32.mrf.mxu1  ;;  %v8436_v46 = vld [vmem:[#allocation11 + $0x138] sm:$0xff]  }
 0x2c9   : > { %8059 = vmatprep.mubr.bf16.mxu0 %v8428_v41  ;;  %v7122_v58 = vadd.f32 %v7121_v52, %v7120_v10  ;;  %v8438_v10 = vld [vmem:[#allocation11 + $0x178] sm:$0xff]   ;;  %7488 = vmatprep.subr.bf16.mxu0 %v8436_v46 }
 0x2ca   : > { %v2027_v51 = vpop.f32.mrf.mxu0  ;;  %v7123_v56 = vpop.f32.mrf.mxu1  ;;  %8075 = vmatprep.subr.bf16.mxu1 %v8438_v10 }
 0x2cb   : > { %v9769_v29 = vadd.f32 %v7122_v58, %v2011_v21  ;;  %v8431_v21 = vld [vmem:[#allocation2 + $0x140] ss:$12 sps:$4 sm:$0xff]   ;;  %8076 = vmatpush3.bf16.msra.mxu1 %v8438_v10  ;;  %v8441_v10 = vld [vmem:[#allocation11 + $0x128] sm:$0xff]  }
 0x2cc   : > { %v9771_v26 = vpop.f32.mrf.mxu0  ;;  %v7124_v5 = vpop.f32.mrf.mxu1 }
 0x2cd   : > { %v7125_v17 = vadd.f32 %v7124_v5, %v7123_v56 }
 0x2ce   : > { %v2030_v15 = vpop.f32.mrf.mxu0  ;;  %v7126_v12 = vpop.f32.mrf.mxu1  ;;  %3174 = vmatmul.mubr.bf16.gmra.mxu1 %v9592_v48 }
 0x2cf   : > { %v9774_v11 = vadd.f32 %v7125_v17, %v2014_v60  ;;  %3181 = vmatprep.mubr.bf16.mxu1 %v9338_v36  ;;  %v8432_v36 = vld [vmem:[#allocation2 + $0x158] ss:$12 sps:$4 sm:$0xff]   ;;  %v8437_v60 = vld [vmem:[#allocation11 + $0xf8] sm:$0xff]   ;;  %v8433_v17 = vld [vmem:[#allocation2 + $0x170] ss:$12 sps:$4 sm:$0xff]  }
 0x2d0   : > { %v9777_v42 = vpop.f32.mrf.mxu0  ;;  %8060 = vmatmul.mubr.bf16.gmra.mxu0 %v8429_v40  ;;  %v7127_v20 = vpop.f32.mrf.mxu1 }
 0x2d1   : > { %8063 = vmatprep.mubr.bf16.mxu0 %v8430_v13  ;;  %v7128_v63 = vadd.f32 %v7127_v20, %v7126_v12  ;;  %7489 = vmatpush3.bf16.msra.mxu0 %v8437_v60  ;;  %v8434_v12 = vld [vmem:[#allocation2 + $0x188] ss:$12 sps:$4 sm:$0xff]   ;;  %v8439_v20 = vld [vmem:[#allocation11 + $0x130] sm:$0xff]  }
 0x2d2   : > { %v9779_v28 = vpop.f32.mrf.mxu0  ;;  %v7129_v38 = vpop.f32.mrf.mxu1  ;;  %7490 = vmatprep.subr.bf16.mxu0 %v8439_v20 }
 0x2d3   : > { %v9781_v33 = vadd.f32 %v7957_v39, %v7128_v63  ;;  %v8440_v63 = vld [vmem:[#allocation11 + $0xf0] sm:$0xff]  }
 0x2d4   : > { %v9783_v0 = vpop.f32.mrf.mxu0  ;;  %v7130_v47 = vpop.f32.mrf.mxu1 }
 0x2d5   : > { %v7131_v48 = vadd.f32 %v7130_v47, %v7129_v38  ;;  %7491 = vmatpush3.bf16.msra.mxu0 %v8440_v63 }
 0x2d6   : > { %v9785_v45 = vpop.f32.mrf.mxu0  ;;  %v7132_v31 = vpop.f32.mrf.mxu1  ;;  %3182 = vmatmul.mubr.bf16.gmra.mxu1 %v9603_v9  ;;  %7492 = vmatprep.subr.bf16.mxu0 %v8441_v10  ;;  %v8445_v10 = vld [vmem:[#allocation11 + $0xe0] sm:$0xff]  }
 0x2d7   : > { %v9788_v49 = vadd.f32 %v7958_v8, %v7131_v48  ;;  %3189 = vmatprep.mubr.bf16.mxu1 %v9494_v14 }
 0x2d8   : > { %v9791_v62 = vpop.f32.mrf.mxu0  ;;  %8064 = vmatmul.mubr.bf16.gmra.mxu0 %v8431_v21  ;;  %v7133_v39 = vpop.f32.mrf.mxu1 }
 0x2d9   : > { %8067 = vmatprep.mubr.bf16.mxu0 %v8432_v36  ;;  %v7134_v41 = vadd.f32 %v7133_v39, %v7132_v31 }
 0x2da   : > { %v9793_v52 = vpop.f32.mrf.mxu0  ;;  %v7135_v58 = vpop.f32.mrf.mxu1 }
 0x2db   : > { %v9795_v9 = vadd.f32 %v7134_v41, %v2027_v51  ;;  %v8442_v41 = vld [vmem:[#allocation11 + $0xe8] sm:$0xff]  }
 0x2dc   : > { %v9797_v8 = vpop.f32.mrf.mxu0  ;;  %v7136_v14 = vpop.f32.mrf.mxu1  ;;  %7493 = vmatpush3.bf16.msra.mxu0 %v8442_v41 }
 0x2dd   : > { %v7137_v56 = vadd.f32 %v7136_v14, %v7135_v58  ;;  %v8443_v14 = vld [vmem:[#allocation11 + $0x170] sm:$0xff]  }
 0x2de   : > { %v9799_v5 = vpop.f32.mrf.mxu0  ;;  %v7138_v40 = vpop.f32.mrf.mxu1  ;;  %3190 = vmatmul.mubr.bf16.gmra.mxu1 %v9622_v22  ;;  %8077 = vmatprep.subr.bf16.mxu1 %v8443_v14 }
 0x2df   : > { %v9802_v13 = vadd.f32 %v7137_v56, %v2030_v15  ;;  %3197 = vmatprep.mubr.bf16.mxu1 %v9502_v44  ;;  %v8435_v44 = vld [vmem:[#allocation2 + $0x1a0] ss:$12 sps:$4 sm:$0xff]   ;;  %8078 = vmatpush3.bf16.msra.mxu1 %v8443_v14 }
 0x2e0   : > { %v9805_v51 = vpop.f32.mrf.mxu0  ;;  %8068 = vmatmul.mubr.bf16.gmra.mxu0 %v8433_v17  ;;  %v7139_v38 = vpop.f32.mrf.mxu1 }
 0x2e1   : > { %8071 = vmatprep.mubr.bf16.mxu0 %v8434_v12  ;;  %v7140_v47 = vadd.f32 %v7139_v38, %v7138_v40 }
 0x2e2   : > { %v9807_v48 = vpop.f32.mrf.mxu0  ;;  %v7141_v21 = vpop.f32.mrf.mxu1 }
 0x2e3   : > { %v9810_v22 = vadd.f32 %v9767_v6, %v7140_v47 }
 0x2e4   : > { %v9812_v15 = vpop.f32.mrf.mxu0  ;;  %v7142_v31 = vpop.f32.mrf.mxu1 }
 0x2e5   : > { %v7143_v36 = vadd.f32 %v7142_v31, %v7141_v21 }
 0x2e6   : > { %v9814_v46 = vpop.f32.mrf.mxu0  ;;  %v7144_v60 = vpop.f32.mrf.mxu1  ;;  %3198 = vmatmul.mubr.bf16.gmra.mxu1 %v9638_v27 }
 0x2e7   : > { %v9818_v39 = vadd.f32 %v9771_v26, %v7143_v36  ;;  %3205 = vmatprep.mubr.bf16.mxu1 %v9463_v3 }
 0x2e8   : > { %v9821_v58 = vpop.f32.mrf.mxu0  ;;  %v7145_v6 = vpop.f32.mrf.mxu1  ;;  %8072 = vmatmul.mubr.bf16.gmra.mxu0 %v8435_v44 }
 0x2e9   : > { %v7146_v56 = vadd.f32 %v7145_v6, %v7144_v60  ;;  %v8444_v60 = vld [vmem:[#allocation11 + $0x120] sm:$0xff]  }
 0x2ea   : > { %v9823_v17 = vpop.f32.mrf.mxu0  ;;  %v7147_v40 = vpop.f32.mrf.mxu1  ;;  %7494 = vmatprep.subr.bf16.mxu0 %v8444_v60 }
 0x2eb   : > { %v9826_v27 = vadd.f32 %v7146_v56, %v9779_v28  ;;  %7495 = vmatpush3.bf16.msra.mxu0 %v8445_v10 }
 0x2ec   : > { %v9828_v26 = vpop.f32.mrf.mxu0  ;;  %v7148_v3 = vpop.f32.mrf.mxu1 }
 0x2ed   : > { %v9830_v12 = vadd.f32 %v7148_v3, %v7147_v40 }
 0x2ee   : > { %v9832_v20 = vpop.f32.mrf.mxu0  ;;  %v7150_v63 = vpop.f32.mrf.mxu1  ;;  %3206 = vmatmul.mubr.bf16.gmra.mxu1 %v9656_v35 }
 0x2ef   : > { %3213 = vmatprep.mubr.bf16.mxu1 %v9322_v23 }
 0x2f0   : > { %v7232_v38 = vpop.f32.mrf.mxu0  ;;  %v7151_v47 = vpop.f32.mrf.mxu1 }
 0x2f1   : > { %v7152_v21 = vadd.f32 %v7151_v47, %v7150_v63 }
 0x2f2   : > { %v7233_v31 = vpop.f32.mrf.mxu0  ;;  %v7153_v44 = vpop.f32.mrf.mxu1 }
 0x2f3   : > { %v7234_v28 = vadd.f32 %v7233_v31, %v7232_v38  ;;  %v9837_v36 = vadd.f32 %v9777_v42, %v7152_v21 }
 0x2f4   : > { %v7235_v41 = vpop.f32.mrf.mxu0  ;;  %v7154_v6 = vpop.f32.mrf.mxu1 }
 0x2f5   : > { %v7155_v14 = vadd.f32 %v7154_v6, %v7153_v44  ;;  %v9840_v56 = vadd.f32 %v7234_v28, %v9746_v2 }
 0x2f6   : > { %v7236_v35 = vpop.f32.mrf.mxu0  ;;  %v7156_v23 = vpop.f32.mrf.mxu1  ;;  %3214 = vmatmul.mubr.bf16.gmra.mxu1 %v9670_v59 }
 0x2f7   : > { %v7237_v40 = vadd.f32 %v7236_v35, %v7235_v41  ;;  %v9844_v3 = vadd.f32 %v9783_v0, %v7155_v14  ;;  %3221 = vmatprep.mubr.bf16.mxu1 %v9679_v25 }
 0x2f8   : > { %v7238_v42 = vpop.f32.mrf.mxu0  ;;  %v7157_v63 = vpop.f32.mrf.mxu1 }
 0x2f9   : > { %v7158_v38 = vadd.f32 %v7157_v63, %v7156_v23  ;;  %v9848_v47 = vadd.f32 %v7237_v40, %v9750_v43 }
 0x2fa   : > { %v7239_v2 = vpop.f32.mrf.mxu0  ;;  %v7159_v21 = vpop.f32.mrf.mxu1 }
 0x2fb   : > { %v7240_v31 = vadd.f32 %v7239_v2, %v7238_v42  ;;  %v9851_v44 = vadd.f32 %v7158_v38, %v9793_v52 }
 0x2fc   : > { %v7241_v59 = vpop.f32.mrf.mxu0  ;;  %v7160_v28 = vpop.f32.mrf.mxu1 }
 0x2fd   : > { %v9853_v60 = vadd.f32 %v7160_v28, %v7159_v21  ;;  %v9856_v0 = vadd.f32 %v7240_v31, %v9748_v1 }
 0x2fe   : > { %v7242_v25 = vpop.f32.mrf.mxu0  ;;  %v7162_v10 = vpop.f32.mrf.mxu1  ;;  %3222 = vmatmul.mubr.bf16.gmra.mxu1 %v9685_v30 }
 0x2ff   : > { %v7243_v41 = vadd.f32 %v7242_v25, %v7241_v59  ;;  %3229 = vmatprep.mubr.bf16.mxu1 %v9687_v18 }
 0x300   : > { %v7244_v43 = vpop.f32.mrf.mxu0  ;;  %v7163_v6 = vpop.f32.mrf.mxu1 }
 0x301   : > { %v7164_v14 = vadd.f32 %v7163_v6, %v7162_v10  ;;  %v9861_v52 = vadd.f32 %v7243_v41, %v9752_v57  ;;  %v8447_v41 = vld [vmem:[#allocation11 + $0xd8] sm:$0xff]  }
 0x302   : > { %v7245_v35 = vpop.f32.mrf.mxu0  ;;  %v7165_v23 = vpop.f32.mrf.mxu1 }
 0x303   : > { %v7246_v40 = vadd.f32 %v7245_v35, %v7244_v43  ;;  %v9864_v42 = vadd.f32 %v9791_v62, %v7164_v14  ;;  %v8448_v43 = vld [vmem:[#allocation11 + $0x168] sm:$0xff]  }
 0x304   : > { %v7247_v1 = vpop.f32.mrf.mxu0  ;;  %v7166_v63 = vpop.f32.mrf.mxu1  ;;  %8079 = vmatprep.subr.bf16.mxu1 %v8448_v43 }
 0x305   : > { %v7167_v38 = vadd.f32 %v7166_v63, %v7165_v23  ;;  %v9867_v30 = vadd.f32 %v7246_v40, %v9755_v37  ;;  %v8446_v37 = vld [vmem:[#allocation11 + $0x118] sm:$0xff]   ;;  %8080 = vmatpush3.bf16.msra.mxu1 %v8448_v43 }
 0x306   : > { %v7248_v2 = vpop.f32.mrf.mxu0  ;;  %v7168_v18 = vpop.f32.mrf.mxu1  ;;  %3230 = vmatmul.mubr.bf16.gmra.mxu1 %v9693_v61  ;;  %7496 = vmatprep.subr.bf16.mxu0 %v8446_v37  ;;  %v8451_v37 = vld [vmem:[#allocation11 + $0x108] sm:$0xff]  }
 0x307   : > { %v7249_v21 = vadd.f32 %v7248_v2, %v7247_v1  ;;  %v9871_v57 = vadd.f32 %v9797_v8, %v7167_v38  ;;  %3237 = vmatprep.mubr.bf16.mxu1 %v9695_v34  ;;  %v8449_v8 = vld [vmem:[#allocation11 + $0x110] sm:$0xff]   ;;  %7497 = vmatpush3.bf16.msra.mxu0 %v8447_v41  ;;  %v8452_v41 = vld [vmem:[#allocation11 + $0xc8] sm:$0xff]  }
 0x308   : > { %v7250_v31 = vpop.f32.mrf.mxu0  ;;  %v7169_v59 = vpop.f32.mrf.mxu1  ;;  %7498 = vmatprep.subr.bf16.mxu0 %v8449_v8 }
 0x309   : > { %v7170_v62 = vadd.f32 %v7169_v59, %v7168_v18  ;;  %v9875_v28 = vadd.f32 %v7249_v21, %v9758_v24  ;;  %v8450_v24 = vld [vmem:[#allocation11 + $0xd0] sm:$0xff]  }
 0x30a   : > { %v7251_v25 = vpop.f32.mrf.mxu0  ;;  %v9877_v10 = vpop.f32.mrf.mxu1 }
 0x30b   : > { %v7252_v6 = vadd.f32 %v7251_v25, %v7250_v31  ;;  %v9880_v61 = vadd.f32 %v7170_v62, %v9807_v48  ;;  %7499 = vmatpush3.bf16.msra.mxu0 %v8450_v24 }
 0x30c   : > { %v7253_v14 = vpop.f32.mrf.mxu0  ;;  %v9882_v35 = vpop.f32.mrf.mxu1  ;;  %7500 = vmatprep.subr.bf16.mxu0 %v8451_v37 }
 0x30d   : > { %v9885_v34 = vadd.f32 %v7252_v6, %v9761_v55 }
 0x30e   : > { %v7254_v23 = vpop.f32.mrf.mxu0  ;;  %v7174_v40 = vpop.f32.mrf.mxu1  ;;  %3238 = vmatmul.mubr.bf16.gmra.mxu1 %v9701_v16  ;;  %v6792_v16 = vcombine.high %v9661_v4, %v9661_v4 }
 0x30f   : > { %v7255_v1 = vadd.f32 %v7254_v23, %v7253_v14  ;;  %3245 = vmatprep.mubr.bf16.mxu1 %v9703_v19  ;;  %7501 = vmatpush3.bf16.msra.mxu0 %v8452_v41 }
 0x310   : > { %v7256_v48 = vpop.f32.mrf.mxu0  ;;  %v7175_v63 = vpop.f32.mrf.mxu1 }
 0x311   : > { %v7176_v38 = vadd.f32 %v7175_v63, %v7174_v40  ;;  %v9890_v2 = vadd.f32 %v7255_v1, %v9764_v7  ;;  %v8453_v7 = vld [vmem:[#allocation11 + $0x160] sm:$0xff]  }
 0x312   : > { %v7257_v55 = vpop.f32.mrf.mxu0  ;;  %v7177_v18 = vpop.f32.mrf.mxu1  ;;  %8081 = vmatprep.subr.bf16.mxu1 %v8453_v7 }
 0x313   : > { %v7258_v21 = vadd.f32 %v7257_v55, %v7256_v48  ;;  %v9893_v31 = vadd.f32 %v9805_v51, %v7176_v38  ;;  %8082 = vmatpush3.bf16.msra.mxu1 %v8453_v7  ;;  %v8454_v38 = vld [vmem:[#allocation11 + $0x100] sm:$0xff]   ;;  %v8455_v55 = vld [vmem:[#allocation11 + $0x158] sm:$0xff]  }
 0x314   : > { %v7259_v59 = vpop.f32.mrf.mxu0  ;;  %v7178_v62 = vpop.f32.mrf.mxu1  ;;  %7502 = vmatprep.subr.bf16.mxu0 %v8454_v38  ;;  %8083 = vmatprep.subr.bf16.mxu1 %v8455_v55 }
 0x315   : > { %v7179_v25 = vadd.f32 %v7178_v62, %v7177_v18  ;;  %v9898_v19 = vadd.f32 %v7258_v21, %v9769_v29  ;;  %v8456_v18 = vld [vmem:[#allocation11 + $0xc0] sm:$0xff]  }
 0x316   : > { %v7260_v43 = vpop.f32.mrf.mxu0  ;;  %v7180_v6 = vpop.f32.mrf.mxu1  ;;  %3246 = vmatmul.mubr.bf16.gmra.mxu1 %v9709_v53  ;;  %7503 = vmatpush3.bf16.msra.mxu0 %v8456_v18 }
 0x317   : > { %v7261_v8 = vadd.f32 %v7260_v43, %v7259_v59  ;;  %v9902_v51 = vadd.f32 %v9812_v15, %v7179_v25  ;;  %3253 = vmatprep.mubr.bf16.mxu1 %v6792_v16  ;;  %v8457_v16 = vld [vmem:[#allocation11 + $0x150] sm:$0xff]   ;;  %8084 = vmatpush3.bf16.msra.mxu1 %v8455_v55 }
 0x318   : > { %v7262_v4 = vpop.f32.mrf.mxu0  ;;  %v7181_v14 = vpop.f32.mrf.mxu1  ;;  %8085 = vmatprep.subr.bf16.mxu1 %v8457_v16 }
 0x319   : > { %v7182_v24 = vadd.f32 %v7181_v14, %v7180_v6  ;;  %v9905_v29 = vadd.f32 %v7261_v8, %v9774_v11  ;;  %v8458_v6 = vld [vmem:[#allocation11 + $0x148] sm:$0xff]  }
 0x31a   : > { %v7263_v23 = vpop.f32.mrf.mxu0  ;;  %v9907_v40 = vpop.f32.mrf.mxu1 }
 0x31b   : > { %v7264_v1 = vadd.f32 %v7263_v23, %v7262_v4  ;;  %v9910_v53 = vadd.f32 %v7182_v24, %v9823_v17  ;;  %8086 = vmatpush3.bf16.msra.mxu1 %v8457_v16 }
 0x31c   : > { %v7265_v15 = vpop.f32.mrf.mxu0  ;;  %v9912_v48 = vpop.f32.mrf.mxu1  ;;  %8087 = vmatprep.subr.bf16.mxu1 %v8458_v6 }
 0x31d   : > { %v9915_v63 = vadd.f32 %v7264_v1, %v9781_v33 }
 0x31e   : > { %v7266_v21 = vpop.f32.mrf.mxu0  ;;  %v7186_v11 = vpop.f32.mrf.mxu1  ;;  %3254 = vmatmul.mubr.bf16.gmra.mxu1 %v9665_v50  ;;  %v9922_v50 = vld [vmem:[#allocation11 + $0xb8] sm:$0xff]  }
 0x31f   : > { %v7267_v59 = vadd.f32 %v7266_v21, %v7265_v15  ;;  %8123 = vmatprep.subr.bf16.mxu0 %v9922_v50  ;;  %8088 = vmatpush3.bf16.msra.mxu1 %v8458_v6 }
 0x320   : > { %v7268_v62 = vpop.f32.mrf.mxu0  ;;  %v7187_v17 = vpop.f32.mrf.mxu1 }
 0x321   : > { %v7188_v25 = vadd.f32 %v7187_v17, %v7186_v11  ;;  %v2344_v37 = vadd.f32 %v7267_v59, %v9788_v49  ;;  %v8461_v49 = vld [vmem:[#allocation11 + $0x140] sm:$0xff]  }
 0x322   : > { %v7269_v33 = vpop.f32.mrf.mxu0  ;;  %v7189_v41 = vpop.f32.mrf.mxu1  ;;  %8089 = vmatprep.subr.bf16.mxu1 %v8461_v49 }
 0x323   : > { %v7270_v7 = vadd.f32 %v7269_v33, %v7268_v62  ;;  %v9920_v43 = vadd.f32 %v9821_v58, %v7188_v25  ;;  %8090 = vmatpush3.bf16.msra.mxu1 %v8461_v49 }
 0x324   : > { %v7271_v8 = vpop.f32.mrf.mxu0  ;;  %v7190_v4 = vpop.f32.mrf.mxu1 }
 0x325   : > { %v7191_v14 = vadd.f32 %v7190_v4, %v7189_v41  ;;  %v2349_v24 = vadd.f32 %v7270_v7, %v9795_v9 }
 0x326   : > { %v7272_v23 = vpop.f32.mrf.mxu0  ;;  %v7997_v1 = vpop.f32.mrf.mxu1 }
 0x327   : > { %v7273_v15 = vadd.f32 %v7272_v23, %v7271_v8  ;;  %v9927_v38 = vadd.f32 %v9828_v26, %v7191_v14  ;;  %v9930_v58 = vadd.f32 %v7997_v1, %v9856_v0 }
 0x328   : > { %v7274_v55 = vpop.f32.mrf.mxu0  ;;  %v2461_v18 = vpop.f32.mrf.mxu1 }
 0x329   : > { %v9933_v21 = vadd.f32 %v2461_v18, %v9840_v56  ;;  %v9936_v9 = vadd.f32 %v7273_v15, %v9802_v13 }
 0x32a   : > { %v7275_v11 = vpop.f32.mrf.mxu0  ;;  %v7998_v16 = vpop.f32.mrf.mxu1 }
 0x32b   : > { %v7276_v59 = vadd.f32 %v7275_v11, %v7274_v55  ;;  %v9939_v62 = vadd.f32 %v7998_v16, %v9861_v52  ;;  %v2047_v55 = vadd.f32 %v9830_v12, %v9785_v45 }
 0x32c   : > { %v7277_v26 = vpop.f32.mrf.mxu0  ;;  %v9941_v17 = vpop.f32.mrf.mxu1 }
 0x32d   : > { %v2357_v0 = vadd.f32 %v7276_v59, %v9810_v22 }
 0x32e   : > { %v7278_v25 = vpop.f32.mrf.mxu0  ;;  %v8001_v33 = vpop.f32.mrf.mxu1 }
 0x32f   : > { %v7279_v56 = vadd.f32 %v7278_v25, %v7277_v26  ;;  %v9945_v41 = vadd.f32 %v8001_v33, %v9885_v34 }
 0x330   : > { %v7280_v13 = vpop.f32.mrf.mxu0  ;;  %v2477_v7 = vpop.f32.mrf.mxu1 }
 0x331   : > { %v9948_v6 = vadd.f32 %v2477_v7, %v9867_v30  ;;  %v2360_v52 = vadd.f32 %v7279_v56, %v9818_v39 }
 0x332   : > { %v7281_v8 = vpop.f32.mrf.mxu0  ;;  %v8002_v4 = vpop.f32.mrf.mxu1 }
 0x333   : > { %v7282_v14 = vadd.f32 %v7281_v8, %v7280_v13  ;;  %v9952_v49 = vadd.f32 %v8002_v4, %v9890_v2 }
 0x334   : > { %v7283_v22 = vpop.f32.mrf.mxu0  ;;  %v9954_v23 = vpop.f32.mrf.mxu1 }
 0x335   : > { %v2365_v1 = vadd.f32 %v7282_v14, %v9826_v27 }
 0x336   : > { %v7284_v34 = vpop.f32.mrf.mxu0  ;;  %v8005_v15 = vpop.f32.mrf.mxu1 }
 0x337   : > { %v7285_v30 = vadd.f32 %v7284_v34, %v7283_v22  ;;  %v9960_v18 = vadd.f32 %v8005_v15, %v9915_v63 }
 0x338   : > { %v7286_v39 = vpop.f32.mrf.mxu0  ;;  %v2493_v11 = vpop.f32.mrf.mxu1 }
 0x339   : > { %v9963_v16 = vadd.f32 %v2493_v11, %v9898_v19  ;;  %v9965_v2 = vadd.f32 %v7285_v30, %v2047_v55 }
 0x33a   : > { %v7287_v59 = vpop.f32.mrf.mxu0  ;;  %v8006_v26 = vpop.f32.mrf.mxu1 }
 0x33b   : > { %v7288_v25 = vadd.f32 %v7287_v59, %v7286_v39  ;;  %v9967_v27 = vadd.f32 %v8006_v26, %v2344_v37 }
 0x33c   : > { %v7289_v33 = vpop.f32.mrf.mxu0  ;;  %v9969_v56 = vpop.f32.mrf.mxu1 }
 0x33d   : > { %v2373_v45 = vadd.f32 %v7288_v25, %v9837_v36 }
 0x33e   : > { %v7290_v12 = vpop.f32.mrf.mxu0  ;;  %v8009_v63 = vpop.f32.mrf.mxu1 }
 0x33f   : > { %v7291_v13 = vadd.f32 %v7290_v12, %v7289_v33  ;;  %v9972_v7 = vadd.f32 %v8009_v63, %v2357_v0  ;;  %v2063_v0 = vadd.f32 %v9853_v60, %v9799_v5 }
 0x340   : > { %v7292_v8 = vpop.f32.mrf.mxu0  ;;  %v2509_v19 = vpop.f32.mrf.mxu1 }
 0x341   : > { %v9974_v4 = vadd.f32 %v2509_v19, %v2349_v24  ;;  %v2376_v14 = vadd.f32 %v7291_v13, %v9844_v3 }
 0x342   : > { %v7293_v22 = vpop.f32.mrf.mxu0  ;;  %v8010_v34 = vpop.f32.mrf.mxu1 }
 0x343   : > { %v7294_v37 = vadd.f32 %v7293_v22, %v7292_v8  ;;  %v9977_v15 = vadd.f32 %v8010_v34, %v2360_v52 }
 0x344   : > { %v7295_v55 = vpop.f32.mrf.mxu0  ;;  %v9979_v30 = vpop.f32.mrf.mxu1 }
 0x345   : > { %v2381_v36 = vadd.f32 %v7294_v37, %v9851_v44 }
 0x346   : > { %v7296_v39 = vpop.f32.mrf.mxu0  ;;  %v8013_v11 = vpop.f32.mrf.mxu1 }
 0x347   : > { %v7297_v59 = vadd.f32 %v7296_v39, %v7295_v55  ;;  %v9984_v24 = vadd.f32 %v8013_v11, %v2373_v45 }
 0x348   : > { %v7298_v26 = vpop.f32.mrf.mxu0  ;;  %v2525_v3 = vpop.f32.mrf.mxu1 }
 0x349   : > { %v9986_v25 = vadd.f32 %v2525_v3, %v2365_v1  ;;  %v9988_v33 = vadd.f32 %v7297_v59, %v2063_v0 }
 0x34a   : > { %v7299_v52 = vpop.f32.mrf.mxu0  ;;  %v8014_v12 = vpop.f32.mrf.mxu1 }
 0x34b   : > { %v7300_v63 = vadd.f32 %v7299_v52, %v7298_v26  ;;  %v9990_v13 = vadd.f32 %v8014_v12, %v2376_v14  ;;  %v7173_v14 = vadd.f32 %v9882_v35, %v9877_v10 }
 0x34c   : > { %v7301_v44 = vpop.f32.mrf.mxu0  ;;  %v9992_v8 = vpop.f32.mrf.mxu1 }
 0x34d   : > { %v2389_v19 = vadd.f32 %v7300_v63, %v9864_v42 }
 0x34e   : > { %v7302_v5 = vpop.f32.mrf.mxu0  ;;  %v8017_v60 = vpop.f32.mrf.mxu1 }
 0x34f   : > { %v7303_v45 = vadd.f32 %v7302_v5, %v7301_v44  ;;  %v9995_v22 = vadd.f32 %v8017_v60, %v2389_v19 }
 0x350   : > { %v7304_v34 = vpop.f32.mrf.mxu0  ;;  %v2541_v1 = vpop.f32.mrf.mxu1 }
 0x351   : > { %v9997_v37 = vadd.f32 %v2541_v1, %v2381_v36  ;;  %v2392_v55 = vadd.f32 %v7303_v45, %v9871_v57  ;;  %v2079_v36 = vadd.f32 %v7173_v14, %v9814_v46 }
 0x352   : > { %v7305_v39 = vpop.f32.mrf.mxu0  ;;  %v8018_v11 = vpop.f32.mrf.mxu1 }
 0x353   : > { %v7306_v0 = vadd.f32 %v7305_v39, %v7304_v34  ;;  %v10002_v59 = vadd.f32 %v8018_v11, %v2392_v55 }
 0x354   : > { %v7307_v42 = vpop.f32.mrf.mxu0  ;;  %v10004_v26 = vpop.f32.mrf.mxu1 }
 0x355   : > { %v2397_v3 = vadd.f32 %v7306_v0, %v9880_v61 }
 0x356   : > { %v7308_v52 = vpop.f32.mrf.mxu0  ;;  %v8021_v12 = vpop.f32.mrf.mxu1 }
 0x357   : > { %v7309_v63 = vadd.f32 %v7308_v52, %v7307_v42  ;;  %v7185_v52 = vadd.f32 %v9912_v48, %v9907_v40 }
 0x358   : > { %v7310_v44 = vpop.f32.mrf.mxu0  ;;  %v2557_v57 = vpop.f32.mrf.mxu1 }
 0x359   : > { %v10008_v19 = vadd.f32 %v2557_v57, %v2397_v3  ;;  %v10010_v5 = vadd.f32 %v7309_v63, %v2079_v36 }
 0x35a   : > { %v7311_v10 = vpop.f32.mrf.mxu0  ;;  %v8022_v35 = vpop.f32.mrf.mxu1 }
 0x35b   : > { %v7312_v60 = vadd.f32 %v7311_v10, %v7310_v44  ;;  %v8474_v44 = vld [vmem:[#allocation11 + $0x78] sm:$0xff]  }
 0x35c   : > { %v7313_v45 = vpop.f32.mrf.mxu0  ;;  %v10012_v34 = vpop.f32.mrf.mxu1  ;;  %7624 = vmatprep.subr.bf16.mxu1 %v8474_v44 }
 0x35d   : > { %v2405_v1 = vadd.f32 %v7312_v60, %v9893_v31 }
 0x35e   : > { %v7314_v61 = vpop.f32.mrf.mxu0  ;;  %v8025_v55 = vpop.f32.mrf.mxu1 }
 0x35f   : > { %v7315_v39 = vadd.f32 %v7314_v61, %v7313_v45  ;;  %v10015_v11 = vadd.f32 %v8021_v12, %v2405_v1  ;;  %v2095_v45 = vadd.f32 %v7185_v52, %v9832_v20 }
 0x360   : > { %v7316_v46 = vpop.f32.mrf.mxu0  ;;  %v2573_v14 = vpop.f32.mrf.mxu1 }
 0x361   : > { %v2408_v0 = vadd.f32 %v7315_v39, %v9902_v51 }
 0x362   : > { %v7317_v42 = vpop.f32.mrf.mxu0  ;;  %v8026_v3 = vpop.f32.mrf.mxu1 }
 0x363   : > { %v7318_v36 = vadd.f32 %v7317_v42, %v7316_v46  ;;  %v10020_v63 = vadd.f32 %v8022_v35, %v2408_v0 }
 0x364   : > { %v7319_v57 = vpop.f32.mrf.mxu0  ;;  %v10022_v31 = vpop.f32.mrf.mxu1 }
 0x365   : > { %11024 = vst [vmem:[#allocation20_spill] sm:$0xff] %v10020_v63  ;;  %11025 = vst [vmem:[#allocation21_spill] sm:$0xff] %v10022_v31  ;;  %v2413_v10 = vadd.f32 %v7318_v36, %v9910_v53 }
 0x366   : > { %v7320_v12 = vpop.f32.mrf.mxu0  ;;  %v7368_v60 = vpop.f32.mrf.mxu1 }
 0x367   : > { %v7321_v51 = vadd.f32 %v7320_v12, %v7319_v57  ;;  %v10026_v1 = vadd.f32 %v2573_v14, %v2413_v10 }
 0x368   : > { %v7322_v61 = vpop.f32.mrf.mxu0  ;;  %v7369_v39 = vpop.f32.mrf.mxu1 }
 0x369   : > { %11026 = vst [vmem:[#allocation22_spill] sm:$0xff] %v10026_v1  ;;  %v10028_v40 = vadd.f32 %v7321_v51, %v2095_v45  ;;  %v7370_v57 = vadd.f32 %v7369_v39, %v7368_v60 }
 0x36a   : > { %v7323_v48 = vpop.f32.mrf.mxu0  ;;  %v7371_v35 = vpop.f32.mrf.mxu1 }
 0x36b   : > { %11027 = vst [vmem:[#allocation23_spill] sm:$0xff] %v10028_v40  ;;  %v7324_v46 = vadd.f32 %v7323_v48, %v7322_v61 }
 0x36c   : > { %v7325_v0 = vpop.f32.mrf.mxu0  ;;  %v7372_v42 = vpop.f32.mrf.mxu1 }
 0x36d   : > { %v2421_v31 = vadd.f32 %v7324_v46, %v9920_v43 }
 0x36e   : > { %v7326_v53 = vpop.f32.mrf.mxu0  ;;  %v7374_v36 = vpop.f32.mrf.mxu1 }
 0x36f   : > { %v10031_v44 = vadd.f32 %v8025_v55, %v2421_v31  ;;  %v7327_v63 = vadd.f32 %v7326_v53, %v7325_v0  ;;  %v10040_v55 = vld [vmem:[%s10985_s4] ss:$0 sm:$0xff]  ;;  %v7373_v31 = vadd.f32 %v7372_v42, %v7371_v35 }
 0x370   : > { %v8045_v20 = vpop.f32.mrf.mxu0  ;;  %v7375_v52 = vpop.f32.mrf.mxu1 }
 0x371   : > { %v2424_v14 = vadd.f32 %v7327_v63, %v9927_v38  ;;  %v7376_v10 = vadd.f32 %v7375_v52, %v7374_v36 }
 0x372   : > { %v3296_v12 = vpop.f32.mrf.mxu0  ;;  %v7377_v45 = vpop.f32.mrf.mxu1 }
 0x373   : > { %v10034_v51 = vadd.f32 %v8026_v3, %v2424_v14  ;;  %v3297_v61 = vadd.f32 %v7370_v57, %v3296_v12  ;;  %v3305_v48 = vadd.f32 %v8045_v20, %v7376_v10  ;;  %v2465_v3 = vadd.f32 %v9941_v17, %v9848_v47 }
 0x374   : > { %v8046_v40 = vpop.f32.mrf.mxu0  ;;  %v7378_v1 = vpop.f32.mrf.mxu1 }
 0x375   : > { %v3423_v43 = vadd.f32 %v3297_v61, %v9933_v21  ;;  %v3425_v38 = vadd.f32 %v3305_v48, %v9930_v58  ;;  %v7379_v63 = vadd.f32 %v7378_v1, %v7377_v45 }
 0x376   : > { %v3299_v60 = vpop.f32.mrf.mxu0  ;;  %v7380_v39 = vpop.f32.mrf.mxu1 }
 0x377   : > { %v3300_v46 = vadd.f32 %v7373_v31, %v3299_v60  ;;  %v3308_v0 = vadd.f32 %v8046_v40, %v7379_v63  ;;  %v3462_v53 = vadd.f32 %v10040_v55, %v3423_v43  ;;  %v3464_v52 = vadd.f32 %v10040_v55, %v3425_v38 }
 0x378   : > { %v8049_v36 = vpop.f32.mrf.mxu0  ;;  %v7381_v21 = vpop.f32.mrf.mxu1 }
 0x379   : > { %v3424_v20 = vadd.f32 %v3300_v46, %v2465_v3  ;;  %v3426_v14 = vadd.f32 %v3308_v0, %v9939_v62  ;;  %v7382_v42 = vadd.f32 %v7381_v21, %v7380_v39  ;;  %v3494_v10 = vmax.f32 %v3462_v53, 0.0 }
 0x37a   : > { %v3312_v35 = vpop.f32.mrf.mxu0  ;;  %v7383_v58 = vpop.f32.mrf.mxu1  ;;  %v3496_v45 = vmax.f32 %v3464_v52, 0.0  ;;  %v2481_v39 = vadd.f32 %v9954_v23, %v9875_v28 }
 0x37b   : > { %v3463_v1 = vadd.f32 %v10040_v55, %v3424_v20  ;;  %v3465_v57 = vadd.f32 %v10040_v55, %v3426_v14  ;;  %v3313_v17 = vadd.f32 %v7382_v42, %v3312_v35 }
 0x37c   : > { %v8050_v47 = vpop.f32.mrf.mxu0  ;;  %v7384_v40 = vpop.f32.mrf.mxu1 }
 0x37d   : > { %v3495_v12 = vmax.f32 %v3463_v1, 0.0  ;;  %v3497_v61 = vmax.f32 %v3465_v57, 0.0  ;;  %v7385_v48 = vadd.f32 %v7384_v40, %v7383_v58  ;;  %v3427_v31 = vadd.f32 %v3313_v17, %v9948_v6 }
 0x37e   : > { %v3315_v43 = vpop.f32.mrf.mxu0  ;;  %v7386_v38 = vpop.f32.mrf.mxu1 }
 0x37f   : > { %v10051_v62 = vpack.c.bf16 %v3495_v12, %v3494_v10  ;;  %v10053_v63 = vpack.c.bf16 %v3497_v61, %v3496_v45  ;;  %v3316_v60 = vadd.f32 %v7385_v48, %v3315_v43  ;;  %v3466_v6 = vadd.f32 %v10040_v55, %v3427_v31 }
 0x380   : > { %v7387_v3 = vpop.f32.mrf.mxu1  ;;  %v10061_v20 = vpop.f32.mrf.mxu0 }
 0x381   : > { %v3543_v46 = vshrl.u32 %v10051_v62, 16  ;;  %v3546_v0 = vshll.u32 %v10051_v62, 16  ;;  %v3550_v53 = vshrl.u32 %v10053_v63, 16  ;;  %v3553_v21 = vshll.u32 %v10053_v63, 16  ;;  %4683 = vmatprep.mubr.bf16.mxu0 %v10051_v62 }
 0x382   : > { %v3428_v52 = vadd.f32 %v3316_v60, %v2481_v39  ;;  %v7388_v14 = vadd.f32 %v7387_v3, %v7386_v38  ;;  %v7389_v35 = vpop.f32.mrf.mxu1  ;;  %v3498_v61 = vmax.f32 %v3466_v6, 0.0  ;;  %v3328_v48 = vpop.f32.mrf.mxu0 }
 0x383   : > { %v3545_v42 = vrot.slane %v3543_v46, 7  ;;  %v3686_v58 = vrot.slane %v3546_v0, 1  ;;  %v3552_v1 = vrot.slane %v3550_v53, 7  ;;  %v3688_v28 = vrot.slane %v3553_v21, 1 }
 0x384   : > { %v3467_v23 = vadd.f32 %v10040_v55, %v3428_v52  ;;  %v3321_v57 = vadd.f32 %v8049_v36, %v7388_v14  ;;  %v7390_v10 = vpop.f32.mrf.mxu1 }
 0x385   : > { %v3548_v17 = vor.u32 %v3546_v0, %v3545_v42  ;;  %v3687_v40 = vor.u32 %v3686_v58, %v3543_v46  ;;  %v3555_v12 = vor.u32 %v3553_v21, %v3552_v1  ;;  %v3689_v45 = vor.u32 %v3688_v28, %v3550_v53 }
 0x386   : > { %v3499_v43 = vmax.f32 %v3467_v23, 0.0  ;;  %v3429_v31 = vadd.f32 %v3321_v57, %v9945_v41  ;;  %v7391_v60 = vadd.f32 %v7390_v10, %v7389_v35  ;;  %v7392_v38 = vpop.f32.mrf.mxu1  ;;  %v10082_v35 = vpop.f32.mrf.mxu0 }
 0x387   : > { %v10068_v39 = vsel %vm9334_vm5, 0, %v3548_v17  ;;  %v3734_v3 = vsel %vm9348_vm6, %v3687_v40, 0  ;;  %v10074_v36 = vsel %vm9334_vm5, 0, %v3555_v12  ;;  %v3735_v46 = vsel %vm9348_vm6, %v3689_v45, 0  ;;  %v8464_v12 = vld [vmem:[#allocation11 + $0xb0] sm:$0xff]  }
 0x388   : > { %v6820_v0 = vcombine.low %v3734_v3, %v3734_v3  ;;  %v6822_v53 = vcombine.high %v3734_v3, %v3734_v3  ;;  %v7393_v21 = vpop.f32.mrf.mxu1  ;;  %v6823_v41 = vcombine.low %v10074_v36, %v10053_v63  ;;  %v6824_v6 = vcombine.low %v3735_v46, %v3735_v46  ;;  %4684 = vmatmul.mubr.bf16.vlgmr.msra.gmra.mxu0 %v10068_v39 }
 0x389   : > { %v6825_v52 = vcombine.high %v10074_v36, %v10053_v63  ;;  %v6826_v14 = vcombine.high %v3735_v46, %v3735_v46  ;;  %v10084_v42 = vpack.c.bf16 %v3499_v43, %v3498_v61  ;;  %v3324_v58 = vadd.f32 %v8050_v47, %v7391_v60  ;;  %v3331_v60 = vpop.f32.mrf.mxu0  ;;  %8124 = vmatpush3.bf16.msra.mxu0 %v9922_v50 }
 0x38a   : > { %4023 = vst [vmem:[#allocation2 + $0x20] sm:$0xf] %v6820_v0  ;;  %4025 = vst [vmem:[#allocation2 + $0x2c] sm:$0xf] %v6822_v53  ;;  %v7394_v1 = vadd.f32 %v7393_v21, %v7392_v38  ;;  %v7395_v28 = vpop.f32.mrf.mxu1  ;;  %v3468_v10 = vadd.f32 %v10040_v55, %v3429_v31  ;;  %v2497_v46 = vadd.f32 %v9969_v56, %v9905_v29  ;;  %4691 = vmatprep.mubr.bf16.mxu0 %v10053_v63 }
 0x38b   : > { %4026 = vst [vmem:[#allocation2 + $0x30] sm:$0xff] %v6823_v41  ;;  %4027 = vst [vmem:[#allocation2 + $0x38] sm:$0xf] %v6824_v6  ;;  %v3557_v23 = vshrl.u32 %v10084_v42, 16  ;;  %v3560_v57 = vshll.u32 %v10084_v42, 16  ;;  %v3430_v17 = vadd.f32 %v3324_v58, %v9952_v49  ;;  %8125 = vmatprep.subr.bf16.mxu0 %v8464_v12  ;;  %v8467_v6 = vld [vmem:[#allocation11 + $0xa8] sm:$0xff]  }
 0x38c   : > { %4028 = vst [vmem:[#allocation2 + $0x3c] sm:$0xff] %v6825_v52  ;;  %4029 = vst [vmem:[#allocation2 + $0x44] sm:$0xf] %v6826_v14  ;;  %v7396_v40 = vpop.f32.mrf.mxu1  ;;  %v3329_v45 = vadd.f32 %v7394_v1, %v3328_v48  ;;  %v3500_v53 = vmax.f32 %v3468_v10, 0.0  ;;  %v8475_v1 = vld [vmem:[#allocation11 + $0x38] sm:$0xff]  }
 0x38d   : > { %v7397_v61 = vadd.f32 %v7396_v40, %v7395_v28  ;;  %v3559_v47 = vrot.slane %v3557_v23, 7  ;;  %v3690_v43 = vrot.slane %v3560_v57, 1  ;;  %v3469_v38 = vadd.f32 %v10040_v55, %v3430_v17  ;;  %8126 = vmatpush3.bf16.msra.mxu0 %v8464_v12 }
 0x38e   : > { %v7398_v3 = vpop.f32.mrf.mxu1  ;;  %v3431_v31 = vadd.f32 %v3329_v45, %v9963_v16  ;;  %v10104_v16 = vpop.f32.mrf.mxu0  ;;  %8127 = vmatprep.subr.bf16.mxu0 %v8467_v6 }
 0x38f   : > { %v3332_v49 = vadd.f32 %v7397_v61, %v3331_v60  ;;  %v3562_v48 = vor.u32 %v3560_v57, %v3559_v47  ;;  %v3691_v0 = vor.u32 %v3690_v43, %v3557_v23  ;;  %v3501_v21 = vmax.f32 %v3469_v38, 0.0  ;;  %v8477_v38 = vld [vmem:[#allocation11 + $0x70] sm:$0xff]  }
 0x390   : > { %v7399_v41 = vpop.f32.mrf.mxu1  ;;  %v3470_v28 = vadd.f32 %v10040_v55, %v3431_v31  ;;  %v8470_v31 = vld [vmem:[#allocation11 + $0xa0] sm:$0xff]   ;;  %4692 = vmatmul.mubr.bf16.gmra.mxu0 %v10074_v36 }
 0x391   : > { %v3432_v52 = vadd.f32 %v3332_v49, %v2497_v46  ;;  %v8459_v14 = vld [vmem:[#allocation2 + $0x20] ss:$12 sps:$4 sm:$0xff]   ;;  %v7400_v58 = vadd.f32 %v7399_v41, %v7398_v3  ;;  %v10100_v29 = vsel %vm9334_vm5, 0, %v3562_v48  ;;  %v3736_v50 = vsel %vm9348_vm6, %v3691_v0, 0  ;;  %v3344_v49 = vpop.f32.mrf.mxu0  ;;  %4699 = vmatprep.mubr.bf16.mxu0 %v10084_v42  ;;  %8128 = vmatpush3.bf16.msra.mxu0 %v8467_v6 }
 0x392   : > { %v10106_v56 = vpack.c.bf16 %v3501_v21, %v3500_v53  ;;  %v7401_v23 = vpop.f32.mrf.mxu1  ;;  %v6827_v57 = vcombine.low %v10100_v29, %v10084_v42  ;;  %v6828_v10 = vcombine.low %v3736_v50, %v3736_v50  ;;  %v6829_v17 = vcombine.high %v10100_v29, %v10084_v42  ;;  %8091 = vmatprep.mubr.bf16.mxu1 %v8459_v14 }
 0x393   : > { %v6830_v40 = vcombine.high %v3736_v50, %v3736_v50  ;;  %v8462_v45 = vld [vmem:[#allocation2 + $0x38] ss:$12 sps:$4 sm:$0xff]   ;;  %v3471_v43 = vadd.f32 %v10040_v55, %v3432_v52  ;;  %v3337_v3 = vadd.f32 %v10061_v20, %v7400_v58  ;;  %v3502_v53 = vmax.f32 %v3470_v28, 0.0  ;;  %8129 = vmatprep.subr.bf16.mxu0 %v8470_v31 }
 0x394   : > { %v3564_v61 = vshrl.u32 %v10106_v56, 16  ;;  %v3567_v47 = vshll.u32 %v10106_v56, 16  ;;  %v7402_v60 = vpop.f32.mrf.mxu1  ;;  %4030 = vst [vmem:[#allocation2 + $0x48] sm:$0xff] %v6827_v57  ;;  %4031 = vst [vmem:[#allocation2 + $0x50] sm:$0xf] %v6828_v10  ;;  %8092 = vmatmul.mubr.bf16.vlgmr.msra.gmra.mxu1 %v8462_v45  ;;  %v8478_v20 = vld [vmem:[#allocation11 + $0x30] sm:$0xff]  }
 0x395   : > { %4032 = vst [vmem:[#allocation2 + $0x54] sm:$0xff] %v6829_v17  ;;  %4033 = vst [vmem:[#allocation2 + $0x5c] sm:$0xf] %v6830_v40  ;;  %v7403_v46 = vadd.f32 %v7402_v60, %v7401_v23  ;;  %v3503_v21 = vmax.f32 %v3471_v43, 0.0  ;;  %v3433_v12 = vadd.f32 %v3337_v3, %v9960_v18  ;;  %7625 = vmatpush3.bf16.msra.mxu1 %v8475_v1  ;;  %v8481_v28 = vld [vmem:[#allocation11 + $0x68] sm:$0xff]   ;;  %v8473_v18 = vld [vmem:[#allocation11 + $0x98] sm:$0xff]   ;;  %8130 = vmatpush3.bf16.msra.mxu0 %v8470_v31 }
 0x396   : > { %v3566_v48 = vrot.slane %v3564_v61, 7  ;;  %v3692_v0 = vrot.slane %v3567_v47, 1  ;;  %v7404_v41 = vpop.f32.mrf.mxu1  ;;  %7626 = vmatprep.subr.bf16.mxu1 %v8477_v38  ;;  %8131 = vmatprep.subr.bf16.mxu0 %v8473_v18  ;;  %v8484_v31 = vld [vmem:[#allocation11 + $0x60] sm:$0xff]  }
 0x397   : > { %v3340_v52 = vadd.f32 %v10082_v35, %v7403_v46  ;;  %v10121_v50 = vpack.c.bf16 %v3503_v21, %v3502_v53  ;;  %v3472_v57 = vadd.f32 %v10040_v55, %v3433_v12  ;;  %v10125_v35 = vpop.f32.mrf.mxu0  ;;  %v8482_v53 = vld [vmem:[#allocation11 + $0x28] sm:$0xff]  }
 0x398   : > { %v3569_v14 = vor.u32 %v3567_v47, %v3566_v48  ;;  %v3693_v58 = vor.u32 %v3692_v0, %v3564_v61  ;;  %v7405_v23 = vpop.f32.mrf.mxu1  ;;  %v8480_v0 = vld [vmem:[#allocation11 + $0x90] sm:$0xff]   ;;  %4700 = vmatmul.mubr.bf16.gmra.mxu0 %v10100_v29 }
 0x399   : > { %v3434_v10 = vadd.f32 %v3340_v52, %v9967_v27  ;;  %v7406_v17 = vadd.f32 %v7405_v23, %v7404_v41  ;;  %v3571_v6 = vshrl.u32 %v10121_v50, 16  ;;  %v3574_v45 = vshll.u32 %v10121_v50, 16  ;;  %7627 = vmatpush3.bf16.msra.mxu1 %v8478_v20  ;;  %v3347_v52 = vpop.f32.mrf.mxu0  ;;  %4707 = vmatprep.mubr.bf16.mxu0 %v10106_v56 }
 0x39a   : > { %v10129_v1 = vsel %vm9334_vm5, 0, %v3569_v14  ;;  %v3737_v40 = vsel %vm9348_vm6, %v3693_v58, 0  ;;  %v7407_v61 = vpop.f32.mrf.mxu1  ;;  %7628 = vmatprep.subr.bf16.mxu1 %v8481_v28  ;;  %v3504_v58 = vmax.f32 %v3472_v57, 0.0  ;;  %8132 = vmatpush3.bf16.msra.mxu0 %v8473_v18 }
 0x39b   : > { %v6831_v27 = vcombine.low %v10129_v1, %v10106_v56  ;;  %v6832_v47 = vcombine.low %v3737_v40, %v3737_v40  ;;  %v6833_v43 = vcombine.high %v10129_v1, %v10106_v56  ;;  %v6834_v60 = vcombine.high %v3737_v40, %v3737_v40  ;;  %8133 = vmatprep.subr.bf16.mxu0 %v8480_v0 }
 0x39c   : > { %v3573_v38 = vrot.slane %v3571_v6, 7  ;;  %v3694_v3 = vrot.slane %v3574_v45, 1  ;;  %v3473_v46 = vadd.f32 %v10040_v55, %v3434_v10  ;;  %v7408_v48 = vpop.f32.mrf.mxu1  ;;  %v3345_v21 = vadd.f32 %v7406_v17, %v3344_v49  ;;  %v8463_v12 = vld [vmem:[#allocation2 + $0x50] ss:$12 sps:$4 sm:$0xff]  }
 0x39d   : > { %4034 = vst [vmem:[#allocation2 + $0x60] sm:$0xff] %v6831_v27  ;;  %4035 = vst [vmem:[#allocation2 + $0x68] sm:$0xf] %v6832_v47  ;;  %v7409_v41 = vadd.f32 %v7408_v48, %v7407_v61  ;;  %8095 = vmatprep.mubr.bf16.mxu1 %v8463_v12  ;;  %v2513_v49 = vadd.f32 %v9979_v30, %v9936_v9  ;;  %7629 = vmatpush3.bf16.msra.mxu1 %v8482_v53  ;;  %v8487_v47 = vld [vmem:[#allocation11 + $0x88] sm:$0xff]  }
 0x39e   : > { %4036 = vst [vmem:[#allocation2 + $0x6c] sm:$0xff] %v6833_v43  ;;  %4037 = vst [vmem:[#allocation2 + $0x74] sm:$0xf] %v6834_v60  ;;  %v3576_v14 = vor.u32 %v3574_v45, %v3573_v38  ;;  %v3695_v20 = vor.u32 %v3694_v3, %v3571_v6  ;;  %v3505_v23 = vmax.f32 %v3473_v46, 0.0  ;;  %v7410_v10 = vpop.f32.mrf.mxu1  ;;  %v3435_v28 = vadd.f32 %v3345_v21, %v9974_v4  ;;  %v8485_v4 = vld [vmem:[#allocation11 + $0x20] sm:$0xff]   ;;  %v8488_v43 = vld [vmem:[#allocation11 + $0x58] sm:$0xff]   ;;  %v10157_v60 = vpop.f32.mrf.mxu0 }
 0x39f   : > { %v3348_v40 = vadd.f32 %v7409_v41, %v3347_v52  ;;  %7630 = vmatprep.subr.bf16.mxu1 %v8484_v31  ;;  %8134 = vmatpush3.bf16.msra.mxu0 %v8480_v0 }
 0x3a0   : > { %v10147_v17 = vsel %vm9334_vm5, 0, %v3576_v14  ;;  %v3738_v57 = vsel %vm9348_vm6, %v3695_v20, 0  ;;  %v10151_v6 = vpack.c.bf16 %v3505_v23, %v3504_v58  ;;  %v7411_v45 = vpop.f32.mrf.mxu1  ;;  %v3474_v18 = vadd.f32 %v10040_v55, %v3435_v28  ;;  %v8489_v14 = vld [vmem:[#allocation11 + $0x18] sm:$0xff]   ;;  %v8491_v20 = vld [vmem:[#allocation11 + $0x50] sm:$0xff]   ;;  %8135 = vmatprep.subr.bf16.mxu0 %v8487_v47  ;;  %v3360_v31 = vpop.f32.mrf.mxu0  ;;  %4708 = vmatmul.mubr.bf16.gmra.mxu0 %v10129_v1 }
 0x3a1   : > { %v6835_v61 = vcombine.low %v10147_v17, %v10121_v50  ;;  %v6836_v27 = vcombine.low %v3738_v57, %v3738_v57  ;;  %v6837_v9 = vcombine.high %v10147_v17, %v10121_v50  ;;  %v6838_v30 = vcombine.high %v3738_v57, %v3738_v57  ;;  %7631 = vmatpush3.bf16.msra.mxu1 %v8485_v4 }
 0x3a2   : > { %v3578_v38 = vshrl.u32 %v10151_v6, 16  ;;  %v3581_v3 = vshll.u32 %v10151_v6, 16  ;;  %v3436_v46 = vadd.f32 %v3348_v40, %v2513_v49  ;;  %v7413_v48 = vpop.f32.mrf.mxu1  ;;  %v7412_v53 = vadd.f32 %v7411_v45, %v7410_v10  ;;  %7632 = vmatprep.subr.bf16.mxu1 %v8488_v43  ;;  %4715 = vmatprep.mubr.bf16.mxu0 %v10121_v50  ;;  %v8492_v43 = vld [vmem:[#allocation11 + $0x10] sm:$0xff]  }
 0x3a3   : > { %4038 = vst [vmem:[#allocation2 + $0x78] sm:$0xff] %v6835_v61  ;;  %4039 = vst [vmem:[#allocation2 + $0x80] sm:$0xf] %v6836_v27  ;;  %v3506_v57 = vmax.f32 %v3474_v18, 0.0  ;;  %v8494_v61 = vld [vmem:[#allocation11 + $0x80] sm:$0xff]   ;;  %8136 = vmatpush3.bf16.msra.mxu0 %v8487_v47  ;;  %v8495_v18 = vld [vmem:[#allocation11 + $0x48] sm:$0xff]  }
 0x3a4   : > { %4040 = vst [vmem:[#allocation2 + $0x84] sm:$0xff] %v6837_v9  ;;  %4041 = vst [vmem:[#allocation2 + $0x8c] sm:$0xf] %v6838_v30  ;;  %v3580_v21 = vrot.slane %v3578_v38, 7  ;;  %v3696_v41 = vrot.slane %v3581_v3, 1  ;;  %v3475_v12 = vadd.f32 %v10040_v55, %v3436_v46  ;;  %v7414_v52 = vpop.f32.mrf.mxu1  ;;  %v3353_v58 = vadd.f32 %v10104_v16, %v7412_v53  ;;  %v8501_v46 = vld [vmem:[#allocation11 + $0x1f8] sm:$0xff]   ;;  %8137 = vmatprep.subr.bf16.mxu0 %v8494_v61 }
 0x3a5   : > { %v7415_v23 = vadd.f32 %v7414_v52, %v7413_v48  ;;  %v8465_v28 = vld [vmem:[#allocation2 + $0x68] ss:$12 sps:$4 sm:$0xff]   ;;  %7633 = vmatpush3.bf16.msra.mxu1 %v8489_v14  ;;  %v10180_v48 = vpop.f32.mrf.mxu0 }
 0x3a6   : > { %v3583_v40 = vor.u32 %v3581_v3, %v3580_v21  ;;  %v3697_v49 = vor.u32 %v3696_v41, %v3578_v38  ;;  %v3507_v10 = vmax.f32 %v3475_v12, 0.0  ;;  %v7416_v45 = vpop.f32.mrf.mxu1  ;;  %v3437_v0 = vadd.f32 %v3353_v58, %v9972_v7  ;;  %8096 = vmatmul.mubr.bf16.gmra.mxu1 %v8465_v28  ;;  %7634 = vmatprep.subr.bf16.mxu1 %v8491_v20 }
 0x3a7   : > { %v3356_v4 = vadd.f32 %v10125_v35, %v7415_v23  ;;  %8138 = vmatpush3.bf16.msra.mxu0 %v8494_v61 }
 0x3a8   : > { %v10170_v16 = vsel %vm9334_vm5, 0, %v3583_v40  ;;  %v3739_v27 = vsel %vm9348_vm6, %v3697_v49, 0  ;;  %v10174_v9 = vpack.c.bf16 %v3507_v10, %v3506_v57  ;;  %v7417_v30 = vpop.f32.mrf.mxu1  ;;  %v3476_v47 = vadd.f32 %v10040_v55, %v3437_v0  ;;  %v8496_v40 = vld [vmem:[#allocation11 + $0x8] sm:$0xff]   ;;  %v3363_v10 = vpop.f32.mrf.mxu0  ;;  %4716 = vmatmul.mubr.bf16.gmra.mxu0 %v10147_v17  ;;  %7760 = vmatprep.subr.bf16.mxu0 %v8501_v46 }
 0x3a9   : > { %v6839_v7 = vcombine.low %v10170_v16, %v10151_v6  ;;  %v6840_v35 = vcombine.low %v3739_v27, %v3739_v27  ;;  %v6841_v38 = vcombine.high %v10170_v16, %v10151_v6  ;;  %v6842_v3 = vcombine.high %v3739_v27, %v3739_v27  ;;  %7635 = vmatpush3.bf16.msra.mxu1 %v8492_v43 }
 0x3aa   : > { %v3585_v53 = vshrl.u32 %v10174_v9, 16  ;;  %v3588_v21 = vshll.u32 %v10174_v9, 16  ;;  %v3438_v41 = vadd.f32 %v3356_v4, %v9977_v15  ;;  %v7419_v12 = vpop.f32.mrf.mxu1  ;;  %v7418_v52 = vadd.f32 %v7417_v30, %v7416_v45  ;;  %7636 = vmatprep.subr.bf16.mxu1 %v8495_v18  ;;  %v8498_v15 = vld [vmem:[#allocation11 + $0x40] sm:$0xff]   ;;  %4723 = vmatprep.mubr.bf16.mxu0 %v10151_v6 }
 0x3ab   : > { %4042 = vst [vmem:[#allocation2 + $0x90] sm:$0xff] %v6839_v7  ;;  %4043 = vst [vmem:[#allocation2 + $0x98] sm:$0xf] %v6840_v35  ;;  %v10186_v14 = vld [vmem:[#allocation2 + $0x80] ss:$12 sps:$4 sm:$0xff]   ;;  %v3508_v45 = vmax.f32 %v3476_v47, 0.0 }
 0x3ac   : > { %4044 = vst [vmem:[#allocation2 + $0x9c] sm:$0xff] %v6841_v38  ;;  %4045 = vst [vmem:[#allocation2 + $0xa4] sm:$0xf] %v6842_v3  ;;  %v3587_v20 = vrot.slane %v3585_v53, 7  ;;  %v3698_v58 = vrot.slane %v3588_v21, 1  ;;  %v3477_v23 = vadd.f32 %v10040_v55, %v3438_v41  ;;  %v7420_v28 = vpop.f32.mrf.mxu1  ;;  %v3361_v49 = vadd.f32 %v7418_v52, %v3360_v31  ;;  %8099 = vmatprep.mubr.bf16.mxu1 %v10186_v14  ;;  %v8499_v18 = vld [vmem:[#allocation11] sm:$0xff]  }
 0x3ad   : > { %v7421_v57 = vadd.f32 %v7420_v28, %v7419_v12  ;;  %v2529_v31 = vadd.f32 %v9992_v8, %v9965_v2  ;;  %7637 = vmatpush3.bf16.msra.mxu1 %v8496_v40  ;;  %v10207_v8 = vld [vmem:[#allocation11 + $0x238] sm:$0xff]  }
 0x3ae   : > { %v3590_v0 = vor.u32 %v3588_v21, %v3587_v20  ;;  %v3699_v4 = vor.u32 %v3698_v58, %v3585_v53  ;;  %v3509_v27 = vmax.f32 %v3477_v23, 0.0  ;;  %v7422_v30 = vpop.f32.mrf.mxu1  ;;  %v3439_v7 = vadd.f32 %v3361_v49, %v9986_v25  ;;  %7638 = vmatprep.subr.bf16.mxu1 %v8498_v15  ;;  %v10209_v21 = vpop.f32.mrf.mxu0 }
 0x3af   : > { %v3364_v43 = vadd.f32 %v7421_v57, %v3363_v10 }
 0x3b0   : > { %v10197_v61 = vsel %vm9334_vm5, 0, %v3590_v0  ;;  %v3740_v35 = vsel %vm9348_vm6, %v3699_v4, 0  ;;  %v10201_v38 = vpack.c.bf16 %v3509_v27, %v3508_v45  ;;  %v7423_v3 = vpop.f32.mrf.mxu1  ;;  %v3478_v12 = vadd.f32 %v10040_v55, %v3439_v7  ;;  %v3376_v0 = vpop.f32.mrf.mxu0  ;;  %4724 = vmatmul.mubr.bf16.gmra.mxu0 %v10170_v16 }
 0x3b1   : > { %v6843_v25 = vcombine.low %v10197_v61, %v10174_v9  ;;  %v6844_v46 = vcombine.low %v3740_v35, %v3740_v35  ;;  %v6845_v53 = vcombine.high %v10197_v61, %v10174_v9  ;;  %v6846_v2 = vcombine.high %v3740_v35, %v3740_v35  ;;  %7639 = vmatpush3.bf16.msra.mxu1 %v8499_v18 }
 0x3b2   : > { %v3592_v47 = vshrl.u32 %v10201_v38, 16  ;;  %v3595_v41 = vshll.u32 %v10201_v38, 16  ;;  %v3440_v52 = vadd.f32 %v3364_v43, %v2529_v31  ;;  %v7425_v20 = vpop.f32.mrf.mxu1  ;;  %v7424_v58 = vadd.f32 %v7423_v3, %v7422_v30  ;;  %8171 = vmatprep.subr.bf16.mxu1 %v10207_v8  ;;  %4731 = vmatprep.mubr.bf16.mxu0 %v10174_v9 }
 0x3b3   : > { %4046 = vst [vmem:[#allocation2 + $0xa8] sm:$0xff] %v6843_v25  ;;  %4047 = vst [vmem:[#allocation2 + $0xb0] sm:$0xf] %v6844_v46  ;;  %v10214_v23 = vld [vmem:[#allocation2 + $0x98] ss:$12 sps:$4 sm:$0xff]   ;;  %v3510_v27 = vmax.f32 %v3478_v12, 0.0 }
 0x3b4   : > { %4048 = vst [vmem:[#allocation2 + $0xb4] sm:$0xff] %v6845_v53  ;;  %4049 = vst [vmem:[#allocation2 + $0xbc] sm:$0xf] %v6846_v2  ;;  %v3594_v28 = vrot.slane %v3592_v47, 7  ;;  %v3700_v40 = vrot.slane %v3595_v41, 1  ;;  %v3479_v49 = vadd.f32 %v10040_v55, %v3440_v52  ;;  %v7426_v57 = vpop.f32.mrf.mxu1  ;;  %v3369_v15 = vadd.f32 %v10157_v60, %v7424_v58  ;;  %8100 = vmatmul.mubr.bf16.gmra.mxu1 %v10214_v23  ;;  %v10236_v53 = vpop.f32.mrf.mxu0 }
 0x3b5   : > { %v7427_v10 = vadd.f32 %v7426_v57, %v7425_v20 }
 0x3b6   : > { %v3597_v4 = vor.u32 %v3595_v41, %v3594_v28  ;;  %v3701_v45 = vor.u32 %v3700_v40, %v3592_v47  ;;  %v3511_v30 = vmax.f32 %v3479_v49, 0.0  ;;  %v7428_v7 = vpop.f32.mrf.mxu1  ;;  %v3441_v43 = vadd.f32 %v3369_v15, %v9984_v24 }
 0x3b7   : > { %v3372_v31 = vadd.f32 %v10180_v48, %v7427_v10 }
 0x3b8   : > { %v10226_v60 = vsel %vm9334_vm5, 0, %v3597_v4  ;;  %v3741_v35 = vsel %vm9348_vm6, %v3701_v45, 0  ;;  %v10230_v3 = vpack.c.bf16 %v3511_v30, %v3510_v27  ;;  %v7429_v18 = vpop.f32.mrf.mxu1  ;;  %v3480_v41 = vadd.f32 %v10040_v55, %v3441_v43  ;;  %v3379_v4 = vpop.f32.mrf.mxu0  ;;  %4732 = vmatmul.mubr.bf16.gmra.mxu0 %v10197_v61 }
 0x3b9   : > { %v6847_v25 = vcombine.low %v10226_v60, %v10201_v38  ;;  %v6848_v46 = vcombine.low %v3741_v35, %v3741_v35  ;;  %v6849_v24 = vcombine.high %v10226_v60, %v10201_v38  ;;  %v6850_v48 = vcombine.high %v3741_v35, %v3741_v35  ;;  %4739 = vmatprep.mubr.bf16.mxu0 %v10201_v38 }
 0x3ba   : > { %v3599_v2 = vshrl.u32 %v10230_v3, 16  ;;  %v3602_v47 = vshll.u32 %v10230_v3, 16  ;;  %v3442_v12 = vadd.f32 %v3372_v31, %v9990_v13  ;;  %v7431_v52 = vpop.f32.mrf.mxu1  ;;  %v7430_v20 = vadd.f32 %v7429_v18, %v7428_v7 }
 0x3bb   : > { %4050 = vst [vmem:[#allocation2 + $0xc0] sm:$0xff] %v6847_v25  ;;  %4051 = vst [vmem:[#allocation2 + $0xc8] sm:$0xf] %v6848_v46  ;;  %v10242_v58 = vld [vmem:[#allocation2 + $0xb0] ss:$12 sps:$4 sm:$0xff]   ;;  %v3512_v27 = vmax.f32 %v3480_v41, 0.0  ;;  %v2545_v35 = vadd.f32 %v10004_v26, %v9988_v33 }
 0x3bc   : > { %4052 = vst [vmem:[#allocation2 + $0xcc] sm:$0xff] %v6849_v24  ;;  %4053 = vst [vmem:[#allocation2 + $0xd4] sm:$0xf] %v6850_v48  ;;  %v3601_v28 = vrot.slane %v3599_v2, 7  ;;  %v3702_v40 = vrot.slane %v3602_v47, 1  ;;  %v3481_v49 = vadd.f32 %v10040_v55, %v3442_v12  ;;  %v7432_v57 = vpop.f32.mrf.mxu1  ;;  %v3377_v15 = vadd.f32 %v7430_v20, %v3376_v0  ;;  %8103 = vmatprep.mubr.bf16.mxu1 %v10242_v58 }
 0x3bd   : > { %v7433_v10 = vadd.f32 %v7432_v57, %v7431_v52 }
 0x3be   : > { %v3604_v45 = vor.u32 %v3602_v47, %v3601_v28  ;;  %v3703_v13 = vor.u32 %v3702_v40, %v3599_v2  ;;  %v3513_v30 = vmax.f32 %v3481_v49, 0.0  ;;  %v7434_v43 = vpop.f32.mrf.mxu1  ;;  %v3443_v7 = vadd.f32 %v3377_v15, %v9997_v37  ;;  %v10263_v47 = vpop.f32.mrf.mxu0 }
 0x3bf   : > { %v3380_v31 = vadd.f32 %v7433_v10, %v3379_v4 }
 0x3c0   : > { %v10253_v0 = vsel %vm9334_vm5, 0, %v3604_v45  ;;  %v3742_v18 = vsel %vm9348_vm6, %v3703_v13, 0  ;;  %v10257_v25 = vpack.c.bf16 %v3513_v30, %v3512_v27  ;;  %v7435_v46 = vpop.f32.mrf.mxu1  ;;  %v3482_v41 = vadd.f32 %v10040_v55, %v3443_v7  ;;  %v3392_v45 = vpop.f32.mrf.mxu0  ;;  %4740 = vmatmul.mubr.bf16.gmra.mxu0 %v10226_v60 }
 0x3c1   : > { %v6851_v24 = vcombine.low %v10253_v0, %v10230_v3  ;;  %v6852_v37 = vcombine.low %v3742_v18, %v3742_v18  ;;  %v6853_v48 = vcombine.high %v10253_v0, %v10230_v3  ;;  %v6854_v2 = vcombine.high %v3742_v18, %v3742_v18  ;;  %4747 = vmatprep.mubr.bf16.mxu0 %v10230_v3 }
 0x3c2   : > { %v3606_v33 = vshrl.u32 %v10257_v25, 16  ;;  %v3609_v26 = vshll.u32 %v10257_v25, 16  ;;  %v3444_v12 = vadd.f32 %v3380_v31, %v2545_v35  ;;  %v7437_v52 = vpop.f32.mrf.mxu1  ;;  %v7436_v20 = vadd.f32 %v7435_v46, %v7434_v43 }
 0x3c3   : > { %4054 = vst [vmem:[#allocation2 + $0xd8] sm:$0xff] %v6851_v24  ;;  %4055 = vst [vmem:[#allocation2 + $0xe0] sm:$0xf] %v6852_v37  ;;  %v10268_v28 = vld [vmem:[#allocation2 + $0xc8] ss:$12 sps:$4 sm:$0xff]   ;;  %v3514_v30 = vmax.f32 %v3482_v41, 0.0 }
 0x3c4   : > { %4056 = vst [vmem:[#allocation2 + $0xe4] sm:$0xff] %v6853_v48  ;;  %4057 = vst [vmem:[#allocation2 + $0xec] sm:$0xf] %v6854_v2  ;;  %v3608_v40 = vrot.slane %v3606_v33, 7  ;;  %v3704_v49 = vrot.slane %v3609_v26, 1  ;;  %v3483_v57 = vadd.f32 %v10040_v55, %v3444_v12  ;;  %v7438_v15 = vpop.f32.mrf.mxu1  ;;  %v3385_v10 = vadd.f32 %v10209_v21, %v7436_v20  ;;  %8104 = vmatmul.mubr.bf16.gmra.mxu1 %v10268_v28  ;;  %v10289_v2 = vpop.f32.mrf.mxu0 }
 0x3c5   : > { %v7439_v4 = vadd.f32 %v7438_v15, %v7437_v52  ;;  %v10300_v15 = vld [vmem:[%s10985_s4] ss:$0 sm:$0xff] }
 0x3c6   : > { %v3611_v13 = vor.u32 %v3609_v26, %v3608_v40  ;;  %v3705_v27 = vor.u32 %v3704_v49, %v3606_v33  ;;  %v3515_v7 = vmax.f32 %v3483_v57, 0.0  ;;  %v7440_v43 = vpop.f32.mrf.mxu1  ;;  %v3445_v31 = vadd.f32 %v3385_v10, %v9995_v22 }
 0x3c7   : > { %v3388_v35 = vadd.f32 %v10236_v53, %v7439_v4 }
 0x3c8   : > { %v10279_v21 = vsel %vm9334_vm5, 0, %v3611_v13  ;;  %v3743_v18 = vsel %vm9348_vm6, %v3705_v27, 0  ;;  %v10283_v46 = vpack.c.bf16 %v3515_v7, %v3514_v30  ;;  %v7441_v24 = vpop.f32.mrf.mxu1  ;;  %v3484_v41 = vadd.f32 %v10040_v55, %v3445_v31  ;;  %v3395_v13 = vpop.f32.mrf.mxu0  ;;  %4748 = vmatmul.mubr.bf16.gmra.mxu0 %v10253_v0 }
 0x3c9   : > { %v6855_v37 = vcombine.low %v10279_v21, %v10257_v25  ;;  %v6856_v48 = vcombine.low %v3743_v18, %v3743_v18  ;;  %v6857_v22 = vcombine.high %v10279_v21, %v10257_v25  ;;  %v6858_v53 = vcombine.high %v3743_v18, %v3743_v18  ;;  %4755 = vmatprep.mubr.bf16.mxu0 %v10257_v25 }
 0x3ca   : > { %v3613_v33 = vshrl.u32 %v10283_v46, 16  ;;  %v3616_v26 = vshll.u32 %v10283_v46, 16  ;;  %v3446_v12 = vadd.f32 %v3388_v35, %v10002_v59  ;;  %v7443_v52 = vpop.f32.mrf.mxu1  ;;  %v7442_v20 = vadd.f32 %v7441_v24, %v7440_v43 }
 0x3cb   : > { %4058 = vst [vmem:[#allocation2 + $0xf0] sm:$0xff] %v6855_v37  ;;  %4059 = vst [vmem:[#allocation2 + $0xf8] sm:$0xf] %v6856_v48  ;;  %v10295_v40 = vld [vmem:[#allocation2 + $0xe0] ss:$12 sps:$4 sm:$0xff]   ;;  %v3516_v7 = vmax.f32 %v3484_v41, 0.0  ;;  %v2561_v24 = vadd.f32 %v10012_v34, %v10010_v5 }
 0x3cc   : > { %4060 = vst [vmem:[#allocation2 + $0xfc] sm:$0xff] %v6857_v22  ;;  %4061 = vst [vmem:[#allocation2 + $0x104] sm:$0xf] %v6858_v53  ;;  %v3615_v49 = vrot.slane %v3613_v33, 7  ;;  %v3706_v57 = vrot.slane %v3616_v26, 1  ;;  %v3485_v10 = vadd.f32 %v10300_v15, %v3446_v12  ;;  %v7444_v55 = vpop.f32.mrf.mxu1  ;;  %v3393_v4 = vadd.f32 %v7442_v20, %v3392_v45  ;;  %8107 = vmatprep.mubr.bf16.mxu1 %v10295_v40  ;;  %v10317_v53 = vpop.f32.mrf.mxu0 }
 0x3cd   : > { %v7445_v59 = vadd.f32 %v7444_v55, %v7443_v52 }
 0x3ce   : > { %v3618_v27 = vor.u32 %v3616_v26, %v3615_v49  ;;  %v3707_v30 = vor.u32 %v3706_v57, %v3613_v33  ;;  %v3517_v43 = vmax.f32 %v3485_v10, 0.0  ;;  %v7446_v31 = vpop.f32.mrf.mxu1  ;;  %v3447_v35 = vadd.f32 %v3393_v4, %v10008_v19 }
 0x3cf   : > { %v3396_v18 = vadd.f32 %v7445_v59, %v3395_v13  ;;  %v3408_v13 = vpop.f32.mrf.mxu0 }
 0x3d0   : > { %v10311_v45 = vsel %vm9334_vm5, 0, %v3618_v27  ;;  %v3744_v37 = vsel %vm9348_vm6, %v3707_v30, 0  ;;  %v10315_v48 = vpack.c.bf16 %v3517_v43, %v3516_v7  ;;  %v7447_v22 = vpop.f32.mrf.mxu1  ;;  %v3486_v12 = vadd.f32 %v10300_v15, %v3447_v35  ;;  %4756 = vmatmul.mubr.bf16.gmra.mxu0 %v10279_v21 }
 0x3d1   : > { %v6859_v19 = vcombine.low %v10311_v45, %v10283_v46  ;;  %v6860_v33 = vcombine.low %v3744_v37, %v3744_v37  ;;  %v6861_v26 = vcombine.high %v10311_v45, %v10283_v46  ;;  %v6862_v5 = vcombine.high %v3744_v37, %v3744_v37  ;;  %4763 = vmatprep.mubr.bf16.mxu0 %v10283_v46 }
 0x3d2   : > { %v3620_v34 = vshrl.u32 %v10315_v48, 16  ;;  %v3623_v41 = vshll.u32 %v10315_v48, 16  ;;  %v3448_v52 = vadd.f32 %v3396_v18, %v2561_v24  ;;  %v7449_v20 = vpop.f32.mrf.mxu1  ;;  %v7448_v49 = vadd.f32 %v7447_v22, %v7446_v31 }
 0x3d3   : > { %4062 = vst [vmem:[#allocation2 + $0x108] sm:$0xff] %v6859_v19  ;;  %4063 = vst [vmem:[#allocation2 + $0x110] sm:$0xf] %v6860_v33  ;;  %v10326_v57 = vld [vmem:[#allocation2 + $0xf8] ss:$12 sps:$4 sm:$0xff]   ;;  %v3518_v35 = vmax.f32 %v3486_v12, 0.0  ;;  %v10343_v33 = vpop.f32.mrf.mxu0 }
 0x3d4   : > { %4064 = vst [vmem:[#allocation2 + $0x114] sm:$0xff] %v6861_v26  ;;  %4065 = vst [vmem:[#allocation2 + $0x11c] sm:$0xf] %v6862_v5  ;;  %v3622_v10 = vrot.slane %v3620_v34, 7  ;;  %v3708_v55 = vrot.slane %v3623_v41, 1  ;;  %v3487_v4 = vadd.f32 %v10300_v15, %v3448_v52  ;;  %v7450_v59 = vpop.f32.mrf.mxu1  ;;  %v3401_v27 = vadd.f32 %v10263_v47, %v7448_v49  ;;  %8108 = vmatmul.mubr.bf16.gmra.mxu1 %v10326_v57 }
 0x3d5   : > { %v7451_v30 = vadd.f32 %v7450_v59, %v7449_v20  ;;  %v11028_v20 = vld [vmem:[#allocation20_spill] sm:$0xff] }
 0x3d6   : > { %v3625_v7 = vor.u32 %v3623_v41, %v3622_v10  ;;  %v3709_v43 = vor.u32 %v3708_v55, %v3620_v34  ;;  %v3519_v18 = vmax.f32 %v3487_v4, 0.0  ;;  %v7452_v31 = vpop.f32.mrf.mxu1  ;;  %v3449_v24 = vadd.f32 %v3401_v27, %v10015_v11 }
 0x3d7   : > { %v3404_v37 = vadd.f32 %v10289_v2, %v7451_v30 }
 0x3d8   : > { %v10337_v22 = vsel %vm9334_vm5, 0, %v3625_v7  ;;  %v3745_v47 = vsel %vm9348_vm6, %v3709_v43, 0  ;;  %v10341_v19 = vpack.c.bf16 %v3519_v18, %v3518_v35  ;;  %v7453_v26 = vpop.f32.mrf.mxu1  ;;  %v3488_v52 = vadd.f32 %v10300_v15, %v3449_v24  ;;  %v3411_v7 = vpop.f32.mrf.mxu0  ;;  %4764 = vmatmul.mubr.bf16.gmra.mxu0 %v10311_v45 }
 0x3d9   : > { %v6863_v5 = vcombine.low %v10337_v22, %v10315_v48  ;;  %v6864_v11 = vcombine.low %v3745_v47, %v3745_v47  ;;  %v6865_v2 = vcombine.high %v10337_v22, %v10315_v48  ;;  %v6866_v34 = vcombine.high %v3745_v47, %v3745_v47  ;;  %4771 = vmatprep.mubr.bf16.mxu0 %v10315_v48 }
 0x3da   : > { %v3627_v41 = vshrl.u32 %v10341_v19, 16  ;;  %v3630_v12 = vshll.u32 %v10341_v19, 16  ;;  %v3450_v49 = vadd.f32 %v3404_v37, %v11028_v20  ;;  %v7455_v10 = vpop.f32.mrf.mxu1  ;;  %v7454_v55 = vadd.f32 %v7453_v26, %v7452_v31  ;;  %v11029_v31 = vld [vmem:[#allocation22_spill] sm:$0xff]  ;;  %v11031_v20 = vld [vmem:[#allocation21_spill] sm:$0xff] }
 0x3db   : > { %4066 = vst [vmem:[#allocation2 + $0x120] sm:$0xff] %v6863_v5  ;;  %4067 = vst [vmem:[#allocation2 + $0x128] sm:$0xf] %v6864_v11  ;;  %v10353_v4 = vld [vmem:[#allocation2 + $0x110] ss:$12 sps:$4 sm:$0xff]   ;;  %v3520_v47 = vmax.f32 %v3488_v52, 0.0 }
 0x3dc   : > { %4068 = vst [vmem:[#allocation2 + $0x12c] sm:$0xff] %v6865_v2  ;;  %4069 = vst [vmem:[#allocation2 + $0x134] sm:$0xf] %v6866_v34  ;;  %v3629_v59 = vrot.slane %v3627_v41, 7  ;;  %v3710_v27 = vrot.slane %v3630_v12, 1  ;;  %v3489_v30 = vadd.f32 %v10300_v15, %v3450_v49  ;;  %v7456_v43 = vpop.f32.mrf.mxu1  ;;  %v3409_v35 = vadd.f32 %v7454_v55, %v3408_v13  ;;  %8111 = vmatprep.mubr.bf16.mxu1 %v10353_v4  ;;  %v11030_v34 = vld [vmem:[#allocation23_spill] sm:$0xff] }
 0x3dd   : > { %v7457_v18 = vadd.f32 %v7456_v43, %v7455_v10  ;;  %v2577_v49 = vadd.f32 %v11031_v20, %v11030_v34 }
 0x3de   : > { %v3632_v24 = vor.u32 %v3630_v12, %v3629_v59  ;;  %v3711_v37 = vor.u32 %v3710_v27, %v3627_v41  ;;  %v3521_v5 = vmax.f32 %v3489_v30, 0.0  ;;  %v7458_v11 = vpop.f32.mrf.mxu1  ;;  %v3451_v26 = vadd.f32 %v3409_v35, %v11029_v31 }
 0x3df   : > { %v3412_v2 = vadd.f32 %v7457_v18, %v3411_v7 }
 0x3e0   : > { %v10364_v13 = vsel %vm9334_vm5, 0, %v3632_v24  ;;  %v3746_v41 = vsel %vm9348_vm6, %v3711_v37, 0  ;;  %v10368_v12 = vpack.c.bf16 %v3521_v5, %v3520_v47  ;;  %v7459_v52 = vpop.f32.mrf.mxu1  ;;  %v3490_v43 = vadd.f32 %v10300_v15, %v3451_v26  ;;  %4772 = vmatmul.mubr.bf16.gmra.mxu0 %v10337_v22 }
 0x3e1   : > { %v6867_v10 = vcombine.low %v10364_v13, %v10341_v19  ;;  %v6868_v55 = vcombine.low %v3746_v41, %v3746_v41  ;;  %v6869_v59 = vcombine.high %v10364_v13, %v10341_v19  ;;  %v6870_v27 = vcombine.high %v3746_v41, %v3746_v41  ;;  %4779 = vmatprep.mubr.bf16.mxu0 %v10341_v19 }
 0x3e2   : > { %v3634_v30 = vshrl.u32 %v10368_v12, 16  ;;  %v3637_v7 = vshll.u32 %v10368_v12, 16  ;;  %v3452_v35 = vadd.f32 %v3412_v2, %v2577_v49  ;;  %v7461_v18 = vpop.f32.mrf.mxu1  ;;  %v7460_v24 = vadd.f32 %v7459_v52, %v7458_v11 }
 0x3e3   : > { %4070 = vst [vmem:[#allocation2 + $0x138] sm:$0xff] %v6867_v10  ;;  %4071 = vst [vmem:[#allocation2 + $0x140] sm:$0xf] %v6868_v55  ;;  %v10377_v37 = vld [vmem:[#allocation2 + $0x128] ss:$12 sps:$4 sm:$0xff]   ;;  %v3522_v49 = vmax.f32 %v3490_v43, 0.0 }
 0x3e4   : > { %4072 = vst [vmem:[#allocation2 + $0x144] sm:$0xff] %v6869_v59  ;;  %4073 = vst [vmem:[#allocation2 + $0x14c] sm:$0xf] %v6870_v27  ;;  %v3636_v47 = vrot.slane %v3634_v30, 7  ;;  %v3712_v5 = vrot.slane %v3637_v7, 1  ;;  %v3491_v31 = vadd.f32 %v10300_v15, %v3452_v35  ;;  %v7462_v34 = vpop.f32.mrf.mxu1  ;;  %v3417_v20 = vadd.f32 %v10317_v53, %v7460_v24  ;;  %8112 = vmatmul.mubr.bf16.gmra.mxu1 %v10377_v37 }
 0x3e5   : > { %v7463_v41 = vadd.f32 %v7462_v34, %v7461_v18 }
 0x3e6   : > { %v3639_v26 = vor.u32 %v3637_v7, %v3636_v47  ;;  %v3713_v2 = vor.u32 %v3712_v5, %v3634_v30  ;;  %v3523_v10 = vmax.f32 %v3491_v31, 0.0  ;;  %v3453_v11 = vadd.f32 %v3417_v20, %v10031_v44 }
 0x3e7   : > { %v3420_v52 = vadd.f32 %v10343_v33, %v7463_v41 }
 0x3e8   : > { %v10388_v55 = vsel %vm9334_vm5, 0, %v3639_v26  ;;  %v3747_v53 = vsel %vm9348_vm6, %v3713_v2, 0  ;;  %v10392_v59 = vpack.c.bf16 %v3523_v10, %v3522_v49  ;;  %v3492_v35 = vadd.f32 %v10300_v15, %v3453_v11  ;;  %4780 = vmatmul.mubr.bf16.gmra.mxu0 %v10364_v13 }
 0x3e9   : > { %v6871_v27 = vcombine.low %v10388_v55, %v10368_v12  ;;  %v6872_v30 = vcombine.low %v3747_v53, %v3747_v53  ;;  %v6873_v44 = vcombine.high %v10388_v55, %v10368_v12  ;;  %v6874_v7 = vcombine.high %v3747_v53, %v3747_v53  ;;  %4787 = vmatprep.mubr.bf16.mxu0 %v10368_v12 }
 0x3ea   : > { %v3641_v33 = vshrl.u32 %v10392_v59, 16  ;;  %v3644_v43 = vshll.u32 %v10392_v59, 16  ;;  %v3454_v18 = vadd.f32 %v3420_v52, %v10034_v51  ;;  %v3524_v41 = vmax.f32 %v3492_v35, 0.0 }
 0x3eb   : > { %4074 = vst [vmem:[#allocation2 + $0x150] sm:$0xff] %v6871_v27  ;;  %4075 = vst [vmem:[#allocation2 + $0x158] sm:$0xf] %v6872_v30  ;;  %v10402_v24 = vld [vmem:[#allocation2 + $0x140] ss:$12 sps:$4 sm:$0xff]  }
 0x3ec   : > { %4076 = vst [vmem:[#allocation2 + $0x15c] sm:$0xff] %v6873_v44  ;;  %4077 = vst [vmem:[#allocation2 + $0x164] sm:$0xf] %v6874_v7  ;;  %v3643_v47 = vrot.slane %v3641_v33, 7  ;;  %v3714_v5 = vrot.slane %v3644_v43, 1  ;;  %v3493_v31 = vadd.f32 %v10300_v15, %v3454_v18  ;;  %8115 = vmatprep.mubr.bf16.mxu1 %v10402_v24 }
 0x3ee   : > { %v3646_v34 = vor.u32 %v3644_v43, %v3643_v47  ;;  %v3715_v20 = vor.u32 %v3714_v5, %v3641_v33  ;;  %v3525_v26 = vmax.f32 %v3493_v31, 0.0 }
 0x3f0   : > { %v10410_v51 = vsel %vm9334_vm5, 0, %v3646_v34  ;;  %v3748_v2 = vsel %vm9348_vm6, %v3715_v20, 0  ;;  %v3541_v49 = vpack.c.bf16 %v3525_v26, %v3524_v41  ;;  %4788 = vmatmul.mubr.bf16.gmra.mxu0 %v10388_v55  ;;  %v10431_v41 = vcombine.high %v8592_v32, %v8592_v32  ;;  %v8500_v26 = vld [vmem:[#allocation2 + $0x8] ss:$12 sps:$4 sm:$0xff]  }
 0x3f1   : > { %v6875_v15 = vcombine.low %v10410_v51, %v10392_v59  ;;  %v6876_v10 = vcombine.low %v3748_v2, %v3748_v2  ;;  %v6877_v11 = vcombine.high %v10410_v51, %v10392_v59  ;;  %v6878_v52 = vcombine.high %v3748_v2, %v3748_v2  ;;  %4795 = vmatprep.mubr.bf16.mxu0 %v10392_v59 }
 0x3f2   : > { %v3648_v53 = vshrl.u32 %v3541_v49, 16  ;;  %v3651_v27 = vshll.u32 %v3541_v49, 16  ;;  %v10434_v2 = vcombine.low %v8592_v32, %v8592_v32  ;;  %v8516_v32 = vld [vmem:[#allocation11 + $0x1c8] sm:$0xff]  }
 0x3f3   : > { %4078 = vst [vmem:[#allocation2 + $0x168] sm:$0xff] %v6875_v15  ;;  %4079 = vst [vmem:[#allocation2 + $0x170] sm:$0xf] %v6876_v10  ;;  %v10418_v30 = vld [vmem:[#allocation2 + $0x158] ss:$12 sps:$4 sm:$0xff]   ;;  %v8502_v10 = vld [vmem:[#allocation11 + $0x1b8] sm:$0xff]  }
 0x3f4   : > { %4080 = vst [vmem:[#allocation2 + $0x174] sm:$0xff] %v6877_v11  ;;  %4081 = vst [vmem:[#allocation2 + $0x17c] sm:$0xf] %v6878_v52  ;;  %v3650_v44 = vrot.slane %v3648_v53, 7  ;;  %v3716_v7 = vrot.slane %v3651_v27, 1  ;;  %8116 = vmatmul.mubr.bf16.gmra.mxu1 %v10418_v30  ;;  %v8508_v15 = vld [vmem:[#allocation11 + $0x230] sm:$0xff]  }
 0x3f5   : > { %v8504_v11 = vld [vmem:[#allocation11 + $0x1f0] sm:$0xff]   ;;  %v8513_v52 = vld [vmem:[#allocation11 + $0x228] sm:$0xff]  }
 0x3f6   : > { %v3653_v33 = vor.u32 %v3651_v27, %v3650_v44  ;;  %v3717_v43 = vor.u32 %v3716_v7, %v3648_v53  ;;  %v8594_v53 = vld [vmem:[#allocation2 + $0x38] ss:$12 sps:$4 sm:$0xff]   ;;  %v8518_v7 = vld [vmem:[#allocation11 + $0x220] sm:$0xff]  }
 0x3f7   : > { %v8505_v27 = vld [vmem:[#allocation11 + $0x1b0] sm:$0xff]   ;;  %v8506_v44 = vld [vmem:[#allocation11 + $0x1e8] sm:$0xff]  }
 0x3f8   : > { %v3685_v35 = vsel %vm9334_vm5, 0, %v3653_v33  ;;  %v3749_v18 = vsel %vm9348_vm6, %v3717_v43, 0  ;;  %4796 = vmatmul.mubr.bf16.gmra.mxu0 %v10410_v51  ;;  %v8507_v33 = vld [vmem:[#allocation11 + $0x1a8] sm:$0xff]   ;;  %v8527_v43 = vld [vmem:[#allocation11 + $0x218] sm:$0xff]  }
 0x3f9   : > { %v6879_v47 = vcombine.low %v3685_v35, %v3541_v49  ;;  %v6880_v5 = vcombine.low %v3749_v18, %v3749_v18  ;;  %v6881_v31 = vcombine.high %v3685_v35, %v3541_v49  ;;  %v6882_v34 = vcombine.high %v3749_v18, %v3749_v18  ;;  %4803 = vmatprep.mubr.bf16.mxu0 %v3541_v49  ;;  %v8593_v49 = vld [vmem:[#allocation2 + $0x20] ss:$12 sps:$4 sm:$0xff]   ;;  %v8510_v18 = vld [vmem:[#allocation11 + $0x1a0] sm:$0xff]  }
 0x3fb   : > { %v10427_v20 = vld [vmem:[#allocation2 + $0x170] ss:$12 sps:$4 sm:$0xff]   ;;  %4082 = vst [vmem:[#allocation2 + $0x180] sm:$0xff] %v6879_v47  ;;  %4083 = vst [vmem:[#allocation2 + $0x188] sm:$0xf] %v6880_v5  ;;  %v8511_v47 = vld [vmem:[#allocation11 + $0x1d8] sm:$0xff]  }
 0x3fc   : > { %4084 = vst [vmem:[#allocation2 + $0x18c] sm:$0xff] %v6881_v31  ;;  %4085 = vst [vmem:[#allocation2 + $0x194] sm:$0xf] %v6882_v34  ;;  %8119 = vmatprep.mubr.bf16.mxu1 %v10427_v20  ;;  %v8534_v5 = vld [vmem:[#allocation11 + $0x210] sm:$0xff]   ;;  %v8541_v31 = vld [vmem:[#allocation11 + $0x208] sm:$0xff]  }
 0x3fd   : > { %v8515_v34 = vld [vmem:[#allocation11 + $0x190] sm:$0xff]  }
 0x400   : > { %4804 = vmatmul.mubr.bf16.gmra.mxu0 %v3685_v35  ;;  %v8596_v35 = vld [vmem:[#allocation2 + $0x68] ss:$12 sps:$4 sm:$0xff]  }
 0x401   : > { %8139 = vmatprep.mubr.bf16.mxu0 %v8500_v26 }
 0x403   : > { %v8497_v54 = vld [vmem:[#allocation2 + $0x188] ss:$12 sps:$4 sm:$0xff]  }
 0x404   : > { %8120 = vmatmul.mubr.bf16.gmra.mxu1 %v8497_v54  ;;  %v8548_v54 = vld [vmem:[#allocation11 + $0x200] sm:$0xff]  }
 0x405   : > { %5165 = vmatprep.mubr.bf16.mxu1 %v10431_v41 }
 0x408   : > { %8140 = vmatmul.mubr.bf16.vlgmr.msra.gmra.mxu0 %v8593_v49 }
 0x409   : > { %7761 = vmatpush3.bf16.msra.mxu0 %v8502_v10  ;;  %8143 = vmatprep.mubr.bf16.mxu0 %v8594_v53 }
 0x40a   : > { %7762 = vmatprep.subr.bf16.mxu0 %v8504_v11 }
 0x40c   : > { %5166 = vmatmul.mubr.bf16.vlgmr.msra.gmra.mxu1 %v10434_v2 }
 0x40d   : > { %5173 = vmatprep.mubr.bf16.mxu1 %v10051_v62  ;;  %8172 = vmatpush3.bf16.msra.mxu1 %v10207_v8  ;;  %v8509_v62 = vld [vmem:[#allocation11 + $0x1e0] sm:$0xff]  }
 0x40e   : > { %8173 = vmatprep.subr.bf16.mxu1 %v8508_v15  ;;  %7763 = vmatpush3.bf16.msra.mxu0 %v8505_v27  ;;  %v8595_v8 = vld [vmem:[#allocation2 + $0x50] ss:$12 sps:$4 sm:$0xff]  }
 0x40f   : > { %7764 = vmatprep.subr.bf16.mxu0 %v8506_v44 }
 0x410   : > { %8144 = vmatmul.mubr.bf16.gmra.mxu0 %v8595_v8 }
 0x411   : > { %8174 = vmatpush3.bf16.msra.mxu1 %v8508_v15  ;;  %8147 = vmatprep.mubr.bf16.mxu0 %v8596_v35 }
 0x412   : > { %8175 = vmatprep.subr.bf16.mxu1 %v8513_v52  ;;  %7765 = vmatpush3.bf16.msra.mxu0 %v8507_v33 }
 0x413   : > { %7766 = vmatprep.subr.bf16.mxu0 %v8509_v62 }
 0x414   : > { %5174 = vmatmul.mubr.bf16.gmra.mxu1 %v10068_v39  ;;  %v8512_v39 = vld [vmem:[#allocation11 + $0x198] sm:$0xff]  }
 0x415   : > { %5181 = vmatprep.mubr.bf16.mxu1 %v10053_v63  ;;  %8176 = vmatpush3.bf16.msra.mxu1 %v8513_v52  ;;  %v8514_v63 = vld [vmem:[#allocation11 + $0x1d0] sm:$0xff]  }
 0x416   : > { %8177 = vmatprep.subr.bf16.mxu1 %v8518_v7  ;;  %7767 = vmatpush3.bf16.msra.mxu0 %v8510_v18  ;;  %v8531_v52 = vld [vmem:[#allocation2 + $0x78] ss:$12 sps:$4 sm:$0xff]  }
 0x417   : > { %7768 = vmatprep.subr.bf16.mxu0 %v8511_v47 }
 0x418   : > { %8148 = vmatmul.mubr.bf16.gmra.mxu0 %v10186_v14  ;;  %v8520_v14 = vld [vmem:[#allocation11 + $0x180] sm:$0xff]  }
 0x419   : > { %8178 = vmatpush3.bf16.msra.mxu1 %v8518_v7  ;;  %8151 = vmatprep.mubr.bf16.mxu0 %v10214_v23 }
 0x41a   : > { %8179 = vmatprep.subr.bf16.mxu1 %v8527_v43  ;;  %7769 = vmatpush3.bf16.msra.mxu0 %v8512_v39 }
 0x41b   : > { %7770 = vmatprep.subr.bf16.mxu0 %v8514_v63 }
 0x41c   : > { %5182 = vmatmul.mubr.bf16.gmra.mxu1 %v10074_v36  ;;  %v8517_v36 = vld [vmem:[#allocation11 + $0x188] sm:$0xff]  }
 0x41d   : > { %5189 = vmatprep.mubr.bf16.mxu1 %v10084_v42  ;;  %8180 = vmatpush3.bf16.msra.mxu1 %v8527_v43  ;;  %v8519_v42 = vld [vmem:[#allocation11 + $0x1c0] sm:$0xff]  }
 0x41e   : > { %8181 = vmatprep.subr.bf16.mxu1 %v8534_v5  ;;  %7771 = vmatpush3.bf16.msra.mxu0 %v8515_v34 }
 0x41f   : > { %7772 = vmatprep.subr.bf16.mxu0 %v8516_v32 }
 0x420   : > { %8152 = vmatmul.mubr.bf16.gmra.mxu0 %v10242_v58  ;;  %v8530_v58 = vld [vmem:[#allocation2 + $0x64] ss:$12 sps:$4 sm:$0xff]  }
 0x421   : > { %8182 = vmatpush3.bf16.msra.mxu1 %v8534_v5  ;;  %8155 = vmatprep.mubr.bf16.mxu0 %v10268_v28 }
 0x422   : > { %8183 = vmatprep.subr.bf16.mxu1 %v8541_v31  ;;  %7773 = vmatpush3.bf16.msra.mxu0 %v8517_v36 }
 0x423   : > { %7774 = vmatprep.subr.bf16.mxu0 %v8519_v42  ;;  %v8538_v42 = vld [vmem:[#allocation2 + $0xa8] ss:$12 sps:$4 sm:$0xff]  }
 0x424   : > { %5190 = vmatmul.mubr.bf16.gmra.mxu1 %v10100_v29  ;;  %v8523_v29 = vld [vmem:[#allocation2 + $0x34] ss:$12 sps:$4 sm:$0xff]  }
 0x425   : > { %5197 = vmatprep.mubr.bf16.mxu1 %v10106_v56  ;;  %8184 = vmatpush3.bf16.msra.mxu1 %v8541_v31  ;;  %v8521_v56 = vld [vmem:[#allocation2 + $0x30] ss:$12 sps:$4 sm:$0xff]  }
 0x426   : > { %8185 = vmatprep.subr.bf16.mxu1 %v8548_v54  ;;  %7775 = vmatpush3.bf16.msra.mxu0 %v8520_v14 }
 0x428   : > { %8156 = vmatmul.mubr.bf16.gmra.mxu0 %v10295_v40 }
 0x429   : > { %8186 = vmatpush3.bf16.msra.mxu1 %v8548_v54  ;;  %8159 = vmatprep.mubr.bf16.mxu0 %v10326_v57 }
 0x42c   : > { %5198 = vmatmul.mubr.bf16.gmra.mxu1 %v10129_v1 }
 0x42d   : > { %5205 = vmatprep.mubr.bf16.mxu1 %v10121_v50  ;;  %v8526_v50 = vld [vmem:[#allocation2 + $0x4c] ss:$12 sps:$4 sm:$0xff]  }
 0x430   : > { %8160 = vmatmul.mubr.bf16.gmra.mxu0 %v10353_v4 }
 0x431   : > { %8163 = vmatprep.mubr.bf16.mxu0 %v10377_v37 }
 0x434   : > { %5206 = vmatmul.mubr.bf16.gmra.mxu1 %v10147_v17 }
 0x435   : > { %5213 = vmatprep.mubr.bf16.mxu1 %v10151_v6 }
 0x438   : > { %8164 = vmatmul.mubr.bf16.gmra.mxu0 %v10402_v24  ;;  %v8528_v24 = vld [vmem:[#allocation2 + $0x60] ss:$12 sps:$4 sm:$0xff]  }
 0x439   : > { %8167 = vmatprep.mubr.bf16.mxu0 %v10418_v30 }
 0x43c   : > { %5214 = vmatmul.mubr.bf16.gmra.mxu1 %v10170_v16 }
 0x43d   : > { %5221 = vmatprep.mubr.bf16.mxu1 %v10174_v9  ;;  %v8524_v9 = vld [vmem:[#allocation2 + $0x48] ss:$12 sps:$4 sm:$0xff]  }
 0x440   : > { %8168 = vmatmul.mubr.bf16.gmra.mxu0 %v10427_v20 }
 0x441   : > { %6000 = vmatprep.mubr.bf16.mxu0 %v8523_v29 }
 0x444   : > { %5222 = vmatmul.mubr.bf16.gmra.mxu1 %v10197_v61 }
 0x445   : > { %5229 = vmatprep.mubr.bf16.mxu1 %v10201_v38 }
 0x448   : > { %v7504_v1 = vpop.f32.mrf.mxu0  ;;  %6001 = vmatmul.mubr.bf16.vlgmr.msra.gmra.mxu0 %v8521_v56 }
 0x449   : > { %6008 = vmatprep.mubr.bf16.mxu0 %v8526_v50 }
 0x44a   : > { %v7505_v17 = vpop.f32.mrf.mxu0 }
 0x44b   : > { %v7506_v6 = vadd.f32 %v7505_v17, %v7504_v1 }
 0x44c   : > { %5230 = vmatmul.mubr.bf16.gmra.mxu1 %v10226_v60  ;;  %v7507_v16 = vpop.f32.mrf.mxu0 }
 0x44d   : > { %5237 = vmatprep.mubr.bf16.mxu1 %v10230_v3 }
 0x44e   : > { %v7508_v61 = vpop.f32.mrf.mxu0 }
 0x44f   : > { %v10467_v38 = vadd.f32 %v7508_v61, %v7507_v16 }
 0x450   : > { %v7510_v60 = vpop.f32.mrf.mxu0  ;;  %6009 = vmatmul.mubr.bf16.gmra.mxu0 %v8524_v9 }
 0x451   : > { %6016 = vmatprep.mubr.bf16.mxu0 %v8530_v58  ;;  %v8542_v58 = vld [vmem:[#allocation2 + $0xc0] ss:$12 sps:$4 sm:$0xff]  }
 0x452   : > { %v7511_v40 = vpop.f32.mrf.mxu0 }
 0x453   : > { %v7512_v57 = vadd.f32 %v7511_v40, %v7510_v60 }
 0x454   : > { %5238 = vmatmul.mubr.bf16.gmra.mxu1 %v10253_v0  ;;  %v8093_v23 = vpop.f32.mrf.mxu1  ;;  %v7513_v4 = vpop.f32.mrf.mxu0 }
 0x455   : > { %5245 = vmatprep.mubr.bf16.mxu1 %v10257_v25  ;;  %v10472_v37 = vadd.f32 %v8093_v23, %v7512_v57  ;;  %v8533_v25 = vld [vmem:[#allocation2 + $0x7c] ss:$12 sps:$4 sm:$0xff]  }
 0x456   : > { %v4846_v3 = vpop.f32.mrf.mxu1  ;;  %v7514_v30 = vpop.f32.mrf.mxu0 }
 0x457   : > { %v10470_v28 = vadd.f32 %v7506_v6, %v4846_v3  ;;  %v7515_v0 = vadd.f32 %v7514_v30, %v7513_v4  ;;  %v8547_v3 = vld [vmem:[#allocation2 + $0xdc] ss:$12 sps:$4 sm:$0xff]  }
 0x458   : > { %v8094_v20 = vpop.f32.mrf.mxu1  ;;  %v7516_v26 = vpop.f32.mrf.mxu0  ;;  %6017 = vmatmul.mubr.bf16.gmra.mxu0 %v8528_v24 }
 0x459   : > { %v10476_v15 = vadd.f32 %v8094_v20, %v7515_v0  ;;  %6024 = vmatprep.mubr.bf16.mxu0 %v8533_v25  ;;  %v8549_v0 = vld [vmem:[#allocation2 + $0x38] ss:$12 sps:$4 sm:$0xff]  }
 0x45a   : > { %v7517_v10 = vpop.f32.mrf.mxu0  ;;  %v10479_v27 = vpop.f32.mrf.mxu1  ;;  %v8545_v25 = vld [vmem:[#allocation2 + $0xd8] ss:$12 sps:$4 sm:$0xff]  }
 0x45b   : > { %v7518_v11 = vadd.f32 %v7517_v10, %v7516_v26 }
 0x45c   : > { %5246 = vmatmul.mubr.bf16.gmra.mxu1 %v10279_v21  ;;  %v7519_v49 = vpop.f32.mrf.mxu0 }
 0x45d   : > { %5253 = vmatprep.mubr.bf16.mxu1 %v10283_v46  ;;  %v8537_v46 = vld [vmem:[#allocation2 + $0x94] ss:$12 sps:$4 sm:$0xff]  }
 0x45e   : > { %v7520_v53 = vpop.f32.mrf.mxu0 }
 0x45f   : > { %v10481_v21 = vadd.f32 %v7520_v53, %v7519_v49 }
 0x460   : > { %v7522_v44 = vpop.f32.mrf.mxu0  ;;  %6025 = vmatmul.mubr.bf16.gmra.mxu0 %v8531_v52 }
 0x461   : > { %6032 = vmatprep.mubr.bf16.mxu0 %v8537_v46 }
 0x462   : > { %v7523_v33 = vpop.f32.mrf.mxu0 }
 0x463   : > { %v7524_v8 = vadd.f32 %v7523_v33, %v7522_v44 }
 0x464   : > { %5254 = vmatmul.mubr.bf16.gmra.mxu1 %v10311_v45  ;;  %v7525_v35 = vpop.f32.mrf.mxu0  ;;  %v8535_v45 = vld [vmem:[#allocation2 + $0x90] ss:$12 sps:$4 sm:$0xff]  }
 0x465   : > { %5261 = vmatprep.mubr.bf16.mxu1 %v10315_v48  ;;  %v8540_v48 = vld [vmem:[#allocation2 + $0xac] ss:$12 sps:$4 sm:$0xff]  }
 0x466   : > { %v8097_v7 = vpop.f32.mrf.mxu1  ;;  %v7526_v47 = vpop.f32.mrf.mxu0 }
 0x467   : > { %v10486_v18 = vadd.f32 %v8097_v7, %v7524_v8  ;;  %v7527_v5 = vadd.f32 %v7526_v47, %v7525_v35  ;;  %v8553_v7 = vld [vmem:[#allocation2 + $0x50] ss:$12 sps:$4 sm:$0xff]   ;;  %v8554_v8 = vld [vmem:[#allocation2 + $0x68] ss:$12 sps:$4 sm:$0xff]  }
 0x468   : > { %v4862_v62 = vpop.f32.mrf.mxu1  ;;  %v7528_v63 = vpop.f32.mrf.mxu0  ;;  %6033 = vmatmul.mubr.bf16.gmra.mxu0 %v8535_v45 }
 0x469   : > { %v10484_v43 = vadd.f32 %v7518_v11, %v4862_v62  ;;  %6040 = vmatprep.mubr.bf16.mxu0 %v8540_v48 }
 0x46a   : > { %v8098_v39 = vpop.f32.mrf.mxu1  ;;  %v7529_v34 = vpop.f32.mrf.mxu0 }
 0x46b   : > { %v10490_v31 = vadd.f32 %v8098_v39, %v7527_v5  ;;  %v7530_v32 = vadd.f32 %v7529_v34, %v7528_v63  ;;  %v8557_v5 = vld [vmem:[#allocation2 + $0x10c] ss:$12 sps:$4 sm:$0xff]  }
 0x46c   : > { %5262 = vmatmul.mubr.bf16.gmra.mxu1 %v10337_v22  ;;  %v7531_v54 = vpop.f32.mrf.mxu0  ;;  %v10492_v36 = vpop.f32.mrf.mxu1 }
 0x46d   : > { %5269 = vmatprep.mubr.bf16.mxu1 %v10341_v19  ;;  %v8544_v19 = vld [vmem:[#allocation2 + $0xc4] ss:$12 sps:$4 sm:$0xff]  }
 0x46e   : > { %v7532_v14 = vpop.f32.mrf.mxu0 }
 0x46f   : > { %v7533_v22 = vadd.f32 %v7532_v14, %v7531_v54  ;;  %v8558_v54 = vld [vmem:[#allocation2 + $0x80] ss:$12 sps:$4 sm:$0xff]   ;;  %v8555_v14 = vld [vmem:[#allocation2 + $0x108] ss:$12 sps:$4 sm:$0xff]  }
 0x470   : > { %v7534_v56 = vpop.f32.mrf.mxu0  ;;  %6041 = vmatmul.mubr.bf16.gmra.mxu0 %v8538_v42  ;;  %v8559_v42 = vld [vmem:[#allocation2 + $0x98] ss:$12 sps:$4 sm:$0xff]  }
 0x471   : > { %6048 = vmatprep.mubr.bf16.mxu0 %v8544_v19 }
 0x472   : > { %v7535_v17 = vpop.f32.mrf.mxu0 }
 0x473   : > { %v7536_v6 = vadd.f32 %v7535_v17, %v7534_v56  ;;  %v8562_v56 = vld [vmem:[#allocation2 + $0x124] ss:$12 sps:$4 sm:$0xff]  }
 0x474   : > { %5270 = vmatmul.mubr.bf16.gmra.mxu1 %v10364_v13  ;;  %v8101_v29 = vpop.f32.mrf.mxu1  ;;  %v7537_v9 = vpop.f32.mrf.mxu0 }
 0x475   : > { %5277 = vmatprep.mubr.bf16.mxu1 %v10368_v12  ;;  %v10498_v61 = vadd.f32 %v8101_v29, %v7536_v6 }
 0x476   : > { %v4878_v50 = vpop.f32.mrf.mxu1  ;;  %v7538_v60 = vpop.f32.mrf.mxu0 }
 0x477   : > { %v10496_v1 = vadd.f32 %v7530_v32, %v4878_v50  ;;  %v7539_v12 = vadd.f32 %v7538_v60, %v7537_v9  ;;  %v8563_v60 = vld [vmem:[#allocation2 + $0xb0] ss:$12 sps:$4 sm:$0xff]  }
 0x478   : > { %v8102_v16 = vpop.f32.mrf.mxu1  ;;  %v7540_v40 = vpop.f32.mrf.mxu0  ;;  %6049 = vmatmul.mubr.bf16.gmra.mxu0 %v8542_v58 }
 0x479   : > { %v10504_v57 = vadd.f32 %v8102_v16, %v7539_v12  ;;  %6056 = vmatprep.mubr.bf16.mxu0 %v8547_v3 }
 0x47a   : > { %v4881_v23 = vpop.f32.mrf.mxu1  ;;  %v7541_v4 = vpop.f32.mrf.mxu0 }
 0x47b   : > { %v10500_v13 = vadd.f32 %v7533_v22, %v4881_v23  ;;  %v7542_v24 = vadd.f32 %v7541_v4, %v7540_v40  ;;  %v8564_v40 = vld [vmem:[#allocation2 + $0xc8] ss:$12 sps:$4 sm:$0xff]   ;;  %v8560_v4 = vld [vmem:[#allocation2 + $0x120] ss:$12 sps:$4 sm:$0xff]  }
 0x47c   : > { %5278 = vmatmul.mubr.bf16.gmra.mxu1 %v10388_v55  ;;  %v7543_v30 = vpop.f32.mrf.mxu0  ;;  %v8552_v55 = vld [vmem:[#allocation2 + $0xf4] ss:$12 sps:$4 sm:$0xff]  }
 0x47d   : > { %5285 = vmatprep.mubr.bf16.mxu1 %v10392_v59 }
 0x47e   : > { %v7544_v20 = vpop.f32.mrf.mxu0 }
 0x47f   : > { %v7545_v26 = vadd.f32 %v7544_v20, %v7543_v30 }
 0x480   : > { %v7546_v11 = vpop.f32.mrf.mxu0  ;;  %6057 = vmatmul.mubr.bf16.gmra.mxu0 %v8545_v25  ;;  %v8567_v25 = vld [vmem:[#allocation2 + $0x13c] ss:$12 sps:$4 sm:$0xff]  }
 0x481   : > { %6064 = vmatprep.mubr.bf16.mxu0 %v8552_v55 }
 0x482   : > { %v7547_v52 = vpop.f32.mrf.mxu0 }
 0x483   : > { %v7548_v53 = vadd.f32 %v7547_v52, %v7546_v11  ;;  %v8569_v52 = vld [vmem:[#allocation2 + $0xf8] ss:$12 sps:$4 sm:$0xff]  }
 0x484   : > { %5286 = vmatmul.mubr.bf16.gmra.mxu1 %v10410_v51  ;;  %v8105_v10 = vpop.f32.mrf.mxu1  ;;  %v7549_v44 = vpop.f32.mrf.mxu0  ;;  %v8550_v51 = vld [vmem:[#allocation2 + $0xf0] ss:$12 sps:$4 sm:$0xff]  }
 0x485   : > { %8187 = vmatprep.mubr.bf16.mxu1 %v8549_v0  ;;  %v10509_v33 = vadd.f32 %v8105_v10, %v7548_v53  ;;  %v8565_v53 = vld [vmem:[#allocation2 + $0x138] ss:$12 sps:$4 sm:$0xff]  }
 0x486   : > { %v4894_v59 = vpop.f32.mrf.mxu1  ;;  %v7550_v45 = vpop.f32.mrf.mxu0 }
 0x487   : > { %v10507_v49 = vadd.f32 %v7542_v24, %v4894_v59  ;;  %v7551_v47 = vadd.f32 %v7550_v45, %v7549_v44  ;;  %v8568_v59 = vld [vmem:[#allocation2 + $0xe0] ss:$12 sps:$4 sm:$0xff]  }
 0x488   : > { %v8106_v46 = vpop.f32.mrf.mxu1  ;;  %v7552_v48 = vpop.f32.mrf.mxu0  ;;  %6065 = vmatmul.mubr.bf16.gmra.mxu0 %v8550_v51 }
 0x489   : > { %v10513_v39 = vadd.f32 %v8106_v46, %v7551_v47  ;;  %6072 = vmatprep.mubr.bf16.mxu0 %v8557_v5 }
 0x48a   : > { %v4897_v62 = vpop.f32.mrf.mxu1  ;;  %v7553_v63 = vpop.f32.mrf.mxu0 }
 0x48b   : > { %v10511_v35 = vadd.f32 %v7545_v26, %v4897_v62  ;;  %v7554_v34 = vadd.f32 %v7553_v63, %v7552_v48  ;;  %v8572_v62 = vld [vmem:[#allocation2 + $0x154] ss:$12 sps:$4 sm:$0xff]  }
 0x48c   : > { %8188 = vmatmul.mubr.bf16.vlgmr.msra.gmra.mxu1 %v8553_v7  ;;  %v7555_v32 = vpop.f32.mrf.mxu0 }
 0x48d   : > { %8191 = vmatprep.mubr.bf16.mxu1 %v8554_v8 }
 0x48e   : > { %v7556_v22 = vpop.f32.mrf.mxu0 }
 0x48f   : > { %v7557_v29 = vadd.f32 %v7556_v22, %v7555_v32 }
 0x490   : > { %v7558_v50 = vpop.f32.mrf.mxu0  ;;  %6073 = vmatmul.mubr.bf16.gmra.mxu0 %v8555_v14  ;;  %v8570_v14 = vld [vmem:[#allocation2 + $0x150] ss:$12 sps:$4 sm:$0xff]  }
 0x491   : > { %6080 = vmatprep.mubr.bf16.mxu0 %v8562_v56  ;;  %v8577_v56 = vld [vmem:[#allocation2 + $0x16c] ss:$12 sps:$4 sm:$0xff]  }
 0x492   : > { %v7559_v16 = vpop.f32.mrf.mxu0 }
 0x493   : > { %v7560_v9 = vadd.f32 %v7559_v16, %v7558_v50 }
 0x494   : > { %8192 = vmatmul.mubr.bf16.gmra.mxu1 %v8558_v54  ;;  %v8109_v19 = vpop.f32.mrf.mxu1  ;;  %v7561_v58 = vpop.f32.mrf.mxu0 }
 0x495   : > { %8195 = vmatprep.mubr.bf16.mxu1 %v8559_v42  ;;  %v10517_v12 = vadd.f32 %v8109_v19, %v7560_v9  ;;  %v8574_v42 = vld [vmem:[#allocation2 + $0x128] ss:$12 sps:$4 sm:$0xff]  }
 0x496   : > { %v4910_v17 = vpop.f32.mrf.mxu1  ;;  %v7562_v30 = vpop.f32.mrf.mxu0 }
 0x497   : > { %v10515_v6 = vadd.f32 %v7554_v34, %v4910_v17  ;;  %v7563_v0 = vadd.f32 %v7562_v30, %v7561_v58  ;;  %v8573_v34 = vld [vmem:[#allocation2 + $0x110] ss:$12 sps:$4 sm:$0xff]   ;;  %v8578_v58 = vld [vmem:[#allocation2 + $0x140] ss:$12 sps:$4 sm:$0xff]  }
 0x498   : > { %v8110_v23 = vpop.f32.mrf.mxu1  ;;  %v7564_v20 = vpop.f32.mrf.mxu0  ;;  %6081 = vmatmul.mubr.bf16.gmra.mxu0 %v8560_v4 }
 0x499   : > { %v10521_v26 = vadd.f32 %v8110_v23, %v7563_v0  ;;  %6088 = vmatprep.mubr.bf16.mxu0 %v8567_v25  ;;  %v8582_v0 = vld [vmem:[#allocation2 + $0x184] ss:$12 sps:$4 sm:$0xff]  }
 0x49a   : > { %v4913_v3 = vpop.f32.mrf.mxu1  ;;  %v7565_v10 = vpop.f32.mrf.mxu0 }
 0x49b   : > { %v10519_v24 = vadd.f32 %v7557_v29, %v4913_v3  ;;  %v7566_v55 = vadd.f32 %v7565_v10, %v7564_v20  ;;  %v8575_v3 = vld [vmem:[#allocation2 + $0x168] ss:$12 sps:$4 sm:$0xff]  }
 0x49c   : > { %8196 = vmatmul.mubr.bf16.gmra.mxu1 %v8563_v60  ;;  %v7567_v11 = vpop.f32.mrf.mxu0  ;;  %v8579_v60 = vld [vmem:[#allocation2 + $0x158] ss:$12 sps:$4 sm:$0xff]  }
 0x49d   : > { %8199 = vmatprep.mubr.bf16.mxu1 %v8564_v40 }
 0x49e   : > { %v7568_v46 = vpop.f32.mrf.mxu0 }
 0x49f   : > { %v7569_v44 = vadd.f32 %v7568_v46, %v7567_v11 }
 0x4a0   : > { %v7570_v8 = vpop.f32.mrf.mxu0  ;;  %6089 = vmatmul.mubr.bf16.gmra.mxu0 %v8565_v53  ;;  %v8583_v53 = vld [vmem:[#allocation2 + $0x170] ss:$12 sps:$4 sm:$0xff]  }
 0x4a1   : > { %6096 = vmatprep.mubr.bf16.mxu0 %v8572_v62  ;;  %v8580_v62 = vld [vmem:[#allocation2 + $0x180] ss:$12 sps:$4 sm:$0xff]  }
 0x4a2   : > { %v7571_v47 = vpop.f32.mrf.mxu0 }
 0x4a3   : > { %v7572_v5 = vadd.f32 %v7571_v47, %v7570_v8 }
 0x4a4   : > { %8200 = vmatmul.mubr.bf16.gmra.mxu1 %v8568_v59  ;;  %v8113_v7 = vpop.f32.mrf.mxu1  ;;  %v7573_v63 = vpop.f32.mrf.mxu0 }
 0x4a5   : > { %8203 = vmatprep.mubr.bf16.mxu1 %v8569_v52  ;;  %v10525_v32 = vadd.f32 %v8113_v7, %v7572_v5  ;;  %v8584_v7 = vld [vmem:[#allocation2 + $0x188] ss:$12 sps:$4 sm:$0xff]  }
 0x4a6   : > { %v4926_v51 = vpop.f32.mrf.mxu1  ;;  %v7574_v29 = vpop.f32.mrf.mxu0 }
 0x4a7   : > { %v10523_v45 = vadd.f32 %v7566_v55, %v4926_v51  ;;  %v7575_v19 = vadd.f32 %v7574_v29, %v7573_v63 }
 0x4a8   : > { %v8114_v48 = vpop.f32.mrf.mxu1  ;;  %v7576_v50 = vpop.f32.mrf.mxu0  ;;  %6097 = vmatmul.mubr.bf16.gmra.mxu0 %v8570_v14 }
 0x4a9   : > { %v10529_v17 = vadd.f32 %v8114_v48, %v7575_v19  ;;  %6104 = vmatprep.mubr.bf16.mxu0 %v8577_v56 }
 0x4aa   : > { %v4929_v54 = vpop.f32.mrf.mxu1  ;;  %v7577_v16 = vpop.f32.mrf.mxu0 }
 0x4ab   : > { %v10527_v22 = vadd.f32 %v7569_v44, %v4929_v54  ;;  %v7578_v9 = vadd.f32 %v7577_v16, %v7576_v50 }
 0x4ac   : > { %8204 = vmatmul.mubr.bf16.gmra.mxu1 %v8573_v34  ;;  %v7579_v23 = vpop.f32.mrf.mxu0  ;;  %v8585_v34 = vld [vmem:[#allocation2 + $0x1a0] ss:$12 sps:$4 sm:$0xff]  }
 0x4ad   : > { %8207 = vmatprep.mubr.bf16.mxu1 %v8574_v42 }
 0x4ae   : > { %v7580_v40 = vpop.f32.mrf.mxu0 }
 0x4af   : > { %v7581_v4 = vadd.f32 %v7580_v40, %v7579_v23 }
 0x4b0   : > { %v7582_v25 = vpop.f32.mrf.mxu0  ;;  %6105 = vmatmul.mubr.bf16.gmra.mxu0 %v8575_v3 }
 0x4b1   : > { %6112 = vmatprep.mubr.bf16.mxu0 %v8582_v0 }
 0x4b2   : > { %v7583_v55 = vpop.f32.mrf.mxu0 }
 0x4b3   : > { %v7584_v11 = vadd.f32 %v7583_v55, %v7582_v25 }
 0x4b4   : > { %8208 = vmatmul.mubr.bf16.gmra.mxu1 %v8578_v58  ;;  %v8117_v30 = vpop.f32.mrf.mxu1  ;;  %v7585_v52 = vpop.f32.mrf.mxu0 }
 0x4b5   : > { %8211 = vmatprep.mubr.bf16.mxu1 %v8579_v60  ;;  %v10533_v46 = vadd.f32 %v8117_v30, %v7584_v11 }
 0x4b6   : > { %v4942_v20 = vpop.f32.mrf.mxu1  ;;  %v7586_v51 = vpop.f32.mrf.mxu0 }
 0x4b7   : > { %v10531_v10 = vadd.f32 %v7578_v9, %v4942_v20  ;;  %v7587_v47 = vadd.f32 %v7586_v51, %v7585_v52 }
 0x4b8   : > { %v8118_v59 = vpop.f32.mrf.mxu1  ;;  %v7588_v5 = vpop.f32.mrf.mxu0  ;;  %6113 = vmatmul.mubr.bf16.gmra.mxu0 %v8580_v62 }
 0x4b9   : > { %v10537_v48 = vadd.f32 %v8118_v59, %v7587_v47  ;;  %6120 = vmatprep.mubr.bf16.mxu0 %v10431_v41 }
 0x4ba   : > { %v4945_v44 = vpop.f32.mrf.mxu1  ;;  %v7589_v63 = vpop.f32.mrf.mxu0 }
 0x4bb   : > { %v10535_v8 = vadd.f32 %v7581_v4, %v4945_v44  ;;  %v7590_v54 = vadd.f32 %v7589_v63, %v7588_v5 }
 0x4bc   : > { %8212 = vmatmul.mubr.bf16.gmra.mxu1 %v8583_v53  ;;  %v7591_v42 = vpop.f32.mrf.mxu0 }
 0x4bd   : > { %8215 = vmatprep.mubr.bf16.mxu1 %v8584_v7  ;;  %v4850_v7 = vadd.f32 %v10467_v38, %v10479_v27 }
 0x4be   : > { %v7592_v14 = vpop.f32.mrf.mxu0 }
 0x4bf   : > { %v7593_v19 = vadd.f32 %v7592_v14, %v7591_v42 }
 0x4c0   : > { %v7594_v56 = vpop.f32.mrf.mxu0  ;;  %6121 = vmatmul.mubr.bf16.gmra.mxu0 %v10434_v2 }
 0x4c2   : > { %v7595_v9 = vpop.f32.mrf.mxu0 }
 0x4c3   : > { %v7596_v58 = vadd.f32 %v7595_v9, %v7594_v56 }
 0x4c4   : > { %v8121_v29 = vpop.f32.mrf.mxu1  ;;  %8216 = vmatmul.mubr.bf16.gmra.mxu1 %v8585_v34  ;;  %v7597_v60 = vpop.f32.mrf.mxu0 }
 0x4c5   : > { %v10543_v41 = vadd.f32 %v8121_v29, %v7596_v58 }
 0x4c6   : > { %v4958_v50 = vpop.f32.mrf.mxu1  ;;  %v7598_v4 = vpop.f32.mrf.mxu0 }
 0x4c7   : > { %v10541_v16 = vadd.f32 %v7590_v54, %v4958_v50  ;;  %v7599_v0 = vadd.f32 %v7598_v4, %v7597_v60 }
 0x4c8   : > { %v8122_v23 = vpop.f32.mrf.mxu1  ;;  %v8141_v25 = vpop.f32.mrf.mxu0 }
 0x4c9   : > { %v10547_v55 = vadd.f32 %v8122_v23, %v7599_v0 }
 0x4ca   : > { %v4961_v3 = vpop.f32.mrf.mxu1  ;;  %v5328_v11 = vpop.f32.mrf.mxu0 }
 0x4cb   : > { %v10545_v40 = vadd.f32 %v7593_v19, %v4961_v3 }
 0x4cc   : > { %v7640_v30 = vpop.f32.mrf.mxu1  ;;  %v8142_v53 = vpop.f32.mrf.mxu0 }
 0x4ce   : > { %v7641_v20 = vpop.f32.mrf.mxu1  ;;  %v5331_v47 = vpop.f32.mrf.mxu0 }
 0x4cf   : > { %v7642_v2 = vadd.f32 %v7641_v20, %v7640_v30 }
 0x4d0   : > { %v7643_v59 = vpop.f32.mrf.mxu1  ;;  %v8145_v34 = vpop.f32.mrf.mxu0 }
 0x4d1   : > { %v5168_v52 = vadd.f32 %v7642_v2, %v10470_v28 }
 0x4d2   : > { %v7644_v44 = vpop.f32.mrf.mxu1  ;;  %v5344_v29 = vpop.f32.mrf.mxu0 }
 0x4d3   : > { %v10552_v62 = vadd.f32 %v5328_v11, %v5168_v52  ;;  %v7645_v51 = vadd.f32 %v7644_v44, %v7643_v59  ;;  %v4866_v59 = vadd.f32 %v10481_v21, %v10492_v36 }
 0x4d4   : > { %v7646_v5 = vpop.f32.mrf.mxu1  ;;  %v8146_v56 = vpop.f32.mrf.mxu0 }
 0x4d5   : > { %v5171_v63 = vadd.f32 %v7645_v51, %v4850_v7 }
 0x4d6   : > { %v7647_v54 = vpop.f32.mrf.mxu1  ;;  %v5347_v38 = vpop.f32.mrf.mxu0 }
 0x4d7   : > { %v10554_v42 = vadd.f32 %v5331_v47, %v5171_v63  ;;  %v7648_v14 = vadd.f32 %v7647_v54, %v7646_v5 }
 0x4d8   : > { %v7649_v19 = vpop.f32.mrf.mxu1  ;;  %v8149_v60 = vpop.f32.mrf.mxu0 }
 0x4d9   : > { %v5176_v28 = vadd.f32 %v7648_v14, %v10472_v37 }
 0x4da   : > { %v7650_v50 = vpop.f32.mrf.mxu1  ;;  %v5360_v0 = vpop.f32.mrf.mxu0 }
 0x4db   : > { %v7651_v9 = vadd.f32 %v7650_v50, %v7649_v19  ;;  %v10557_v23 = vadd.f32 %v8141_v25, %v5176_v28 }
 0x4dc   : > { %v7652_v27 = vpop.f32.mrf.mxu1  ;;  %v8150_v11 = vpop.f32.mrf.mxu0 }
 0x4dd   : > { %v5179_v58 = vadd.f32 %v7651_v9, %v10476_v15 }
 0x4de   : > { %v7653_v3 = vpop.f32.mrf.mxu1  ;;  %v5363_v44 = vpop.f32.mrf.mxu0 }
 0x4df   : > { %v7654_v4 = vadd.f32 %v7653_v3, %v7652_v27  ;;  %v10560_v30 = vadd.f32 %v8142_v53, %v5179_v58 }
 0x4e0   : > { %v7655_v20 = vpop.f32.mrf.mxu1  ;;  %v10567_v51 = vpop.f32.mrf.mxu0 }
 0x4e1   : > { %v5184_v2 = vadd.f32 %v7654_v4, %v10484_v43 }
 0x4e2   : > { %v7656_v37 = vpop.f32.mrf.mxu1  ;;  %v5376_v63 = vpop.f32.mrf.mxu0 }
 0x4e3   : > { %v7657_v25 = vadd.f32 %v7656_v37, %v7655_v20  ;;  %v10565_v52 = vadd.f32 %v5344_v29, %v5184_v2 }
 0x4e4   : > { %v7658_v7 = vpop.f32.mrf.mxu1  ;;  %v10572_v14 = vpop.f32.mrf.mxu0 }
 0x4e5   : > { %v5187_v15 = vadd.f32 %v7657_v25, %v4866_v59 }
 0x4e6   : > { %v7659_v47 = vpop.f32.mrf.mxu1  ;;  %v5379_v29 = vpop.f32.mrf.mxu0 }
 0x4e7   : > { %v7660_v53 = vadd.f32 %v7659_v47, %v7658_v7  ;;  %v10569_v5 = vadd.f32 %v5347_v38, %v5187_v15 }
 0x4e8   : > { %v7661_v54 = vpop.f32.mrf.mxu1  ;;  %v10577_v9 = vpop.f32.mrf.mxu0 }
 0x4e9   : > { %v5192_v43 = vadd.f32 %v7660_v53, %v10486_v18 }
 0x4ea   : > { %v7662_v19 = vpop.f32.mrf.mxu1  ;;  %v5392_v3 = vpop.f32.mrf.mxu0 }
 0x4eb   : > { %v7663_v21 = vadd.f32 %v7662_v19, %v7661_v54  ;;  %v10574_v36 = vadd.f32 %v8145_v34, %v5192_v43 }
 0x4ec   : > { %v7664_v28 = vpop.f32.mrf.mxu1  ;;  %v10582_v20 = vpop.f32.mrf.mxu0 }
 0x4ed   : > { %v5195_v50 = vadd.f32 %v7663_v21, %v10490_v31 }
 0x4ee   : > { %v7665_v27 = vpop.f32.mrf.mxu1  ;;  %v5395_v59 = vpop.f32.mrf.mxu0 }
 0x4ef   : > { %v7666_v58 = vadd.f32 %v7665_v27, %v7664_v28  ;;  %v10579_v38 = vadd.f32 %v8146_v56, %v5195_v50 }
 0x4f0   : > { %v7667_v4 = vpop.f32.mrf.mxu1  ;;  %v10587_v7 = vpop.f32.mrf.mxu0 }
 0x4f1   : > { %v5200_v18 = vadd.f32 %v7666_v58, %v10496_v1 }
 0x4f2   : > { %v7668_v2 = vpop.f32.mrf.mxu1  ;;  %v10591_v53 = vpop.f32.mrf.mxu0 }
 0x4f3   : > { %v7669_v37 = vadd.f32 %v7668_v2, %v7667_v4  ;;  %v10584_v34 = vadd.f32 %v5360_v0, %v5200_v18 }
 0x4f4   : > { %v7670_v25 = vpop.f32.mrf.mxu1  ;;  %v10594_v43 = vpop.f32.mrf.mxu0 }
 0x4f5   : > { %v5203_v31 = vadd.f32 %v7669_v37, %v10500_v13 }
 0x4f6   : > { %v7671_v15 = vpop.f32.mrf.mxu1  ;;  %v10598_v28 = vpop.f32.mrf.mxu0 }
 0x4f7   : > { %v7672_v47 = vadd.f32 %v7671_v15, %v7670_v25  ;;  %v10589_v56 = vadd.f32 %v5363_v44, %v5203_v31 }
 0x4f8   : > { %v7673_v54 = vpop.f32.mrf.mxu1  ;;  %v10601_v27 = vpop.f32.mrf.mxu0 }
 0x4f9   : > { %v5208_v1 = vadd.f32 %v7672_v47, %v10498_v61 }
 0x4fa   : > { %v7674_v19 = vpop.f32.mrf.mxu1  ;;  %v10605_v18 = vpop.f32.mrf.mxu0 }
 0x4fb   : > { %v7675_v0 = vadd.f32 %v7674_v19, %v7673_v54  ;;  %v10596_v21 = vadd.f32 %v8149_v60, %v5208_v1 }
 0x4fc   : > { %v7676_v13 = vpop.f32.mrf.mxu1  ;;  %v10608_v37 = vpop.f32.mrf.mxu0 }
 0x4fd   : > { %v5211_v50 = vadd.f32 %v7675_v0, %v10504_v57 }
 0x4fe   : > { %v7677_v44 = vpop.f32.mrf.mxu1  ;;  %v10612_v15 = vpop.f32.mrf.mxu0 }
 0x4ff   : > { %v7678_v58 = vadd.f32 %v7677_v44, %v7676_v13  ;;  %v10603_v4 = vadd.f32 %v8150_v11, %v5211_v50 }
 0x500   : > { %v7679_v61 = vpop.f32.mrf.mxu1  ;;  %v10615_v54 = vpop.f32.mrf.mxu0 }
 0x501   : > { %v5216_v2 = vadd.f32 %v7678_v58, %v10507_v49  ;;  %11032 = vst [vmem:[#allocation20_spill] sm:$0xff] %v10615_v54 }
 0x502   : > { %v7680_v60 = vpop.f32.mrf.mxu1  ;;  %v10619_v0 = vpop.f32.mrf.mxu0 }
 0x503   : > { %v7681_v25 = vadd.f32 %v7680_v60, %v7679_v61  ;;  %v10610_v31 = vadd.f32 %v5376_v63, %v5216_v2 }
 0x504   : > { %v7682_v57 = vpop.f32.mrf.mxu1  ;;  %v10622_v50 = vpop.f32.mrf.mxu0 }
 0x505   : > { %v5219_v47 = vadd.f32 %v7681_v25, %v10511_v35  ;;  %11033 = vst [vmem:[#allocation22_spill] sm:$0xff] %v10622_v50 }
 0x506   : > { %v7683_v11 = vpop.f32.mrf.mxu1  ;;  %v10627_v61 = vpop.f32.mrf.mxu0 }
 0x507   : > { %v7684_v1 = vadd.f32 %v7683_v11, %v7682_v57  ;;  %v10617_v19 = vadd.f32 %v5379_v29, %v5219_v47 }
 0x508   : > { %v7685_v49 = vpop.f32.mrf.mxu1  ;;  %v10630_v60 = vpop.f32.mrf.mxu0 }
 0x509   : > { %v5224_v13 = vadd.f32 %v7684_v1, %v10509_v33 }
 0x50a   : > { %v7686_v63 = vpop.f32.mrf.mxu1  ;;  %v10635_v33 = vpop.f32.mrf.mxu0 }
 0x50b   : > { %v7687_v44 = vadd.f32 %v7686_v63, %v7685_v49  ;;  %v10625_v58 = vadd.f32 %v10567_v51, %v5224_v13 }
 0x50c   : > { %v7688_v35 = vpop.f32.mrf.mxu1  ;;  %v10638_v1 = vpop.f32.mrf.mxu0 }
 0x50d   : > { %v5227_v2 = vadd.f32 %v7687_v44, %v10513_v39 }
 0x50e   : > { %v7689_v29 = vpop.f32.mrf.mxu1  ;;  %v10642_v63 = vpop.f32.mrf.mxu0 }
 0x50f   : > { %v7690_v25 = vadd.f32 %v7689_v29, %v7688_v35  ;;  %v10633_v57 = vadd.f32 %v10572_v14, %v5227_v2 }
 0x510   : > { %v7691_v47 = vpop.f32.mrf.mxu1  ;;  %v10645_v35 = vpop.f32.mrf.mxu0 }
 0x511   : > { %v5232_v11 = vadd.f32 %v7690_v25, %v10515_v6 }
 0x512   : > { %v7692_v51 = vpop.f32.mrf.mxu1  ;;  %v10649_v50 = vpop.f32.mrf.mxu0 }
 0x513   : > { %v7693_v49 = vadd.f32 %v7692_v51, %v7691_v47  ;;  %v10640_v13 = vadd.f32 %v5392_v3, %v5232_v11 }
 0x514   : > { %v7694_v39 = vpop.f32.mrf.mxu1  ;;  %v10652_v54 = vpop.f32.mrf.mxu0 }
 0x515   : > { %v5235_v44 = vadd.f32 %v7693_v49, %v10519_v24 }
 0x516   : > { %v7695_v14 = vpop.f32.mrf.mxu1  ;;  %v10657_v51 = vpop.f32.mrf.mxu0 }
 0x517   : > { %v7696_v2 = vadd.f32 %v7695_v14, %v7694_v39  ;;  %v10647_v29 = vadd.f32 %v5395_v59, %v5235_v44 }
 0x518   : > { %v7697_v6 = vpop.f32.mrf.mxu1  ;;  %v10660_v39 = vpop.f32.mrf.mxu0 }
 0x519   : > { %11034 = vst [vmem:[#allocation23_spill] sm:$0xff] %v10647_v29  ;;  %v5240_v25 = vadd.f32 %v7696_v2, %v10517_v12 }
 0x51a   : > { %v7698_v3 = vpop.f32.mrf.mxu1  ;;  %v10665_v12 = vpop.f32.mrf.mxu0 }
 0x51b   : > { %v7699_v47 = vadd.f32 %v7698_v3, %v7697_v6  ;;  %v10655_v11 = vadd.f32 %v10577_v9, %v5240_v25 }
 0x51c   : > { %v7700_v24 = vpop.f32.mrf.mxu1  ;;  %v10668_v3 = vpop.f32.mrf.mxu0 }
 0x51d   : > { %v5243_v49 = vadd.f32 %v7699_v47, %v10521_v26 }
 0x51e   : > { %v7701_v59 = vpop.f32.mrf.mxu1  ;;  %v10673_v26 = vpop.f32.mrf.mxu0 }
 0x51f   : > { %v7702_v44 = vadd.f32 %v7701_v59, %v7700_v24  ;;  %v10663_v14 = vadd.f32 %v10582_v20, %v5243_v49 }
 0x520   : > { %v7703_v2 = vpop.f32.mrf.mxu1  ;;  %v10676_v59 = vpop.f32.mrf.mxu0 }
 0x521   : > { %11035 = vst [vmem:[#allocation21_spill] sm:$0xff] %v10663_v14  ;;  %v5248_v6 = vadd.f32 %v7702_v44, %v10523_v45 }
 0x522   : > { %v7704_v9 = vpop.f32.mrf.mxu1  ;;  %v10681_v45 = vpop.f32.mrf.mxu0 }
 0x523   : > { %v7705_v25 = vadd.f32 %v7704_v9, %v7703_v2  ;;  %v10671_v29 = vadd.f32 %v10591_v53, %v5248_v6 }
 0x524   : > { %v7706_v47 = vpop.f32.mrf.mxu1  ;;  %v10684_v9 = vpop.f32.mrf.mxu0 }
 0x525   : > { %11036 = vst [vmem:[#allocation24_spill] sm:$0xff] %v10671_v29  ;;  %v5251_v24 = vadd.f32 %v7705_v25, %v10527_v22 }
 0x526   : > { %v7707_v20 = vpop.f32.mrf.mxu1  ;;  %v10689_v22 = vpop.f32.mrf.mxu0 }
 0x527   : > { %v7708_v49 = vadd.f32 %v7707_v20, %v7706_v47  ;;  %v10679_v14 = vadd.f32 %v10598_v28, %v5251_v24 }
 0x528   : > { %v7709_v44 = vpop.f32.mrf.mxu1  ;;  %v10692_v20 = vpop.f32.mrf.mxu0 }
 0x529   : > { %11037 = vst [vmem:[#allocation25_spill] sm:$0xff] %v10679_v14  ;;  %v5256_v2 = vadd.f32 %v7708_v49, %v10525_v32 }
 0x52a   : > { %v7710_v53 = vpop.f32.mrf.mxu1  ;;  %v10697_v32 = vpop.f32.mrf.mxu0 }
 0x52b   : > { %v7711_v6 = vadd.f32 %v7710_v53, %v7709_v44  ;;  %v10687_v29 = vadd.f32 %v10587_v7, %v5256_v2 }
 0x52c   : > { %v7712_v25 = vpop.f32.mrf.mxu1  ;;  %v10700_v53 = vpop.f32.mrf.mxu0 }
 0x52d   : > { %11038 = vst [vmem:[#allocation26_spill] sm:$0xff] %v10687_v29  ;;  %v5259_v47 = vadd.f32 %v7711_v6, %v10529_v17 }
 0x52e   : > { %v7713_v28 = vpop.f32.mrf.mxu1  ;;  %v10705_v17 = vpop.f32.mrf.mxu0 }
 0x52f   : > { %v7714_v24 = vadd.f32 %v7713_v28, %v7712_v25  ;;  %v10695_v14 = vadd.f32 %v10594_v43, %v5259_v47 }
 0x530   : > { %v7715_v49 = vpop.f32.mrf.mxu1  ;;  %v10708_v28 = vpop.f32.mrf.mxu0 }
 0x531   : > { %11039 = vst [vmem:[#allocation27_spill] sm:$0xff] %v10695_v14  ;;  %v5264_v44 = vadd.f32 %v7714_v24, %v10531_v10 }
 0x532   : > { %v7716_v7 = vpop.f32.mrf.mxu1  ;;  %v10713_v10 = vpop.f32.mrf.mxu0 }
 0x533   : > { %v7717_v2 = vadd.f32 %v7716_v7, %v7715_v49  ;;  %v10703_v29 = vadd.f32 %v10605_v18, %v5264_v44 }
 0x534   : > { %v7718_v6 = vpop.f32.mrf.mxu1  ;;  %v10716_v7 = vpop.f32.mrf.mxu0 }
 0x535   : > { %11040 = vst [vmem:[#allocation28_spill] sm:$0xff] %v10703_v29  ;;  %v5267_v25 = vadd.f32 %v7717_v2, %v10535_v8 }
 0x536   : > { %v7719_v43 = vpop.f32.mrf.mxu1  ;;  %v10721_v8 = vpop.f32.mrf.mxu0 }
 0x537   : > { %v7720_v47 = vadd.f32 %v7719_v43, %v7718_v6  ;;  %v10711_v14 = vadd.f32 %v10612_v15, %v5267_v25 }
 0x538   : > { %v7721_v24 = vpop.f32.mrf.mxu1  ;;  %v10724_v43 = vpop.f32.mrf.mxu0 }
 0x539   : > { %11041 = vst [vmem:[#allocation29_spill] sm:$0xff] %v10711_v14  ;;  %v5272_v49 = vadd.f32 %v7720_v47, %v10533_v46 }
 0x53a   : > { %v7722_v18 = vpop.f32.mrf.mxu1  ;;  %v10729_v46 = vpop.f32.mrf.mxu0 }
 0x53b   : > { %v7723_v44 = vadd.f32 %v7722_v18, %v7721_v24  ;;  %v10719_v29 = vadd.f32 %v10601_v27, %v5272_v49 }
 0x53c   : > { %v7724_v2 = vpop.f32.mrf.mxu1  ;;  %v10732_v18 = vpop.f32.mrf.mxu0 }
 0x53d   : > { %11042 = vst [vmem:[#allocation30_spill] sm:$0xff] %v10719_v29  ;;  %v5275_v6 = vadd.f32 %v7723_v44, %v10537_v48 }
 0x53e   : > { %v7725_v15 = vpop.f32.mrf.mxu1  ;;  %v10737_v48 = vpop.f32.mrf.mxu0 }
 0x53f   : > { %v7726_v25 = vadd.f32 %v7725_v15, %v7724_v2  ;;  %v10727_v14 = vadd.f32 %v10608_v37, %v5275_v6 }
 0x540   : > { %v7727_v47 = vpop.f32.mrf.mxu1  ;;  %v10740_v15 = vpop.f32.mrf.mxu0 }
 0x541   : > { %11043 = vst [vmem:[#allocation31_spill] sm:$0xff] %v10727_v14  ;;  %v5280_v24 = vadd.f32 %v7726_v25, %v10541_v16 }
 0x542   : > { %v7728_v27 = vpop.f32.mrf.mxu1  ;;  %v10745_v16 = vpop.f32.mrf.mxu0 }
 0x543   : > { %v7729_v49 = vadd.f32 %v7728_v27, %v7727_v47  ;;  %v10735_v29 = vadd.f32 %v10619_v0, %v5280_v24  ;;  %v7784_v27 = vadd.f32 %v10649_v50, %v10645_v35  ;;  %v7787_v50 = vadd.f32 %v10657_v51, %v10652_v54 }
 0x544   : > { %v7730_v44 = vpop.f32.mrf.mxu1  ;;  %v10750_v0 = vpop.f32.mrf.mxu0 }
 0x545   : > { %11044 = vst [vmem:[#allocation32_spill] sm:$0xff] %v10735_v29  ;;  %v5283_v2 = vadd.f32 %v7729_v49, %v10545_v40 }
 0x546   : > { %v7731_v37 = vpop.f32.mrf.mxu1  ;;  %v10754_v49 = vpop.f32.mrf.mxu0 }
 0x547   : > { %v7732_v6 = vadd.f32 %v7731_v37, %v7730_v44  ;;  %v10743_v14 = vadd.f32 %v10627_v61, %v5283_v2  ;;  %v7778_v61 = vadd.f32 %v10635_v33, %v10630_v60  ;;  %v7781_v60 = vadd.f32 %v10642_v63, %v10638_v1 }
 0x548   : > { %v7733_v25 = vpop.f32.mrf.mxu1  ;;  %v10766_v37 = vpop.f32.mrf.mxu0  ;;  %v7790_v63 = vadd.f32 %v10665_v12, %v10660_v39 }
 0x549   : > { %11045 = vst [vmem:[#allocation33_spill] sm:$0xff] %v10743_v14  ;;  %v10748_v47 = vadd.f32 %v7732_v6, %v10543_v41  ;;  %v10764_v41 = vld [vmem:[%s10987_s6] ss:$0 sm:$0xff] }
 0x54a   : > { %v7734_v24 = vpop.f32.mrf.mxu1 }
 0x54b   : > { %v7735_v40 = vadd.f32 %v7734_v24, %v7733_v25  ;;  %v10771_v24 = vpop.f32.mrf.mxu0 }
 0x54c   : > { %v8189_v29 = vpop.f32.mrf.mxu1 }
 0x54d   : > { %v10759_v44 = vadd.f32 %v7735_v40, %v10547_v55  ;;  %v6172_v2 = vadd.f32 %v8189_v29, %v7784_v27  ;;  %v10777_v40 = vpop.f32.mrf.mxu0 }
 0x54e   : > { %v6163_v6 = vpop.f32.mrf.mxu1 }
 0x54f   : > { %11046 = vst [vmem:[#allocation34_spill] sm:$0xff] %v10759_v44  ;;  %v6292_v35 = vadd.f32 %v6172_v2, %v10557_v23  ;;  %v6164_v25 = vadd.f32 %v7778_v61, %v6163_v6  ;;  %v7796_v61 = vadd.f32 %v10681_v45, %v10676_v59  ;;  %v10783_v2 = vpop.f32.mrf.mxu0  ;;  %v7799_v45 = vadd.f32 %v10689_v22, %v10684_v9 }
 0x550   : > { %v8190_v55 = vpop.f32.mrf.mxu1 }
 0x551   : > { %v6331_v33 = vadd.f32 %v10764_v41, %v6292_v35  ;;  %v6290_v29 = vadd.f32 %v6164_v25, %v10552_v62  ;;  %v6175_v27 = vadd.f32 %v8190_v55, %v7787_v50  ;;  %v10793_v50 = vpop.f32.mrf.mxu0 }
 0x552   : > { %v6166_v44 = vpop.f32.mrf.mxu1 }
 0x553   : > { %v6363_v14 = vmax.f32 %v6331_v33, 0.0  ;;  %v6329_v54 = vadd.f32 %v10764_v41, %v6290_v29  ;;  %v6293_v23 = vadd.f32 %v6175_v27, %v10560_v30  ;;  %v6167_v51 = vadd.f32 %v7781_v60, %v6166_v44  ;;  %v10800_v25 = vpop.f32.mrf.mxu0 }
 0x554   : > { %v8193_v1 = vpop.f32.mrf.mxu1 }
 0x555   : > { %6395 = vst [vmem:[%s10788_s2 + $0x10] sm:$0xff] %v6363_v14  ;;  %v6361_v62 = vmax.f32 %v6329_v54, 0.0  ;;  %v6332_v6 = vadd.f32 %v10764_v41, %v6293_v23  ;;  %v6291_v30 = vadd.f32 %v6167_v51, %v10554_v42  ;;  %v6188_v44 = vadd.f32 %v8193_v1, %v7796_v61  ;;  %v10807_v22 = vpop.f32.mrf.mxu0 }
 0x556   : > { %v6179_v59 = vpop.f32.mrf.mxu1  ;;  %v7793_v42 = vadd.f32 %v10673_v26, %v10668_v3  ;;  %v7808_v3 = vadd.f32 %v10713_v10, %v10708_v28  ;;  %v7802_v61 = vadd.f32 %v10697_v32, %v10692_v20  ;;  %v7811_v28 = vadd.f32 %v10721_v8, %v10716_v7 }
 0x557   : > { %6393 = vst [vmem:[%s10788_s2] sm:$0xff] %v6361_v62  ;;  %v6364_v39 = vmax.f32 %v6332_v6, 0.0  ;;  %v6330_v12 = vadd.f32 %v10764_v41, %v6291_v30  ;;  %v6180_v35 = vadd.f32 %v7790_v63, %v6179_v59  ;;  %v6296_v14 = vadd.f32 %v6188_v44, %v10574_v36  ;;  %v10814_v51 = vpop.f32.mrf.mxu0 }
 0x558   : > { %v8194_v55 = vpop.f32.mrf.mxu1 }
 0x559   : > { %6396 = vst [vmem:[%s10788_s2 + $0x18] sm:$0xff] %v6364_v39  ;;  %v6362_v60 = vmax.f32 %v6330_v12, 0.0  ;;  %v6294_v33 = vadd.f32 %v6180_v35, %v10565_v52  ;;  %v6191_v29 = vadd.f32 %v8194_v55, %v7799_v45  ;;  %v6335_v9 = vadd.f32 %v10764_v41, %v6296_v14 }
 0x55a   : > { %v6182_v27 = vpop.f32.mrf.mxu1 }
 0x55b   : > { %6394 = vst [vmem:[%s10788_s2 + $0x8] sm:$0xff] %v6362_v60  ;;  %v6333_v36 = vadd.f32 %v10764_v41, %v6294_v33  ;;  %v6297_v54 = vadd.f32 %v6191_v29, %v10579_v38  ;;  %v6183_v23 = vadd.f32 %v7793_v42, %v6182_v27  ;;  %v6367_v26 = vmax.f32 %v6335_v9, 0.0  ;;  %v10821_v38 = vpop.f32.mrf.mxu0 }
 0x55c   : > { %v8197_v52 = vpop.f32.mrf.mxu1  ;;  %v7814_v33 = vadd.f32 %v10729_v46, %v10724_v43 }
 0x55d   : > { %v6365_v1 = vmax.f32 %v6333_v36, 0.0  ;;  %v6336_v63 = vadd.f32 %v10764_v41, %v6297_v54  ;;  %v6295_v62 = vadd.f32 %v6183_v23, %v10569_v5  ;;  %6399 = vst [vmem:[%s10788_s2 + $0x30] sm:$0xff] %v6367_v26  ;;  %v6204_v6 = vadd.f32 %v8197_v52, %v7808_v3  ;;  %v10828_v59 = vpop.f32.mrf.mxu0 }
 0x55e   : > { %v6195_v30 = vpop.f32.mrf.mxu1  ;;  %v7805_v5 = vadd.f32 %v10705_v17, %v10700_v53  ;;  %v7820_v53 = vadd.f32 %v10745_v16, %v10740_v15  ;;  %v7823_v15 = vadd.f32 %v10754_v49, %v10750_v0 }
 0x55f   : > { %6397 = vst [vmem:[%s10788_s2 + $0x20] sm:$0xff] %v6365_v1  ;;  %v6368_v10 = vmax.f32 %v6336_v63, 0.0  ;;  %v6334_v44 = vadd.f32 %v10764_v41, %v6295_v62  ;;  %v6196_v20 = vadd.f32 %v7802_v61, %v6195_v30  ;;  %v6300_v32 = vadd.f32 %v6204_v6, %v10596_v21  ;;  %v10835_v8 = vpop.f32.mrf.mxu0 }
 0x560   : > { %v8198_v45 = vpop.f32.mrf.mxu1 }
 0x561   : > { %6400 = vst [vmem:[%s10788_s2 + $0x38] sm:$0xff] %v6368_v10  ;;  %v6366_v39 = vmax.f32 %v6334_v44, 0.0  ;;  %v6298_v12 = vadd.f32 %v6196_v20, %v10584_v34  ;;  %v6207_v35 = vadd.f32 %v8198_v45, %v7811_v28  ;;  %v6339_v7 = vadd.f32 %v10764_v41, %v6300_v32  ;;  %v10842_v60 = vpop.f32.mrf.mxu0 }
 0x562   : > { %v6198_v14 = vpop.f32.mrf.mxu1 }
 0x563   : > { %6398 = vst [vmem:[%s10788_s2 + $0x28] sm:$0xff] %v6366_v39  ;;  %v6337_v21 = vadd.f32 %v10764_v41, %v6298_v12  ;;  %v6301_v55 = vadd.f32 %v6207_v35, %v10603_v4  ;;  %v6199_v42 = vadd.f32 %v7805_v5, %v6198_v14  ;;  %v6371_v17 = vmax.f32 %v6339_v7, 0.0  ;;  %v7842_v4 = vpop.f32.mrf.mxu0 }
 0x564   : > { %v8201_v34 = vpop.f32.mrf.mxu1  ;;  %v7835_v5 = vadd.f32 %v10814_v51, %v10807_v22 }
 0x565   : > { %v6369_v29 = vmax.f32 %v6337_v21, 0.0  ;;  %v6340_v9 = vadd.f32 %v10764_v41, %v6301_v55  ;;  %v6299_v27 = vadd.f32 %v6199_v42, %v10589_v56  ;;  %6403 = vst [vmem:[%s10788_s2 + $0x50] sm:$0xff] %v6371_v17  ;;  %v6220_v36 = vadd.f32 %v8201_v34, %v7820_v53  ;;  %v7843_v46 = vpop.f32.mrf.mxu0  ;;  %v11047_v42 = vld [vmem:[#allocation21_spill] sm:$0xff] }
 0x566   : > { %v6211_v54 = vpop.f32.mrf.mxu1  ;;  %v7817_v56 = vadd.f32 %v10737_v48, %v10732_v18  ;;  %v7832_v18 = vadd.f32 %v10800_v25, %v10793_v50  ;;  %v7844_v17 = vadd.f32 %v7843_v46, %v7842_v4 }
 0x567   : > { %6401 = vst [vmem:[%s10788_s2 + $0x40] sm:$0xff] %v6369_v29  ;;  %v6372_v16 = vmax.f32 %v6340_v9, 0.0  ;;  %v6338_v23 = vadd.f32 %v10764_v41, %v6299_v27  ;;  %v6212_v3 = vadd.f32 %v7814_v33, %v6211_v54  ;;  %v6304_v43 = vadd.f32 %v6220_v36, %v10625_v58  ;;  %v7845_v49 = vpop.f32.mrf.mxu0  ;;  %v11048_v9 = vld [vmem:[#allocation23_spill] sm:$0xff] }
 0x568   : > { %v8202_v26 = vpop.f32.mrf.mxu1 }
 0x569   : > { %6404 = vst [vmem:[%s10788_s2 + $0x58] sm:$0xff] %v6372_v16  ;;  %v6370_v52 = vmax.f32 %v6338_v23, 0.0  ;;  %v6302_v61 = vadd.f32 %v6212_v3, %v10610_v31  ;;  %v6223_v1 = vadd.f32 %v8202_v26, %v7823_v15  ;;  %v6343_v0 = vadd.f32 %v10764_v41, %v6304_v43  ;;  %v7846_v30 = vpop.f32.mrf.mxu0  ;;  %v11049_v43 = vld [vmem:[#allocation26_spill] sm:$0xff] }
 0x56a   : > { %v6214_v63 = vpop.f32.mrf.mxu1  ;;  %v7826_v31 = vadd.f32 %v10771_v24, %v10766_v37  ;;  %v7847_v16 = vadd.f32 %v7846_v30, %v7845_v49  ;;  %v7841_v26 = vadd.f32 %v10842_v60, %v10835_v8 }
 0x56b   : > { %6402 = vst [vmem:[%s10788_s2 + $0x48] sm:$0xff] %v6370_v52  ;;  %v6341_v62 = vadd.f32 %v10764_v41, %v6302_v61  ;;  %v6305_v58 = vadd.f32 %v6223_v1, %v10633_v57  ;;  %v6215_v6 = vadd.f32 %v7817_v56, %v6214_v63  ;;  %v6375_v48 = vmax.f32 %v6343_v0, 0.0  ;;  %v7848_v45 = vpop.f32.mrf.mxu0  ;;  %v11050_v52 = vld [vmem:[#allocation24_spill] sm:$0xff] }
 0x56c   : > { %v8205_v28 = vpop.f32.mrf.mxu1 }
 0x56d   : > { %v6373_v10 = vmax.f32 %v6341_v62, 0.0  ;;  %v6344_v44 = vadd.f32 %v10764_v41, %v6305_v58  ;;  %v6303_v20 = vadd.f32 %v6215_v6, %v10617_v19  ;;  %6407 = vst [vmem:[%s10788_s2 + $0x70] sm:$0xff] %v6375_v48  ;;  %v6236_v32 = vadd.f32 %v8205_v28, %v7832_v18  ;;  %v7849_v24 = vpop.f32.mrf.mxu0  ;;  %v11051_v58 = vld [vmem:[#allocation27_spill] sm:$0xff] }
 0x56e   : > { %v6227_v57 = vpop.f32.mrf.mxu1  ;;  %v7829_v19 = vadd.f32 %v10783_v2, %v10777_v40  ;;  %v7850_v28 = vadd.f32 %v7849_v24, %v7848_v45 }
 0x56f   : > { %6405 = vst [vmem:[%s10788_s2 + $0x60] sm:$0xff] %v6373_v10  ;;  %v6376_v50 = vmax.f32 %v6344_v44, 0.0  ;;  %v6342_v25 = vadd.f32 %v10764_v41, %v6303_v20  ;;  %v6228_v39 = vadd.f32 %v7826_v31, %v6227_v57  ;;  %v6308_v37 = vadd.f32 %v6236_v32, %v10655_v11  ;;  %v7851_v51 = vpop.f32.mrf.mxu0  ;;  %v11052_v44 = vld [vmem:[#allocation25_spill] sm:$0xff] }
 0x570   : > { %v8206_v12 = vpop.f32.mrf.mxu1 }
 0x571   : > { %6408 = vst [vmem:[%s10788_s2 + $0x78] sm:$0xff] %v6376_v50  ;;  %v6374_v35 = vmax.f32 %v6342_v25, 0.0  ;;  %v6306_v7 = vadd.f32 %v6228_v39, %v10640_v13  ;;  %v6239_v14 = vadd.f32 %v8206_v12, %v7835_v5  ;;  %v6347_v22 = vadd.f32 %v10764_v41, %v6308_v37  ;;  %v7852_v40 = vpop.f32.mrf.mxu0  ;;  %v11053_v12 = vld [vmem:[#allocation30_spill] sm:$0xff] }
 0x572   : > { %v6230_v21 = vpop.f32.mrf.mxu1  ;;  %v7838_v13 = vadd.f32 %v10828_v59, %v10821_v38 }
 0x573   : > { %6406 = vst [vmem:[%s10788_s2 + $0x68] sm:$0xff] %v6374_v35  ;;  %v6345_v55 = vadd.f32 %v10764_v41, %v6306_v7  ;;  %v6309_v11 = vadd.f32 %v6239_v14, %v11047_v42  ;;  %v6231_v53 = vadd.f32 %v7829_v19, %v6230_v21  ;;  %v6379_v34 = vmax.f32 %v6347_v22, 0.0  ;;  %v7854_v54 = vpop.f32.mrf.mxu0  ;;  %v11054_v14 = vld [vmem:[#allocation28_spill] sm:$0xff] }
 0x574   : > { %v8209_v2 = vpop.f32.mrf.mxu1  ;;  %v7853_v35 = vadd.f32 %v7852_v40, %v7851_v51 }
 0x575   : > { %v6377_v33 = vmax.f32 %v6345_v55, 0.0  ;;  %v6348_v29 = vadd.f32 %v10764_v41, %v6309_v11  ;;  %v6307_v27 = vadd.f32 %v6231_v53, %v11048_v9  ;;  %6411 = vst [vmem:[%s10788_s2 + $0x90] sm:$0xff] %v6379_v34  ;;  %v6252_v36 = vadd.f32 %v8209_v2, %v7844_v17  ;;  %v7855_v38 = vpop.f32.mrf.mxu0  ;;  %v11055_v17 = vld [vmem:[#allocation31_spill] sm:$0xff] }
 0x576   : > { %v6243_v15 = vpop.f32.mrf.mxu1  ;;  %v7856_v30 = vadd.f32 %v7855_v38, %v7854_v54 }
 0x577   : > { %6409 = vst [vmem:[%s10788_s2 + $0x80] sm:$0xff] %v6377_v33  ;;  %v6380_v4 = vmax.f32 %v6348_v29, 0.0  ;;  %v6346_v23 = vadd.f32 %v10764_v41, %v6307_v27  ;;  %v6244_v3 = vadd.f32 %v7838_v13, %v6243_v15  ;;  %v6312_v46 = vadd.f32 %v6252_v36, %v11049_v43  ;;  %v7857_v49 = vpop.f32.mrf.mxu0  ;;  %v11056_v27 = vld [vmem:[#allocation29_spill] sm:$0xff] }
 0x578   : > { %v8210_v59 = vpop.f32.mrf.mxu1 }
 0x579   : > { %6412 = vst [vmem:[%s10788_s2 + $0x98] sm:$0xff] %v6380_v4  ;;  %v6378_v56 = vmax.f32 %v6346_v23, 0.0  ;;  %v6310_v61 = vadd.f32 %v6244_v3, %v11050_v52  ;;  %v6255_v1 = vadd.f32 %v8210_v59, %v7847_v16  ;;  %v6351_v0 = vadd.f32 %v10764_v41, %v6312_v46  ;;  %v7858_v8 = vpop.f32.mrf.mxu0  ;;  %v11057_v59 = vld [vmem:[#allocation32_spill] sm:$0xff] }
 0x57a   : > { %v6246_v63 = vpop.f32.mrf.mxu1  ;;  %v7859_v39 = vadd.f32 %v7858_v8, %v7857_v49 }
 0x57b   : > { %6410 = vst [vmem:[%s10788_s2 + $0x88] sm:$0xff] %v6378_v56  ;;  %v6349_v62 = vadd.f32 %v10764_v41, %v6310_v61  ;;  %v6313_v6 = vadd.f32 %v6255_v1, %v11051_v58  ;;  %v6247_v18 = vadd.f32 %v7841_v26, %v6246_v63  ;;  %v6383_v48 = vmax.f32 %v6351_v0, 0.0  ;;  %v7860_v57 = vpop.f32.mrf.mxu0  ;;  %v11058_v1 = vld [vmem:[#allocation20_spill] sm:$0xff] }
 0x57c   : > { %v8213_v60 = vpop.f32.mrf.mxu1  ;;  %v5449_v0 = vadd.f32 %v11058_v1, %v10748_v47 }
 0x57d   : > { %v6381_v31 = vmax.f32 %v6349_v62, 0.0  ;;  %v6352_v10 = vadd.f32 %v10764_v41, %v6313_v6  ;;  %v6311_v20 = vadd.f32 %v6247_v18, %v11052_v44  ;;  %6415 = vst [vmem:[%s10788_s2 + $0xb0] sm:$0xff] %v6383_v48  ;;  %v6268_v32 = vadd.f32 %v8213_v60, %v7856_v30  ;;  %v7861_v45 = vpop.f32.mrf.mxu0  ;;  %v11059_v48 = vld [vmem:[#allocation33_spill] sm:$0xff]  ;;  %v11060_v60 = vld [vmem:[#allocation34_spill] sm:$0xff] }
 0x57e   : > { %v6259_v5 = vpop.f32.mrf.mxu1  ;;  %v7862_v29 = vadd.f32 %v7861_v45, %v7860_v57 }
 0x57f   : > { %6413 = vst [vmem:[%s10788_s2 + $0xa0] sm:$0xff] %v6381_v31  ;;  %v6384_v50 = vmax.f32 %v6352_v10, 0.0  ;;  %v6350_v25 = vadd.f32 %v10764_v41, %v6311_v20  ;;  %v6260_v37 = vadd.f32 %v7850_v28, %v6259_v5  ;;  %v6316_v19 = vadd.f32 %v6268_v32, %v11053_v12  ;;  %v7863_v42 = vpop.f32.mrf.mxu0  ;;  %v11061_v28 = vld [vmem:[#allocation22_spill] sm:$0xff] }
 0x580   : > { %v8214_v24 = vpop.f32.mrf.mxu1  ;;  %v5452_v31 = vadd.f32 %v11061_v28, %v11060_v60 }
 0x581   : > { %6416 = vst [vmem:[%s10788_s2 + $0xb8] sm:$0xff] %v6384_v50  ;;  %v6382_v7 = vmax.f32 %v6350_v25, 0.0  ;;  %v6314_v22 = vadd.f32 %v6260_v37, %v11054_v14  ;;  %v6271_v21 = vadd.f32 %v8214_v24, %v7859_v39  ;;  %v6355_v55 = vadd.f32 %v10764_v41, %v6316_v19  ;;  %v7864_v51 = vpop.f32.mrf.mxu0 }
 0x582   : > { %v6262_v11 = vpop.f32.mrf.mxu1  ;;  %v7865_v38 = vadd.f32 %v7864_v51, %v7863_v42 }
 0x583   : > { %6414 = vst [vmem:[%s10788_s2 + $0xa8] sm:$0xff] %v6382_v7  ;;  %v6353_v53 = vadd.f32 %v10764_v41, %v6314_v22  ;;  %v6317_v34 = vadd.f32 %v6271_v21, %v11055_v17  ;;  %v6263_v2 = vadd.f32 %v7853_v35, %v6262_v11  ;;  %v6387_v13 = vmax.f32 %v6355_v55, 0.0  ;;  %v7866_v54 = vpop.f32.mrf.mxu0 }
 0x584   : > { %v8217_v40 = vpop.f32.mrf.mxu1 }
 0x585   : > { %v6385_v33 = vmax.f32 %v6353_v53, 0.0  ;;  %v6356_v9 = vadd.f32 %v10764_v41, %v6317_v34  ;;  %v6315_v36 = vadd.f32 %v6263_v2, %v11056_v27  ;;  %6419 = vst [vmem:[%s10788_s2 + $0xd0] sm:$0xff] %v6387_v13  ;;  %v7867_v3 = vpop.f32.mrf.mxu0 }
 0x586   : > { %v6275_v15 = vpop.f32.mrf.mxu1  ;;  %v7868_v56 = vadd.f32 %v7867_v3, %v7866_v54 }
 0x587   : > { %6417 = vst [vmem:[%s10788_s2 + $0xc0] sm:$0xff] %v6385_v33  ;;  %v6388_v16 = vmax.f32 %v6356_v9, 0.0  ;;  %v6354_v4 = vadd.f32 %v10764_v41, %v6315_v36  ;;  %v6276_v23 = vadd.f32 %v7862_v29, %v6275_v15  ;;  %v7869_v52 = vpop.f32.mrf.mxu0 }
 0x588   : > { %v8218_v43 = vpop.f32.mrf.mxu1  ;;  %v6284_v63 = vadd.f32 %v8217_v40, %v7868_v56 }
 0x589   : > { %6420 = vst [vmem:[%s10788_s2 + $0xd8] sm:$0xff] %v6388_v16  ;;  %v6386_v46 = vmax.f32 %v6354_v4, 0.0  ;;  %v6318_v26 = vadd.f32 %v6276_v23, %v11057_v59  ;;  %v7870_v58 = vpop.f32.mrf.mxu0 }
 0x58a   : > { %v6278_v61 = vpop.f32.mrf.mxu1  ;;  %v6320_v18 = vadd.f32 %v6284_v63, %v5449_v0  ;;  %v7871_v8 = vadd.f32 %v7870_v58, %v7869_v52 }
 0x58b   : > { %6418 = vst [vmem:[%s10788_s2 + $0xc8] sm:$0xff] %v6386_v46  ;;  %v6357_v49 = vadd.f32 %v10764_v41, %v6318_v26  ;;  %v6279_v62 = vadd.f32 %v7865_v38, %v6278_v61 }
 0x58c   : > { %v6359_v47 = vadd.f32 %v10764_v41, %v6320_v18  ;;  %v6287_v44 = vadd.f32 %v8218_v43, %v7871_v8 }
 0x58d   : > { %v6389_v6 = vmax.f32 %v6357_v49, 0.0  ;;  %v6319_v30 = vadd.f32 %v6279_v62, %v11059_v48 }
 0x58e   : > { %v6391_v20 = vmax.f32 %v6359_v47, 0.0  ;;  %v6321_v57 = vadd.f32 %v6287_v44, %v5452_v31 }
 0x58f   : > { %6421 = vst [vmem:[%s10788_s2 + $0xe0] sm:$0xff] %v6389_v6  ;;  %v6358_v10 = vadd.f32 %v10764_v41, %v6319_v30 }
 0x590   : > { %6423 = vst [vmem:[%s10788_s2 + $0xf0] sm:$0xff] %v6391_v20  ;;  %v6360_v5 = vadd.f32 %v10764_v41, %v6321_v57 }
 0x591   : > { %v6390_v32 = vmax.f32 %v6358_v10, 0.0 }
 0x592   : > { %v6392_v50 = vmax.f32 %v6360_v5, 0.0 }
 0x593   : > { %6422 = vst [vmem:[%s10788_s2 + $0xe8] sm:$0xff] %v6390_v32 }
 0x594   : > { %6424 = vst [vmem:[%s10788_s2 + $0xf8] sm:$0xff] %v6392_v50 }
 0x595   : > { %8744 = shalt.err (!%p8741_p4)
}
 0x596   : > { %s8745_s9 = scalar_lea.hbm %s10935_s14, 4096  ;;  %s8749_s30 = scalar_lea.hbm %s10988_s7, 8192 }
 0x597   : > { %p8746_p3 = scmp.ne.s32.totalorder %s10935_s14, %s8745_s9  ;;  %p8750_p11 = scmp.lt.s32.totalorder %s10935_s14, %s10988_s7 }
 0x598   : > { %p8751_p6 = scmp.lt.s32.totalorder %s8749_s30, %s8745_s9 }
 0x599   : > { %p8747_p7 = pnand %p8746_p3, %p11062_p5 }
 0x59a   : > { %p8752_p12 = por %p8751_p6, %p8750_p11 }
 0x59b   : > { %p8748_p8 = pneg %p8747_p7 }
 0x59d   : > { %p8753_p0 = pnand %p8752_p12, %p8748_p8 }
 0x59f   : > { %8756 = shalt.err (!%p8753_p0)
}
 0x5a0   : > { %s8822_s20 = smov 128   ;;  %s8823_s11 = smov 8  }
 0x5a1   : > { %8235 = dma.vmem_to_hbm [thread:$0]  (%p11062_p5), %s10937_s10, 4096, %s10935_s14, %s6426_s21, %s8822_s20, %s8822_s20, %s8823_s11  }
 0x5a2 PF: > { %s6454_s16 = sand.u32 1, %s8795_s24   ;;  %p11063_p10 = scmp.ne.s32.totalorder %s11003_s8, 0 }
 0x5a3   : > { %p11064_p2 = scmp.ge.s32.totalorder %s8807_s27, 2  ;;  %s6455_s2 = scalar_lea.sflag [#allocation5], %s6454_s16 }
 0x5a5   : > { %p8255_p9 = pnand %p11064_p2, %p11063_p10 }
 0x5a7   : > { %p8256_p13 = pneg %p8255_p9 }
 0x5a9   : > { %8790 = dma.done.wait (%p8256_p13), %s6455_s2, 4096  }
 0x5aa   : > { %8792 = vsyncadd (%p8256_p13), %s6455_s2, 4294963200  ;;  %s11065_s29 = sld [smem:[#allocation18_spill]]  ;;  %p24_p1 = scmp.ge.s32.totalorder %s8939_s13, 4  }
 0x5ab   : > { %s11066_s26 = sld [smem:[#allocation19_spill]]  ;;  %s11067_s24 = smov %s8799_s25 }
 0x5ac   : > { %s11069_s27 = smov %s8939_s13  ;;  %26 = sbr.rel (!%p24_p1) target bundleno = 13 (0xd), region = 122 }
 0x5b0   : > { %s11068_s25 = smov %s11065_s29 }
 0x5b1   :  { %6460 = vsyncpa [#allocation4], 1 }
 0x5b2   :  { %6462 = vsyncpa [#allocation4 + $0x1], 1 }
 0x5b3   :  { %6463 = vsyncpa [#allocation7], 1 }
 0x5b4   :  { %6465 = vsyncpa [#allocation7 + $0x1], 1 }
 0x5b5   :  { %6466 = vsyncpa [#allocation10], 1 }
 0x5b6   :  { %6467 = vsyncpa [#allocation5], 1 }
 0x5b7   :  { %6469 = vsyncpa [#allocation5 + $0x1], 1 }

</bundles_post_ra>
